<compile_context>
chip_gen: v7x
topology: tpu7x:2x2x1
jax: 0.10.0
libtpu: 0.0.40
codegen_flags: <defaults>
</compile_context>

<pallas_src>
import functools

import jax
import jax.numpy as jnp
from jax.experimental import pallas as pl
from jax.experimental.pallas import tpu as pltpu


def _round_up(n, m):
    return ((n + m - 1) // m) * m


def _l2_normalize(x):
    # F.normalize(x, p=2, dim=1, eps=1e-12) == x * rsqrt(max(sum(x^2), 1e-24))
    sumsq = jnp.sum(x * x, axis=-1, keepdims=True)
    return x * jax.lax.rsqrt(jnp.maximum(sumsq, 1e-24))


def rcim_fused_kernel(adj_ref, user_emb_ref, user_ui_ref, entity_emb_ref,
                      out_ref,
                      adj_bf, adjT_bf, user_agg, ent_agg, rel_acc,
                      m_scr, d_scr, att_acc, *, n_hops):
    """One relation per grid step: n_hops propagation + online-softmax fold."""
    r = pl.program_id(0)
    n_rel = pl.num_programs(0)

    # --- init of the cross-relation softmax accumulators (resident scratch) ---
    @pl.when(r == 0)
    def _():
        m_scr[...] = jnp.full(m_scr.shape, -jnp.inf, dtype=m_scr.dtype)
        d_scr[...] = jnp.zeros(d_scr.shape, dtype=d_scr.dtype)
        att_acc[...] = jnp.zeros(att_acc.shape, dtype=att_acc.dtype)

    # --- widen int8 adjacency to bf16 once; build A^T once (32-bit transpose) --
    adj_bf[...] = (adj_ref[...].astype(jnp.int32)
                   .astype(jnp.float32).astype(jnp.bfloat16))
    adjT_bf[...] = jnp.transpose(
        adj_ref[...].astype(jnp.int32).astype(jnp.float32), (1, 0)
    ).astype(jnp.bfloat16)

    # --- per-relation restart from the raw embeddings (bf16 MXU operands) -----
    user_agg[...] = user_emb_ref[...].astype(jnp.bfloat16)
    ent_agg[...] = entity_emb_ref[...].astype(jnp.bfloat16)
    rel_acc[...] = jnp.zeros_like(rel_acc)

    for _ in range(n_hops):  # small static trip count -> unrolled
        # Both matmuls read the OLD aggregates (simultaneous update), f32 accum.
        new_user = jnp.dot(adj_bf[...], ent_agg[...],
                           preferred_element_type=jnp.float32)
        new_ent = jnp.dot(adjT_bf[...], user_agg[...],
                          preferred_element_type=jnp.float32)
        new_user = _l2_normalize(new_user)
        new_ent = _l2_normalize(new_ent)
        user_agg[...] = new_user.astype(jnp.bfloat16)
        ent_agg[...] = new_ent.astype(jnp.bfloat16)
        rel_acc[...] += new_user          # accumulate straight into the VMEM ref

    # --- online-softmax attention over relations (no rel_user HBM round trip) -
    rel = rel_acc[...]
    logit = jnp.sum(rel * user_ui_ref[...], axis=-1, keepdims=True)   # [U, 1]
    m_new = jnp.maximum(m_scr[...], logit)
    scale = jnp.exp(m_scr[...] - m_new)
    p = jnp.exp(logit - m_new)
    d_scr[...] = scale * d_scr[...] + p
    att_acc[...] = scale * att_acc[...] + p * rel
    m_scr[...] = m_new

    @pl.when(r == n_rel - 1)
    def _():
        inv = pl.reciprocal(d_scr[...], approx=True)   # EUP slot, ~free
        out_ref[...] = att_acc[...] * inv + user_emb_ref[...]


def rcim_gcn(user_emb, user_ui_emb, entity_emb, user_interests, n_hops):
    """Pallas implementation of RCIMGcn.forward (mess_dropout=False path).

    Returns user_int_emb only (Contrast_user is not defined in the spec).
    """
    n_users, d = user_emb.shape
    n_entities = entity_emb.shape[0]
    n_rel = len(user_interests)

    # Lane-dense padding: every dim feeding the MXU / lanes -> multiple of 128.
    d_p = _round_up(d, 128)
    n_users_p = _round_up(n_users, 128)
    n_ent_p = _round_up(n_entities, 128)

    def pad2(x, rows, cols):
        return jnp.pad(x, ((0, rows - x.shape[0]), (0, cols - x.shape[1])))

    user_emb_p = pad2(user_emb.astype(jnp.float32), n_users_p, d_p)
    user_ui_p = pad2(user_ui_emb.astype(jnp.float32), n_users_p, d_p)
    entity_emb_p = pad2(entity_emb.astype(jnp.float32), n_ent_p, d_p)

    # Dense lowering of every edge list with ONE batched scatter-add
    # (entry = edge multiplicity == scatter_add semantics).  Shipped as int8:
    # multiplicities are tiny integers, so the cast is exact and the dominant
    # HBM/DMA stream is 4x smaller than f32 (2x smaller than bf16).
    u_all = jnp.concatenate([ui[:, 0].astype(jnp.int32) for ui in user_interests])
    e_all = jnp.concatenate([ui[:, 1].astype(jnp.int32) for ui in user_interests])
    r_all = jnp.concatenate([jnp.full((ui.shape[0],), r, jnp.int32)
                             for r, ui in enumerate(user_interests)])
    adj_i8 = (jnp.zeros((n_rel, n_users_p, n_ent_p), jnp.int32)
              .at[r_all, u_all, e_all].add(1)).astype(jnp.int8)

    # VMEM budget: stay well inside v7x's 64 MiB, use more on v5e/v6e (128 MiB).
    try:
        vmem_cap = pltpu.get_tpu_info().vmem_capacity_bytes
    except Exception:
        vmem_cap = 64 * 1024 * 1024
    vmem_limit = min(int(vmem_cap * 3 // 4), 100 * 1024 * 1024)

    kern = functools.partial(rcim_fused_kernel, n_hops=n_hops)
    out_p = pl.pallas_call(
        kern,
        grid=(n_rel,),
        in_specs=[
            pl.BlockSpec((None, n_users_p, n_ent_p), lambda r: (r, 0, 0)),  # A_r (int8)
            pl.BlockSpec((n_users_p, d_p), lambda r: (0, 0)),               # user_emb
            pl.BlockSpec((n_users_p, d_p), lambda r: (0, 0)),               # user_ui_emb
            pl.BlockSpec((n_ent_p, d_p), lambda r: (0, 0)),                 # entity_emb
        ],
        out_specs=pl.BlockSpec((n_users_p, d_p), lambda r: (0, 0)),
        out_shape=jax.ShapeDtypeStruct((n_users_p, d_p), jnp.float32),
        scratch_shapes=[
            pltpu.VMEM((n_users_p, n_ent_p), jnp.bfloat16),   # A   (bf16, per relation)
            pltpu.VMEM((n_ent_p, n_users_p), jnp.bfloat16),   # A^T (bf16, per relation)
            pltpu.VMEM((n_users_p, d_p), jnp.bfloat16),       # user aggregate
            pltpu.VMEM((n_ent_p, d_p), jnp.bfloat16),         # entity aggregate
            pltpu.VMEM((n_users_p, d_p), jnp.float32),        # rel_user_r accumulator
            pltpu.VMEM((n_users_p, 1), jnp.float32),          # softmax running max
            pltpu.VMEM((n_users_p, 1), jnp.float32),          # softmax denominator
            pltpu.VMEM((n_users_p, d_p), jnp.float32),        # weighted rel accumulator
        ],
        compiler_params=pltpu.CompilerParams(
            # relation axis carries the online-softmax accumulator -> reduction
            dimension_semantics=("arbitrary",),
            vmem_limit_bytes=vmem_limit,
        ),
    )(adj_i8, user_emb_p, user_ui_p, entity_emb_p)

    return out_p[:n_users, :d]


def ref_forward(user_emb, user_ui_emb, entity_emb, user_interests, n_hops):
    """Pure-JAX transcription of RCIMGcn.forward (mess_dropout=False), f32."""
    n_users, d = user_emb.shape
    n_entities = entity_emb.shape[0]
    rel_embs, logits = [], []
    for interests in user_interests:
        u_idx = interests[:, 0]
        e_idx = interests[:, 1]
        user_agg, ent_agg = user_emb, entity_emb
        rel = jnp.zeros_like(user_emb)
        for _ in range(n_hops):
            user_agg_temp = user_agg
            gathered_ent = ent_agg[e_idx]                 # entity_int_emb[entity_index]
            gathered_user = user_agg_temp[u_idx]          # user_agg_emb_temp[user_index]
            user_agg = jnp.zeros((n_users, d), jnp.float32).at[u_idx].add(gathered_ent)
            ent_agg = jnp.zeros((n_entities, d), jnp.float32).at[e_idx].add(gathered_user)
            user_agg = user_agg / jnp.maximum(
                jnp.linalg.norm(user_agg, axis=1, keepdims=True), 1e-12)
            ent_agg = ent_agg / jnp.maximum(
                jnp.linalg.norm(ent_agg, axis=1, keepdims=True), 1e-12)
            rel = rel + user_agg
        rel_embs.append(rel)
        logits.append(jnp.sum(rel * user_ui_emb, axis=1))
    att = jax.nn.softmax(jnp.stack(logits, axis=1), axis=1)      # [n_users, R]
    out = sum(att[:, r][:, None] * rel_embs[r] for r in range(len(user_interests)))
    return out + user_emb


if __name__ == "__main__":
    n_users, n_entities, emb_size = 64, 96, 64
    n_hops, n_relations, nnz_per_rel = 3, 3, 256

    key = jax.random.PRNGKey(0)
    keys = jax.random.split(key, 3 + n_relations)
    user_emb = jax.random.normal(keys[0], (n_users, emb_size), jnp.float32)
    user_ui_emb = jax.random.normal(keys[1], (n_users, emb_size), jnp.float32)
    entity_emb = jax.random.normal(keys[2], (n_entities, emb_size), jnp.float32)

    # user_interests[i]: [nnz, 2] edge list with columns (user_index, entity_index),
    # unique pairs per relation (as after .coalesce()).
    user_interests = []
    for r in range(n_relations):
        flat = jax.random.choice(keys[3 + r], n_users * n_entities,
                                 (nnz_per_rel,), replace=False)
        u_idx = (flat // n_entities).astype(jnp.int32)
        e_idx = (flat % n_entities).astype(jnp.int32)
        user_interests.append(jnp.stack([u_idx, e_idx], axis=1))

    user_int_emb = rcim_gcn(user_emb, user_ui_emb, entity_emb,
                            user_interests, n_hops)
    jax.block_until_ready(user_int_emb)

    ref = ref_forward(user_emb, user_ui_emb, entity_emb, user_interests, n_hops)

    # bf16 MXU operands (adjacency + per-hop aggregates) + approx reciprocal in
    # the softmax vs. the pure-f32 reference: expect ~1e-2-level relative
    # differences, so the tolerance is loosened.
    assert user_int_emb.shape == (n_users, emb_size)
    assert jnp.allclose(user_int_emb, ref, atol=1e-1, rtol=1e-1), (
        float(jnp.max(jnp.abs(user_int_emb - ref))))

    print("KERNEL_OK")
</pallas_src>

<mosaic_0001>
module attributes {stable_mosaic.version = 11 : i64} {
  func.func @rcim_fused_kernel(%arg0: i32, %arg1: memref<1x128x128xi8, #tpu.memory_space<vmem>>, %arg2: memref<128x128xf32, #tpu.memory_space<vmem>>, %arg3: memref<128x128xf32, #tpu.memory_space<vmem>>, %arg4: memref<128x128xf32, #tpu.memory_space<vmem>>, %arg5: memref<128x128xf32, #tpu.memory_space<vmem>>, %arg6: memref<128x128xbf16, #tpu.memory_space<vmem>>, %arg7: memref<128x128xbf16, #tpu.memory_space<vmem>>, %arg8: memref<128x128xbf16, #tpu.memory_space<vmem>>, %arg9: memref<128x128xbf16, #tpu.memory_space<vmem>>, %arg10: memref<128x128xf32, #tpu.memory_space<vmem>>, %arg11: memref<128x1xf32, #tpu.memory_space<vmem>>, %arg12: memref<128x1xf32, #tpu.memory_space<vmem>>, %arg13: memref<128x128xf32, #tpu.memory_space<vmem>>) attributes {dimension_semantics = [#tpu.dimension_semantics<arbitrary>], iteration_bounds = array<i64: 3>, scalar_prefetch = 0 : i64, scratch_operands = 8 : i64, tpu.core_type = #tpu.core_type<tc>, window_params = [{transform_indices = @transform_0, window_bounds = array<i64: 1, 128, 128>}, {pipeline_mode = #tpu.pipeline_mode<synchronous>, transform_indices = @transform_1, window_bounds = array<i64: 128, 128>}, {pipeline_mode = #tpu.pipeline_mode<synchronous>, transform_indices = @transform_2, window_bounds = array<i64: 128, 128>}, {pipeline_mode = #tpu.pipeline_mode<synchronous>, transform_indices = @transform_3, window_bounds = array<i64: 128, 128>}, {pipeline_mode = #tpu.pipeline_mode<synchronous>, transform_indices = @transform_4, window_bounds = array<i64: 128, 128>}]} {
    %c0_i32 = arith.constant 0 : i32
    %0 = arith.cmpi eq, %arg0, %c0_i32 : i32
    %1 = arith.extui %0 : i1 to i32
    %c0_i32_0 = arith.constant 0 : i32
    %2 = arith.cmpi ne, %1, %c0_i32_0 : i32
    scf.if %2 {
      %cst_106 = arith.constant 0xFF800000 : f32
      %138 = vector.broadcast %cst_106 : f32 to vector<128x1xf32>
      %c0_107 = arith.constant 0 : index
      %c0_108 = arith.constant 0 : index
      %139 = vector.load %arg11[%c0_107, %c0_108] : memref<128x1xf32, #tpu.memory_space<vmem>>, vector<128x1xf32>
      tpu.vector_store %arg11[%c0_107, %c0_108], %138 {strides = array<i32>} : memref<128x1xf32, #tpu.memory_space<vmem>>, vector<128x1xf32>,
      %cst_109 = arith.constant 0.000000e+00 : f32
      %140 = vector.broadcast %cst_109 : f32 to vector<128x1xf32>
      %c0_110 = arith.constant 0 : index
      %c0_111 = arith.constant 0 : index
      %141 = vector.load %arg12[%c0_110, %c0_111] : memref<128x1xf32, #tpu.memory_space<vmem>>, vector<128x1xf32>
      tpu.vector_store %arg12[%c0_110, %c0_111], %140 {strides = array<i32>} : memref<128x1xf32, #tpu.memory_space<vmem>>, vector<128x1xf32>,
      %cst_112 = arith.constant 0.000000e+00 : f32
      %142 = vector.broadcast %cst_112 : f32 to vector<128x128xf32>
      %c0_113 = arith.constant 0 : index
      %c0_114 = arith.constant 0 : index
      %143 = vector.load %arg13[%c0_113, %c0_114] : memref<128x128xf32, #tpu.memory_space<vmem>>, vector<128x128xf32>
      tpu.vector_store %arg13[%c0_113, %c0_114], %142 {strides = array<i32>} : memref<128x128xf32, #tpu.memory_space<vmem>>, vector<128x128xf32>,
    } else {
    }
    %c0 = arith.constant 0 : index
    %c0_1 = arith.constant 0 : index
    %c0_2 = arith.constant 0 : index
    %3 = vector.load %arg1[%c0, %c0_1, %c0_2] : memref<1x128x128xi8, #tpu.memory_space<vmem>>, vector<1x128x128xi8>
    %4 = vector.shape_cast %3 : vector<1x128x128xi8> to vector<128x128xi8>
    %5 = arith.extsi %4 : vector<128x128xi8> to vector<128x128xi32>
    %6 = arith.sitofp %5 : vector<128x128xi32> to vector<128x128xf32>
    %7 = arith.truncf %6 : vector<128x128xf32> to vector<128x128xbf16>
    %c0_3 = arith.constant 0 : index
    %c0_4 = arith.constant 0 : index
    %8 = vector.load %arg6[%c0_3, %c0_4] : memref<128x128xbf16, #tpu.memory_space<vmem>>, vector<128x128xbf16>
    tpu.vector_store %arg6[%c0_3, %c0_4], %7 {strides = array<i32>} : memref<128x128xbf16, #tpu.memory_space<vmem>>, vector<128x128xbf16>,
    %c0_5 = arith.constant 0 : index
    %c0_6 = arith.constant 0 : index
    %c0_7 = arith.constant 0 : index
    %9 = vector.load %arg1[%c0_5, %c0_6, %c0_7] : memref<1x128x128xi8, #tpu.memory_space<vmem>>, vector<1x128x128xi8>
    %10 = vector.shape_cast %9 : vector<1x128x128xi8> to vector<128x128xi8>
    %11 = arith.extsi %10 : vector<128x128xi8> to vector<128x128xi32>
    %12 = arith.sitofp %11 : vector<128x128xi32> to vector<128x128xf32>
    %13 = tpu.transpose %12, [1, 0] : vector<128x128xf32> -> vector<128x128xf32>
    %14 = arith.truncf %13 : vector<128x128xf32> to vector<128x128xbf16>
    %c0_8 = arith.constant 0 : index
    %c0_9 = arith.constant 0 : index
    %15 = vector.load %arg7[%c0_8, %c0_9] : memref<128x128xbf16, #tpu.memory_space<vmem>>, vector<128x128xbf16>
    tpu.vector_store %arg7[%c0_8, %c0_9], %14 {strides = array<i32>} : memref<128x128xbf16, #tpu.memory_space<vmem>>, vector<128x128xbf16>,
    %c0_10 = arith.constant 0 : index
    %c0_11 = arith.constant 0 : index
    %16 = vector.load %arg2[%c0_10, %c0_11] : memref<128x128xf32, #tpu.memory_space<vmem>>, vector<128x128xf32>
    %17 = arith.truncf %16 : vector<128x128xf32> to vector<128x128xbf16>
    %c0_12 = arith.constant 0 : index
    %c0_13 = arith.constant 0 : index
    %18 = vector.load %arg8[%c0_12, %c0_13] : memref<128x128xbf16, #tpu.memory_space<vmem>>, vector<128x128xbf16>
    tpu.vector_store %arg8[%c0_12, %c0_13], %17 {strides = array<i32>} : memref<128x128xbf16, #tpu.memory_space<vmem>>, vector<128x128xbf16>,
    %c0_14 = arith.constant 0 : index
    %c0_15 = arith.constant 0 : index
    %19 = vector.load %arg4[%c0_14, %c0_15] : memref<128x128xf32, #tpu.memory_space<vmem>>, vector<128x128xf32>
    %20 = arith.truncf %19 : vector<128x128xf32> to vector<128x128xbf16>
    %c0_16 = arith.constant 0 : index
    %c0_17 = arith.constant 0 : index
    %21 = vector.load %arg9[%c0_16, %c0_17] : memref<128x128xbf16, #tpu.memory_space<vmem>>, vector<128x128xbf16>
    tpu.vector_store %arg9[%c0_16, %c0_17], %20 {strides = array<i32>} : memref<128x128xbf16, #tpu.memory_space<vmem>>, vector<128x128xbf16>,
    %cst = arith.constant 0.000000e+00 : f32
    %22 = vector.broadcast %cst : f32 to vector<128x128xf32>
    %c0_18 = arith.constant 0 : index
    %c0_19 = arith.constant 0 : index
    %23 = vector.load %arg10[%c0_18, %c0_19] : memref<128x128xf32, #tpu.memory_space<vmem>>, vector<128x128xf32>
    tpu.vector_store %arg10[%c0_18, %c0_19], %22 {strides = array<i32>} : memref<128x128xf32, #tpu.memory_space<vmem>>, vector<128x128xf32>,
    %c0_20 = arith.constant 0 : index
    %c0_21 = arith.constant 0 : index
    %24 = vector.load %arg6[%c0_20, %c0_21] : memref<128x128xbf16, #tpu.memory_space<vmem>>, vector<128x128xbf16>
    %c0_22 = arith.constant 0 : index
    %c0_23 = arith.constant 0 : index
    %25 = vector.load %arg9[%c0_22, %c0_23] : memref<128x128xbf16, #tpu.memory_space<vmem>>, vector<128x128xbf16>
    %cst_24 = arith.constant dense<0.000000e+00> : vector<128x128xf32>
    %26 = tpu.matmul %24, %25, %cst_24 {dimension_numbers = #tpu.dot_dimension_numbers<[1], [0], [0], [1], [0, 0, 1, 1], [], []>} : vector<128x128xbf16>, vector<128x128xbf16>, vector<128x128xf32> -> vector<128x128xf32>
    %c0_25 = arith.constant 0 : index
    %c0_26 = arith.constant 0 : index
    %27 = vector.load %arg7[%c0_25, %c0_26] : memref<128x128xbf16, #tpu.memory_space<vmem>>, vector<128x128xbf16>
    %c0_27 = arith.constant 0 : index
    %c0_28 = arith.constant 0 : index
    %28 = vector.load %arg8[%c0_27, %c0_28] : memref<128x128xbf16, #tpu.memory_space<vmem>>, vector<128x128xbf16>
    %cst_29 = arith.constant dense<0.000000e+00> : vector<128x128xf32>
    %29 = tpu.matmul %27, %28, %cst_29 {dimension_numbers = #tpu.dot_dimension_numbers<[1], [0], [0], [1], [0, 0, 1, 1], [], []>} : vector<128x128xbf16>, vector<128x128xbf16>, vector<128x128xf32> -> vector<128x128xf32>
    %30 = arith.mulf %26, %26 : vector<128x128xf32>
    %cst_30 = arith.constant dense<0.000000e+00> : vector<128xf32>
    %31 = vector.multi_reduction <add>, %30, %cst_30 [1] : vector<128x128xf32> to vector<128xf32>
    %32 = vector.shape_cast %31 : vector<128xf32> to vector<128x1xf32>
    %cst_31 = arith.constant 1.000000e-24 : f32
    %33 = vector.broadcast %cst_31 : f32 to vector<128x1xf32>
    %34 = arith.maximumf %32, %33 : vector<128x1xf32>
    %35 = math.rsqrt %34 : vector<128x1xf32>
    %36 = vector.broadcast %35 : vector<128x1xf32> to vector<128x128xf32>
    %37 = arith.mulf %26, %36 : vector<128x128xf32>
    %38 = arith.mulf %29, %29 : vector<128x128xf32>
    %cst_32 = arith.constant dense<0.000000e+00> : vector<128xf32>
    %39 = vector.multi_reduction <add>, %38, %cst_32 [1] : vector<128x128xf32> to vector<128xf32>
    %40 = vector.shape_cast %39 : vector<128xf32> to vector<128x1xf32>
    %cst_33 = arith.constant 1.000000e-24 : f32
    %41 = vector.broadcast %cst_33 : f32 to vector<128x1xf32>
    %42 = arith.maximumf %40, %41 : vector<128x1xf32>
    %43 = math.rsqrt %42 : vector<128x1xf32>
    %44 = vector.broadcast %43 : vector<128x1xf32> to vector<128x128xf32>
    %45 = arith.mulf %29, %44 : vector<128x128xf32>
    %46 = arith.truncf %37 : vector<128x128xf32> to vector<128x128xbf16>
    %c0_34 = arith.constant 0 : index
    %c0_35 = arith.constant 0 : index
    %47 = vector.load %arg8[%c0_34, %c0_35] : memref<128x128xbf16, #tpu.memory_space<vmem>>, vector<128x128xbf16>
    tpu.vector_store %arg8[%c0_34, %c0_35], %46 {strides = array<i32>} : memref<128x128xbf16, #tpu.memory_space<vmem>>, vector<128x128xbf16>,
    %48 = arith.truncf %45 : vector<128x128xf32> to vector<128x128xbf16>
    %c0_36 = arith.constant 0 : index
    %c0_37 = arith.constant 0 : index
    %49 = vector.load %arg9[%c0_36, %c0_37] : memref<128x128xbf16, #tpu.memory_space<vmem>>, vector<128x128xbf16>
    tpu.vector_store %arg9[%c0_36, %c0_37], %48 {strides = array<i32>} : memref<128x128xbf16, #tpu.memory_space<vmem>>, vector<128x128xbf16>,
    %c0_38 = arith.constant 0 : index
    %c0_39 = arith.constant 0 : index
    %50 = vector.load %arg10[%c0_38, %c0_39] : memref<128x128xf32, #tpu.memory_space<vmem>>, vector<128x128xf32>
    %51 = arith.addf %50, %37 : vector<128x128xf32>
    %c0_40 = arith.constant 0 : index
    %c0_41 = arith.constant 0 : index
    %52 = vector.load %arg10[%c0_40, %c0_41] : memref<128x128xf32, #tpu.memory_space<vmem>>, vector<128x128xf32>
    tpu.vector_store %arg10[%c0_40, %c0_41], %51 {strides = array<i32>} : memref<128x128xf32, #tpu.memory_space<vmem>>, vector<128x128xf32>,
    %c0_42 = arith.constant 0 : index
    %c0_43 = arith.constant 0 : index
    %53 = vector.load %arg6[%c0_42, %c0_43] : memref<128x128xbf16, #tpu.memory_space<vmem>>, vector<128x128xbf16>
    %c0_44 = arith.constant 0 : index
    %c0_45 = arith.constant 0 : index
    %54 = vector.load %arg9[%c0_44, %c0_45] : memref<128x128xbf16, #tpu.memory_space<vmem>>, vector<128x128xbf16>
    %cst_46 = arith.constant dense<0.000000e+00> : vector<128x128xf32>
    %55 = tpu.matmul %53, %54, %cst_46 {dimension_numbers = #tpu.dot_dimension_numbers<[1], [0], [0], [1], [0, 0, 1, 1], [], []>} : vector<128x128xbf16>, vector<128x128xbf16>, vector<128x128xf32> -> vector<128x128xf32>
    %c0_47 = arith.constant 0 : index
    %c0_48 = arith.constant 0 : index
    %56 = vector.load %arg7[%c0_47, %c0_48] : memref<128x128xbf16, #tpu.memory_space<vmem>>, vector<128x128xbf16>
    %c0_49 = arith.constant 0 : index
    %c0_50 = arith.constant 0 : index
    %57 = vector.load %arg8[%c0_49, %c0_50] : memref<128x128xbf16, #tpu.memory_space<vmem>>, vector<128x128xbf16>
    %cst_51 = arith.constant dense<0.000000e+00> : vector<128x128xf32>
    %58 = tpu.matmul %56, %57, %cst_51 {dimension_numbers = #tpu.dot_dimension_numbers<[1], [0], [0], [1], [0, 0, 1, 1], [], []>} : vector<128x128xbf16>, vector<128x128xbf16>, vector<128x128xf32> -> vector<128x128xf32>
    %59 = arith.mulf %55, %55 : vector<128x128xf32>
    %cst_52 = arith.constant dense<0.000000e+00> : vector<128xf32>
    %60 = vector.multi_reduction <add>, %59, %cst_52 [1] : vector<128x128xf32> to vector<128xf32>
    %61 = vector.shape_cast %60 : vector<128xf32> to vector<128x1xf32>
    %cst_53 = arith.constant 1.000000e-24 : f32
    %62 = vector.broadcast %cst_53 : f32 to vector<128x1xf32>
    %63 = arith.maximumf %61, %62 : vector<128x1xf32>
    %64 = math.rsqrt %63 : vector<128x1xf32>
    %65 = vector.broadcast %64 : vector<128x1xf32> to vector<128x128xf32>
    %66 = arith.mulf %55, %65 : vector<128x128xf32>
    %67 = arith.mulf %58, %58 : vector<128x128xf32>
    %cst_54 = arith.constant dense<0.000000e+00> : vector<128xf32>
    %68 = vector.multi_reduction <add>, %67, %cst_54 [1] : vector<128x128xf32> to vector<128xf32>
    %69 = vector.shape_cast %68 : vector<128xf32> to vector<128x1xf32>
    %cst_55 = arith.constant 1.000000e-24 : f32
    %70 = vector.broadcast %cst_55 : f32 to vector<128x1xf32>
    %71 = arith.maximumf %69, %70 : vector<128x1xf32>
    %72 = math.rsqrt %71 : vector<128x1xf32>
    %73 = vector.broadcast %72 : vector<128x1xf32> to vector<128x128xf32>
    %74 = arith.mulf %58, %73 : vector<128x128xf32>
    %75 = arith.truncf %66 : vector<128x128xf32> to vector<128x128xbf16>
    %c0_56 = arith.constant 0 : index
    %c0_57 = arith.constant 0 : index
    %76 = vector.load %arg8[%c0_56, %c0_57] : memref<128x128xbf16, #tpu.memory_space<vmem>>, vector<128x128xbf16>
    tpu.vector_store %arg8[%c0_56, %c0_57], %75 {strides = array<i32>} : memref<128x128xbf16, #tpu.memory_space<vmem>>, vector<128x128xbf16>,
    %77 = arith.truncf %74 : vector<128x128xf32> to vector<128x128xbf16>
    %c0_58 = arith.constant 0 : index
    %c0_59 = arith.constant 0 : index
    %78 = vector.load %arg9[%c0_58, %c0_59] : memref<128x128xbf16, #tpu.memory_space<vmem>>, vector<128x128xbf16>
    tpu.vector_store %arg9[%c0_58, %c0_59], %77 {strides = array<i32>} : memref<128x128xbf16, #tpu.memory_space<vmem>>, vector<128x128xbf16>,
    %c0_60 = arith.constant 0 : index
    %c0_61 = arith.constant 0 : index
    %79 = vector.load %arg10[%c0_60, %c0_61] : memref<128x128xf32, #tpu.memory_space<vmem>>, vector<128x128xf32>
    %80 = arith.addf %79, %66 : vector<128x128xf32>
    %c0_62 = arith.constant 0 : index
    %c0_63 = arith.constant 0 : index
    %81 = vector.load %arg10[%c0_62, %c0_63] : memref<128x128xf32, #tpu.memory_space<vmem>>, vector<128x128xf32>
    tpu.vector_store %arg10[%c0_62, %c0_63], %80 {strides = array<i32>} : memref<128x128xf32, #tpu.memory_space<vmem>>, vector<128x128xf32>,
    %c0_64 = arith.constant 0 : index
    %c0_65 = arith.constant 0 : index
    %82 = vector.load %arg6[%c0_64, %c0_65] : memref<128x128xbf16, #tpu.memory_space<vmem>>, vector<128x128xbf16>
    %c0_66 = arith.constant 0 : index
    %c0_67 = arith.constant 0 : index
    %83 = vector.load %arg9[%c0_66, %c0_67] : memref<128x128xbf16, #tpu.memory_space<vmem>>, vector<128x128xbf16>
    %cst_68 = arith.constant dense<0.000000e+00> : vector<128x128xf32>
    %84 = tpu.matmul %82, %83, %cst_68 {dimension_numbers = #tpu.dot_dimension_numbers<[1], [0], [0], [1], [0, 0, 1, 1], [], []>} : vector<128x128xbf16>, vector<128x128xbf16>, vector<128x128xf32> -> vector<128x128xf32>
    %c0_69 = arith.constant 0 : index
    %c0_70 = arith.constant 0 : index
    %85 = vector.load %arg7[%c0_69, %c0_70] : memref<128x128xbf16, #tpu.memory_space<vmem>>, vector<128x128xbf16>
    %c0_71 = arith.constant 0 : index
    %c0_72 = arith.constant 0 : index
    %86 = vector.load %arg8[%c0_71, %c0_72] : memref<128x128xbf16, #tpu.memory_space<vmem>>, vector<128x128xbf16>
    %cst_73 = arith.constant dense<0.000000e+00> : vector<128x128xf32>
    %87 = tpu.matmul %85, %86, %cst_73 {dimension_numbers = #tpu.dot_dimension_numbers<[1], [0], [0], [1], [0, 0, 1, 1], [], []>} : vector<128x128xbf16>, vector<128x128xbf16>, vector<128x128xf32> -> vector<128x128xf32>
    %88 = arith.mulf %84, %84 : vector<128x128xf32>
    %cst_74 = arith.constant dense<0.000000e+00> : vector<128xf32>
    %89 = vector.multi_reduction <add>, %88, %cst_74 [1] : vector<128x128xf32> to vector<128xf32>
    %90 = vector.shape_cast %89 : vector<128xf32> to vector<128x1xf32>
    %cst_75 = arith.constant 1.000000e-24 : f32
    %91 = vector.broadcast %cst_75 : f32 to vector<128x1xf32>
    %92 = arith.maximumf %90, %91 : vector<128x1xf32>
    %93 = math.rsqrt %92 : vector<128x1xf32>
    %94 = vector.broadcast %93 : vector<128x1xf32> to vector<128x128xf32>
    %95 = arith.mulf %84, %94 : vector<128x128xf32>
    %96 = arith.mulf %87, %87 : vector<128x128xf32>
    %cst_76 = arith.constant dense<0.000000e+00> : vector<128xf32>
    %97 = vector.multi_reduction <add>, %96, %cst_76 [1] : vector<128x128xf32> to vector<128xf32>
    %98 = vector.shape_cast %97 : vector<128xf32> to vector<128x1xf32>
    %cst_77 = arith.constant 1.000000e-24 : f32
    %99 = vector.broadcast %cst_77 : f32 to vector<128x1xf32>
    %100 = arith.maximumf %98, %99 : vector<128x1xf32>
    %101 = math.rsqrt %100 : vector<128x1xf32>
    %102 = vector.broadcast %101 : vector<128x1xf32> to vector<128x128xf32>
    %103 = arith.mulf %87, %102 : vector<128x128xf32>
    %104 = arith.truncf %95 : vector<128x128xf32> to vector<128x128xbf16>
    %c0_78 = arith.constant 0 : index
    %c0_79 = arith.constant 0 : index
    %105 = vector.load %arg8[%c0_78, %c0_79] : memref<128x128xbf16, #tpu.memory_space<vmem>>, vector<128x128xbf16>
    tpu.vector_store %arg8[%c0_78, %c0_79], %104 {strides = array<i32>} : memref<128x128xbf16, #tpu.memory_space<vmem>>, vector<128x128xbf16>,
    %106 = arith.truncf %103 : vector<128x128xf32> to vector<128x128xbf16>
    %c0_80 = arith.constant 0 : index
    %c0_81 = arith.constant 0 : index
    %107 = vector.load %arg9[%c0_80, %c0_81] : memref<128x128xbf16, #tpu.memory_space<vmem>>, vector<128x128xbf16>
    tpu.vector_store %arg9[%c0_80, %c0_81], %106 {strides = array<i32>} : memref<128x128xbf16, #tpu.memory_space<vmem>>, vector<128x128xbf16>,
    %c0_82 = arith.constant 0 : index
    %c0_83 = arith.constant 0 : index
    %108 = vector.load %arg10[%c0_82, %c0_83] : memref<128x128xf32, #tpu.memory_space<vmem>>, vector<128x128xf32>
    %109 = arith.addf %108, %95 : vector<128x128xf32>
    %c0_84 = arith.constant 0 : index
    %c0_85 = arith.constant 0 : index
    %110 = vector.load %arg10[%c0_84, %c0_85] : memref<128x128xf32, #tpu.memory_space<vmem>>, vector<128x128xf32>
    tpu.vector_store %arg10[%c0_84, %c0_85], %109 {strides = array<i32>} : memref<128x128xf32, #tpu.memory_space<vmem>>, vector<128x128xf32>,
    %c0_86 = arith.constant 0 : index
    %c0_87 = arith.constant 0 : index
    %111 = vector.load %arg10[%c0_86, %c0_87] : memref<128x128xf32, #tpu.memory_space<vmem>>, vector<128x128xf32>
    %c0_88 = arith.constant 0 : index
    %c0_89 = arith.constant 0 : index
    %112 = vector.load %arg3[%c0_88, %c0_89] : memref<128x128xf32, #tpu.memory_space<vmem>>, vector<128x128xf32>
    %113 = arith.mulf %111, %112 : vector<128x128xf32>
    %cst_90 = arith.constant dense<0.000000e+00> : vector<128xf32>
    %114 = vector.multi_reduction <add>, %113, %cst_90 [1] : vector<128x128xf32> to vector<128xf32>
    %115 = vector.shape_cast %114 : vector<128xf32> to vector<128x1xf32>
    %c0_91 = arith.constant 0 : index
    %c0_92 = arith.constant 0 : index
    %116 = vector.load %arg11[%c0_91, %c0_92] : memref<128x1xf32, #tpu.memory_space<vmem>>, vector<128x1xf32>
    %117 = arith.maximumf %116, %115 : vector<128x1xf32>
    %c0_93 = arith.constant 0 : index
    %c0_94 = arith.constant 0 : index
    %118 = vector.load %arg11[%c0_93, %c0_94] : memref<128x1xf32, #tpu.memory_space<vmem>>, vector<128x1xf32>
    %119 = arith.subf %118, %117 : vector<128x1xf32>
    %120 = math.exp %119 : vector<128x1xf32>
    %121 = arith.subf %115, %117 : vector<128x1xf32>
    %122 = math.exp %121 : vector<128x1xf32>
    %c0_95 = arith.constant 0 : index
    %c0_96 = arith.constant 0 : index
    %123 = vector.load %arg12[%c0_95, %c0_96] : memref<128x1xf32, #tpu.memory_space<vmem>>, vector<128x1xf32>
    %124 = arith.mulf %120, %123 : vector<128x1xf32>
    %125 = arith.addf %124, %122 : vector<128x1xf32>
    %c0_97 = arith.constant 0 : index
    %c0_98 = arith.constant 0 : index
    %126 = vector.load %arg12[%c0_97, %c0_98] : memref<128x1xf32, #tpu.memory_space<vmem>>, vector<128x1xf32>
    tpu.vector_store %arg12[%c0_97, %c0_98], %125 {strides = array<i32>} : memref<128x1xf32, #tpu.memory_space<vmem>>, vector<128x1xf32>,
    %c0_99 = arith.constant 0 : index
    %c0_100 = arith.constant 0 : index
    %127 = vector.load %arg13[%c0_99, %c0_100] : memref<128x128xf32, #tpu.memory_space<vmem>>, vector<128x128xf32>
    %128 = vector.broadcast %120 : vector<128x1xf32> to vector<128x128xf32>
    %129 = arith.mulf %128, %127 : vector<128x128xf32>
    %130 = vector.broadcast %122 : vector<128x1xf32> to vector<128x128xf32>
    %131 = arith.mulf %130, %111 : vector<128x128xf32>
    %132 = arith.addf %129, %131 : vector<128x128xf32>
    %c0_101 = arith.constant 0 : index
    %c0_102 = arith.constant 0 : index
    %133 = vector.load %arg13[%c0_101, %c0_102] : memref<128x128xf32, #tpu.memory_space<vmem>>, vector<128x128xf32>
    tpu.vector_store %arg13[%c0_101, %c0_102], %132 {strides = array<i32>} : memref<128x128xf32, #tpu.memory_space<vmem>>, vector<128x128xf32>,
    %c0_103 = arith.constant 0 : index
    %c0_104 = arith.constant 0 : index
    %134 = vector.load %arg11[%c0_103, %c0_104] : memref<128x1xf32, #tpu.memory_space<vmem>>, vector<128x1xf32>
    tpu.vector_store %arg11[%c0_103, %c0_104], %117 {strides = array<i32>} : memref<128x1xf32, #tpu.memory_space<vmem>>, vector<128x1xf32>,
    %c2_i32 = arith.constant 2 : i32
    %135 = arith.cmpi eq, %arg0, %c2_i32 : i32
    %136 = arith.extui %135 : i1 to i32
    %c0_i32_105 = arith.constant 0 : i32
    %137 = arith.cmpi ne, %136, %c0_i32_105 : i32
    scf.if %137 {
      %c0_106 = arith.constant 0 : index
      %c0_107 = arith.constant 0 : index
      %138 = vector.load %arg12[%c0_106, %c0_107] : memref<128x1xf32, #tpu.memory_space<vmem>>, vector<128x1xf32>
      %139 = tpu.reciprocal %138 {approx = true} : vector<128x1xf32> -> vector<128x1xf32>
      %c0_108 = arith.constant 0 : index
      %c0_109 = arith.constant 0 : index
      %140 = vector.load %arg13[%c0_108, %c0_109] : memref<128x128xf32, #tpu.memory_space<vmem>>, vector<128x128xf32>
      %141 = vector.broadcast %139 : vector<128x1xf32> to vector<128x128xf32>
      %142 = arith.mulf %140, %141 : vector<128x128xf32>
      %c0_110 = arith.constant 0 : index
      %c0_111 = arith.constant 0 : index
      %143 = vector.load %arg2[%c0_110, %c0_111] : memref<128x128xf32, #tpu.memory_space<vmem>>, vector<128x128xf32>
      %144 = arith.addf %142, %143 : vector<128x128xf32>
      %c0_112 = arith.constant 0 : index
      %c0_113 = arith.constant 0 : index
      %145 = vector.load %arg5[%c0_112, %c0_113] : memref<128x128xf32, #tpu.memory_space<vmem>>, vector<128x128xf32>
      tpu.vector_store %arg5[%c0_112, %c0_113], %144 {strides = array<i32>} : memref<128x128xf32, #tpu.memory_space<vmem>>, vector<128x128xf32>,
    } else {
    }
    return
  }
  func.func @transform_0(%arg0: i32) -> (i32, i32, i32) {
    %c0_i32 = arith.constant 0 : i32
    %c0_i32_0 = arith.constant 0 : i32
    %c0_i32_1 = arith.constant 0 : i32
    return %arg0, %c0_i32, %c0_i32_0 : i32, i32, i32
  }
  func.func @transform_1(%arg0: i32) -> (i32, i32) {
    %c0_i32 = arith.constant 0 : i32
    %c0_i32_0 = arith.constant 0 : i32
    %c0_i32_1 = arith.constant 0 : i32
    return %c0_i32, %c0_i32_0 : i32, i32
  }
  func.func @transform_2(%arg0: i32) -> (i32, i32) {
    %c0_i32 = arith.constant 0 : i32
    %c0_i32_0 = arith.constant 0 : i32
    %c0_i32_1 = arith.constant 0 : i32
    return %c0_i32, %c0_i32_0 : i32, i32
  }
  func.func @transform_3(%arg0: i32) -> (i32, i32) {
    %c0_i32 = arith.constant 0 : i32
    %c0_i32_0 = arith.constant 0 : i32
    %c0_i32_1 = arith.constant 0 : i32
    return %c0_i32, %c0_i32_0 : i32, i32
  }
  func.func @transform_4(%arg0: i32) -> (i32, i32) {
    %c0_i32 = arith.constant 0 : i32
    %c0_i32_0 = arith.constant 0 : i32
    %c0_i32_1 = arith.constant 0 : i32
    return %c0_i32, %c0_i32_0 : i32, i32
  }
}

</mosaic_0001>

<bundles_post_ra>
// kernel: tpu_custom_call.1
= control target key start
LH: loop header
LB: loop body
LE: loop exit
PB: predicated region body
PF: predicated region fallthrough
CT: control target
= control target key end

     0   :  { %9 = vsyncpa [#allocation11], 0  ;;  %s4708_s0 = inlined_call_operand.hbm [shape: s8[3,128,128], index: 0, kind: input, shape index: {}]   ;;  %s4709_s1 = inlined_call_operand.hbm [shape: f32[128,128], index: 1, kind: input, shape index: {}]   ;;  %s4710_s2 = inlined_call_operand.hbm [shape: f32[128,128], index: 2, kind: input, shape index: {}]   ;;  %s4711_s3 = inlined_call_operand.hbm [shape: f32[128,128], index: 3, kind: input, shape index: {}]   ;;  %s4712_s4 = inlined_call_operand.hbm [shape: f32[128,128], index: 4, kind: output, shape index: {}]  }
   0x1   :  { %11 = vsyncpa [#allocation11 + $0x1], 0 }
   0x2   :  { %12 = vsyncpa [#allocation14], 0 }
   0x3   :  { %13 = vsyncpa [#allocation17], 0 }
   0x4   :  { %14 = vsyncpa [#allocation12], 0  ;;  %s3673_s15 = smov 0   ;;  %s3675_s16 = smov 0  }
   0x5   :  { %s3677_s17 = smov 0   ;;  %s3679_s18 = smov 0  }
   0x6 LB: > { %s3692_s19 = sadd.s32 4294967295, %s3633_s18   ;;  %p40_p0 = scmp.ne.s32.totalorder %s3625_s16, %s3621_s15  ;;  %s3633_s18 = sphi %s3679_s18, %s4779_s18   ;;  %s3629_s17 = sphi %s3677_s17, %s4778_s17   ;;  %s3625_s16 = sphi %s3675_s16, %s4777_s16   ;;  %s3621_s15 = sphi %s3673_s15, %s4776_s15  }
   0x7   : > { %p4713_p1 = scmp.eq.s32.totalorder %s3692_s19, 0  ;;  %p2794_p2 = scmp.ge.s32.totalorder %s3633_s18, 1 }
   0x8   : > { %p135_p3 = scmp.lt.s32.totalorder %s3633_s18, 4  ;;  %s3635_s22 = smov [#allocation13]  }
   0x9   : > { %p3701_p5 = por %p4713_p1, %p40_p0  ;;  %s147_s23 = sshll.u32 %s3635_s22, 4  ;;  %s3709_s23 = int_to_ptr.vmem [resolvable:$true] %s147_s23 }
   0xa   : > { %p3705_p6 = pnand %p2794_p2, %p135_p3  ;;  %s3636_s25 = smov [#allocation15]  }
   0xb   : > { %s4732_s20 = scalar_select %p3701_p5, 1, 0 }
   0xc   : > { %s4733_s21 = scalar_select %p3705_p6, 1, 0 }
   0xd   : > { %p3120_p7 = pneg %p3705_p6  ;;  %s160_s26 = sshll.u32 %s3636_s25, 4  ;;  %s3719_s26 = int_to_ptr.vmem [resolvable:$true] %s160_s26 }
   0xe   : > { %s3637_s27 = smov [#allocation16]   ;;  %s3447_s5 = scalar_lea.hbm %s4709_s1, 2048 }
   0xf   : > { %p3715_p8 = pnand %p3120_p7, %p4713_p1  ;;  %s3721_s28 = sshll.u32 %s3637_s27, 4  ;;  %s174_s28 = int_to_ptr.vmem [resolvable:$true] %s3721_s28 }
  0x10   : > { %p3448_p9 = scmp.ne.s32.totalorder %s4709_s1, %s3447_s5  ;;  %p3454_p13 = scmp.lt.u32.totalorder %s3447_s5, %s4709_s1 }
  0x11   : > { %p3731_p10 = pneg %p3715_p8 }
  0x13   : > { %p3450_p11 = pnand %p3731_p10, %p3448_p9 }
  0x15   : > { %p3451_p12 = pneg %p3450_p11 }
  0x17   : > { %p3456_p0 = pnand %p3454_p13, %p3451_p12 }
  0x19   : > { %3459 = shalt.err (!%p3456_p0)
}
  0x1a   : > { %s3460_s11 = scalar_lea.vmem %s3709_s23, 2048  ;;  %p3468_p4 = scmp.lt.s32.totalorder %s3709_s23, %s3709_s23 }
  0x1b   : > { %p3461_p2 = scmp.ne.s32.totalorder %s3709_s23, %s3460_s11  ;;  %p3469_p1 = scmp.lt.s32.totalorder %s3460_s11, %s3460_s11 }
  0x1d   : > { %p3463_p3 = pnand %p3461_p2, %p3731_p10  ;;  %p3470_p9 = por %p3469_p1, %p3468_p4 }
  0x1f   : > { %p3464_p7 = pneg %p3463_p3 }
  0x21   : > { %p3471_p11 = pnand %p3470_p9, %p3464_p7 }
  0x23   : > { %3474 = shalt.err (!%p3471_p11)
}
  0x24   : > { %s3638_s12 = smov 128   ;;  %s3639_s13 = smov 8  }
  0x25   : > { %3123 = dma.hbm_to_vmem [thread:$0]  (!%p3715_p8), %s4709_s1, 2048, %s3709_s23, [#allocation14], %s3638_s12, %s3638_s12, %s3639_s13  }
  0x26   : > { %s3475_s27 = scalar_lea.hbm %s4710_s2, 2048 }
  0x27   : > { %p3476_p1 = scmp.ne.s32.totalorder %s4710_s2, %s3475_s27  ;;  %p3482_p13 = scmp.lt.u32.totalorder %s3475_s27, %s4710_s2 }
  0x29   : > { %p3478_p4 = pnand %p3476_p1, %p3731_p10 }
  0x2b   : > { %p3479_p12 = pneg %p3478_p4 }
  0x2d   : > { %p3484_p0 = pnand %p3482_p13, %p3479_p12 }
  0x2f   : > { %3487 = shalt.err (!%p3484_p0)
}
  0x30   : > { %s3488_s23 = scalar_lea.vmem %s3719_s26, 2048  ;;  %p3496_p9 = scmp.lt.s32.totalorder %s3719_s26, %s3719_s26 }
  0x31   : > { %p3489_p2 = scmp.ne.s32.totalorder %s3719_s26, %s3488_s23  ;;  %p3497_p11 = scmp.lt.s32.totalorder %s3488_s23, %s3488_s23 }
  0x33   : > { %p3491_p3 = pnand %p3489_p2, %p3731_p10  ;;  %p3498_p1 = por %p3497_p11, %p3496_p9 }
  0x35   : > { %p3492_p7 = pneg %p3491_p3 }
  0x37   : > { %p3499_p4 = pnand %p3498_p1, %p3492_p7 }
  0x39   : > { %3502 = shalt.err (!%p3499_p4)
}
  0x3a   : > { %3126 = dma.hbm_to_vmem [thread:$0]  (!%p3715_p8), %s4710_s2, 2048, %s3719_s26, [#allocation14], %s3638_s12, %s3638_s12, %s3639_s13  }
  0x3b   : > { %s3503_s14 = scalar_lea.hbm %s4711_s3, 2048 }
  0x3c   : > { %p3504_p12 = scmp.ne.s32.totalorder %s4711_s3, %s3503_s14  ;;  %p3510_p2 = scmp.lt.u32.totalorder %s3503_s14, %s4711_s3 }
  0x3e   : > { %p3506_p13 = pnand %p3504_p12, %p3731_p10 }
  0x40   : > { %p3507_p0 = pneg %p3506_p13 }
  0x42   : > { %p3512_p3 = pnand %p3510_p2, %p3507_p0 }
  0x44   : > { %3515 = shalt.err (!%p3512_p3)
}
  0x45   : > { %s3516_s29 = scalar_lea.vmem %s174_s28, 2048  ;;  %p3524_p1 = scmp.lt.s32.totalorder %s174_s28, %s174_s28 }
  0x46   : > { %p3517_p7 = scmp.ne.s32.totalorder %s174_s28, %s3516_s29  ;;  %p3525_p4 = scmp.lt.s32.totalorder %s3516_s29, %s3516_s29 }
  0x48   : > { %p3519_p9 = pnand %p3517_p7, %p3731_p10  ;;  %p3526_p5 = por %p3525_p4, %p3524_p1 }
  0x4a   : > { %p3520_p11 = pneg %p3519_p9 }
  0x4c   : > { %p3527_p6 = pnand %p3526_p5, %p3520_p11 }
  0x4e   : > { %3530 = shalt.err (!%p3527_p6)
}
  0x4f   : > { %3129 = dma.hbm_to_vmem [thread:$0]  (!%p3715_p8), %s4711_s3, 2048, %s174_s28, [#allocation17], %s3638_s12, %s3638_s12, %s3639_s13  }
  0x50   : > { %s3804_s8 = sadd.s32 1, %s3633_s18   ;;  %s27_s5 = sadd.s32 1, %s3629_s17 }
  0x51   : > { %s24_s24 = ssub.s32 %s3633_s18, %s3804_s8  ;;  %p34_p6 = scmp.ne.s32.totalorder %s3629_s17, %s3625_s16 }
  0x52   : > { %p25_p5 = scmp.eq.s32.totalorder %s24_s24, 0  ;;  %p35_p10 = scmp.eq.s32.totalorder %s3633_s18, 0 }
  0x53   : > { %p3137_p12 = scmp.lt.s32.totalorder %s3633_s18, 3  ;;  %s187_s23 = sand.u32 1, %s3629_s17  }
  0x54   : > { %s3814_s6 = scalar_select %p25_p5, %s3629_s17, %s27_s5  }
  0x55   : > { %p36_p13 = por %p35_p10, %p34_p6  ;;  %s2799_s7 = sshll.u32 %s187_s23, 5 }
  0x56   : > { %s2813_s9 = sshll.u32 %s3633_s18, 9  ;;  %s191_s28 = scalar_lea.vmem [#allocation10], %s2799_s7 }
  0x57   : > { %s3821_s14 = scalar_lea.hbm %s4708_s0, %s2813_s9  ;;  %s198_s15 = sshll.u32 %s191_s28, 4  ;;  %s3823_s15 = int_to_ptr.vmem [resolvable:$true] %s198_s15 }
  0x58   : > { %p3825_p8 = pnand %p3137_p12, %p36_p13  ;;  %s3829_s18 = scalar_lea.sflag [#allocation11], %s187_s23 }
  0x59   : > { %s3531_s25 = scalar_lea.hbm %s3821_s14, 512  ;;  %s3536_s26 = scalar_lea.hbm %s4708_s0, 1536 }
  0x5a   : > { %p3532_p0 = scmp.ne.s32.totalorder %s3821_s14, %s3531_s25  ;;  %p3533_p2 = pneg %p3825_p8 }
  0x5b   : > { %p3537_p9 = scmp.lt.u32.totalorder %s3821_s14, %s4708_s0  ;;  %p3538_p11 = scmp.lt.u32.totalorder %s3536_s26, %s3531_s25 }
  0x5c   : > { %p3534_p3 = pnand %p3533_p2, %p3532_p0  ;;  %p3540_p4 = scmp.lt.u32.totalorder %s3531_s25, %s3821_s14 }
  0x5d   : > { %p3539_p1 = por %p3538_p11, %p3537_p9 }
  0x5e   : > { %p3535_p7 = pneg %p3534_p3 }
  0x5f   : > { %p3541_p5 = por %p3540_p4, %p3539_p1 }
  0x61   : > { %p3542_p6 = pnand %p3541_p5, %p3535_p7 }
  0x63   : > { %3545 = shalt.err (!%p3542_p6)
}
  0x64   : > { %s3546_s5 = scalar_lea.vmem %s3823_s15, 512  ;;  %s3640_s23 = smov [#allocation10]  }
  0x65   : > { %p3547_p10 = scmp.ne.s32.totalorder %s3823_s15, %s3546_s5  ;;  %s3551_s7 = sshll.u32 %s3640_s23, 4  ;;  %s3552_s7 = int_to_ptr.vmem [resolvable:$false] %s3551_s7 }
  0x66   : > { %s3553_s9 = scalar_lea.vmem %s3552_s7, 1024  ;;  %p3554_p0 = scmp.lt.s32.totalorder %s3823_s15, %s3552_s7 }
  0x67   : > { %p3549_p12 = pnand %p3547_p10, %p3533_p2  ;;  %p3555_p3 = scmp.lt.s32.totalorder %s3553_s9, %s3546_s5 }
  0x69   : > { %p3550_p13 = pneg %p3549_p12  ;;  %p3556_p9 = por %p3555_p3, %p3554_p0 }
  0x6b   : > { %p3557_p11 = pnand %p3556_p9, %p3550_p13 }
  0x6d   : > { %3560 = shalt.err (!%p3557_p11)
}
  0x6e   : > { %3133 = dma.hbm_to_vmem [thread:$0]  (!%p3825_p8), %s3821_s14, 512, %s3823_s15, %s3829_s18, %s3638_s12, %s3638_s12, %s3639_s13  }
  0x6f   : > { %p4737_p2 = scmp.ne.s32.totalorder %s4733_s21, 0 }
  0x71   : > { %210 = sbr.rel (%p4737_p2) target bundleno = 1962 (0x7aa), region = 36 }
  0x78   : > { %s212_s10 = sand.u32 1, %s3625_s16   ;;  %p4738_p7 = scmp.ne.s32.totalorder %s4732_s20, 0 }
  0x79   : > { %s2803_s11 = sshll.u32 %s212_s10, 5  ;;  %s213_s28 = scalar_lea.sflag [#allocation11], %s212_s10 }
  0x7a   : > { %s3863_s25 = scalar_lea.vmem [#allocation10], %s2803_s11 }
  0x7b   : > { %3604 = dma.done.wait (%p4738_p7), %s213_s28, 512  }
  0x7c   : > { %3606 = vsyncadd (%p4738_p7), %s213_s28, 4294966784  ;;  %p4739_p1 = scmp.eq.s32.totalorder %s3692_s19, 0 }
  0x7e   : > { %3608 = dma.done.wait (%p4739_p1), [#allocation14], 4096   ;;  %p4740_p8 = pmov %p4739_p1 }
  0x7f   : > { %p4741_p4 = pmov %p4739_p1 }
  0x80   : > { %3610 = vsyncadd (%p4740_p8), [#allocation14], 4294963200 }
  0x81   : > { %3612 = dma.done.wait (%p4741_p4), [#allocation17], 2048   ;;  %p4742_p5 = pmov %p4739_p1 }
  0x82   : > { %p4743_p6 = scmp.ne.s32.totalorder %s3692_s19, 0 }
  0x83   : > { %3614 = vsyncadd (%p4742_p5), [#allocation17], 4294965248  ;;  %vm253_vm0 = vcmask (!%p4743_p6), 7168   ;;  %v3641_v0 = vmov (!%p4743_p6), -inf   ;;  %v3642_v1 = vmov (!%p4743_p6), 0.0  }
  0x84   : > { %252 = sbr.rel (%p4743_p6) target bundleno = 156 (0x9c), region = 56  ;;  %254 = vst.msk [vmem:[#allocation7] sm:$0xff] (!%p4743_p6), %vm253_vm0, %v3641_v0  ;;  %255 = vst.msk [vmem:[#allocation7 + $0x8] sm:$0xff] (!%p4743_p6), %vm253_vm0, %v3641_v0 }
  0x85   : > { %256 = vst.msk [vmem:[#allocation7 + $0x10] sm:$0xff] (!%p4743_p6), %vm253_vm0, %v3641_v0  ;;  %257 = vst.msk [vmem:[#allocation7 + $0x18] sm:$0xff] (!%p4743_p6), %vm253_vm0, %v3641_v0 }
  0x86   : > { %258 = vst.msk [vmem:[#allocation7 + $0x20] sm:$0xff] (!%p4743_p6), %vm253_vm0, %v3641_v0  ;;  %259 = vst.msk [vmem:[#allocation7 + $0x28] sm:$0xff] (!%p4743_p6), %vm253_vm0, %v3641_v0 }
  0x87   : > { %260 = vst.msk [vmem:[#allocation7 + $0x30] sm:$0xff] (!%p4743_p6), %vm253_vm0, %v3641_v0  ;;  %261 = vst.msk [vmem:[#allocation7 + $0x38] sm:$0xff] (!%p4743_p6), %vm253_vm0, %v3641_v0 }
  0x88   : > { %262 = vst.msk [vmem:[#allocation7 + $0x40] sm:$0xff] (!%p4743_p6), %vm253_vm0, %v3641_v0  ;;  %263 = vst.msk [vmem:[#allocation7 + $0x48] sm:$0xff] (!%p4743_p6), %vm253_vm0, %v3641_v0 }
  0x89   : > { %264 = vst.msk [vmem:[#allocation7 + $0x50] sm:$0xff] (!%p4743_p6), %vm253_vm0, %v3641_v0  ;;  %265 = vst.msk [vmem:[#allocation7 + $0x58] sm:$0xff] (!%p4743_p6), %vm253_vm0, %v3641_v0 }
  0x8a   : > { %266 = vst.msk [vmem:[#allocation7 + $0x60] sm:$0xff] (!%p4743_p6), %vm253_vm0, %v3641_v0  ;;  %267 = vst.msk [vmem:[#allocation7 + $0x68] sm:$0xff] (!%p4743_p6), %vm253_vm0, %v3641_v0 }
  0x8b   : > { %268 = vst.msk [vmem:[#allocation7 + $0x70] sm:$0xff] %vm253_vm0, %v3641_v0  ;;  %269 = vst.msk [vmem:[#allocation7 + $0x78] sm:$0xff] %vm253_vm0, %v3641_v0 }
  0x8c   : > { %270 = vst.msk [vmem:[#allocation8] sm:$0xff] %vm253_vm0, %v3642_v1  ;;  %271 = vst.msk [vmem:[#allocation8 + $0x8] sm:$0xff] %vm253_vm0, %v3642_v1 }
  0x8d   : > { %272 = vst.msk [vmem:[#allocation8 + $0x10] sm:$0xff] %vm253_vm0, %v3642_v1  ;;  %273 = vst.msk [vmem:[#allocation8 + $0x18] sm:$0xff] %vm253_vm0, %v3642_v1 }
  0x8e   : > { %274 = vst.msk [vmem:[#allocation8 + $0x20] sm:$0xff] %vm253_vm0, %v3642_v1  ;;  %275 = vst.msk [vmem:[#allocation8 + $0x28] sm:$0xff] %vm253_vm0, %v3642_v1 }
  0x8f   : > { %276 = vst.msk [vmem:[#allocation8 + $0x30] sm:$0xff] %vm253_vm0, %v3642_v1  ;;  %277 = vst.msk [vmem:[#allocation8 + $0x38] sm:$0xff] %vm253_vm0, %v3642_v1 }
  0x90   : > { %278 = vst.msk [vmem:[#allocation8 + $0x40] sm:$0xff] %vm253_vm0, %v3642_v1  ;;  %279 = vst.msk [vmem:[#allocation8 + $0x48] sm:$0xff] %vm253_vm0, %v3642_v1 }
  0x91   : > { %280 = vst.msk [vmem:[#allocation8 + $0x50] sm:$0xff] %vm253_vm0, %v3642_v1  ;;  %281 = vst.msk [vmem:[#allocation8 + $0x58] sm:$0xff] %vm253_vm0, %v3642_v1 }
  0x92   : > { %282 = vst.msk [vmem:[#allocation8 + $0x60] sm:$0xff] %vm253_vm0, %v3642_v1  ;;  %283 = vst.msk [vmem:[#allocation8 + $0x68] sm:$0xff] %vm253_vm0, %v3642_v1 }
  0x93   : > { %284 = vst.msk [vmem:[#allocation8 + $0x70] sm:$0xff] %vm253_vm0, %v3642_v1  ;;  %285 = vst.msk [vmem:[#allocation8 + $0x78] sm:$0xff] %vm253_vm0, %v3642_v1 }
  0x94   : > { %286 = vst [vmem:[#allocation9] sm:$0xff] %v3642_v1  ;;  %287 = vst [vmem:[#allocation9 + $0x8] sm:$0xff] %v3642_v1 }
  0x95   : > { %288 = vst [vmem:[#allocation9 + $0x10] sm:$0xff] %v3642_v1  ;;  %289 = vst [vmem:[#allocation9 + $0x18] sm:$0xff] %v3642_v1 }
  0x96   : > { %290 = vst [vmem:[#allocation9 + $0x20] sm:$0xff] %v3642_v1  ;;  %291 = vst [vmem:[#allocation9 + $0x28] sm:$0xff] %v3642_v1 }
  0x97   : > { %292 = vst [vmem:[#allocation9 + $0x30] sm:$0xff] %v3642_v1  ;;  %293 = vst [vmem:[#allocation9 + $0x38] sm:$0xff] %v3642_v1 }
  0x98   : > { %294 = vst [vmem:[#allocation9 + $0x40] sm:$0xff] %v3642_v1  ;;  %295 = vst [vmem:[#allocation9 + $0x48] sm:$0xff] %v3642_v1 }
  0x99   : > { %296 = vst [vmem:[#allocation9 + $0x50] sm:$0xff] %v3642_v1  ;;  %297 = vst [vmem:[#allocation9 + $0x58] sm:$0xff] %v3642_v1 }
  0x9a   : > { %298 = vst [vmem:[#allocation9 + $0x60] sm:$0xff] %v3642_v1  ;;  %299 = vst [vmem:[#allocation9 + $0x68] sm:$0xff] %v3642_v1 }
  0x9b   : > { %300 = vst [vmem:[#allocation9 + $0x70] sm:$0xff] %v3642_v1  ;;  %301 = vst [vmem:[#allocation9 + $0x78] sm:$0xff] %v3642_v1 }
  0x9c PF: > { %v438_v2 = vld [vmem:[#allocation16] sm:$0xff]  ;;  %v439_v3 = vld [vmem:[#allocation16 + $0x8] sm:$0xff]  ;;  %v440_v7 = vld [vmem:[#allocation16 + $0x10] sm:$0xff]  ;;  %vm2236_vm1 = vcmask 7168   ;;  %p2808_p10 = scmp.ne.s32.totalorder %s3692_s19, 2 }
  0x9d   : > { %v3912_v4 = vld [vmem:[%s3863_s25] sm:$0xff]  ;;  %v454_v5 = vpack.c.bf16 %v439_v3, %v438_v2  ;;  %v441_v8 = vld [vmem:[#allocation16 + $0x18] sm:$0xff]  ;;  %v443_v12 = vld [vmem:[#allocation16 + $0x28] sm:$0xff] }
  0x9e   : > { %v326_v6 = vunpack.c.0.s8 %v3912_v4  ;;  %v327_v9 = vunpack.c.1.s8 %v3912_v4  ;;  %v455_v10 = vpack.c.bf16 %v441_v8, %v440_v7  ;;  %v442_v11 = vld [vmem:[#allocation16 + $0x20] sm:$0xff]  ;;  %v3917_v13 = vunpack.c.l.s8.bf16 %v3912_v4  ;;  %v444_v18 = vld [vmem:[#allocation16 + $0x30] sm:$0xff]  ;;  %v445_v19 = vld [vmem:[#allocation16 + $0x38] sm:$0xff] }
  0x9f   : > { %2910 = vmatprep.subr.bf16.mxu0 %v454_v5  ;;  %v456_v16 = vpack.c.bf16 %v443_v12, %v442_v11  ;;  %v328_v17 = vunpack.c.2.s8 %v3912_v4  ;;  %v446_v20 = vld [vmem:[#allocation16 + $0x40] sm:$0xff]  ;;  %v457_v22 = vpack.c.bf16 %v445_v19, %v444_v18  ;;  %v329_v23 = vunpack.c.3.s8 %v3912_v4  ;;  %v447_v24 = vld [vmem:[#allocation16 + $0x48] sm:$0xff]  ;;  %v408_v28 = vld [vmem:[#allocation13 + $0x10] sm:$0xff] }
  0xa0   : > { %4744 = vst [vmem:[#allocation23_spill] sm:$0xff] %v3917_v13  ;;  %v342_v14 = vcvt.s32.f32 %v326_v6  ;;  %2911 = vmatpush3.bf16.msra.mxu0 %v454_v5  ;;  %2926 = vmatprep.mubr.bf16.mxu0 %v3917_v13  ;;  %v343_v15 = vcvt.s32.f32 %v327_v9  ;;  %v406_v25 = vld [vmem:[#allocation13] sm:$0xff]  ;;  %v407_v26 = vld [vmem:[#allocation13 + $0x8] sm:$0xff]  ;;  %v409_v29 = vld [vmem:[#allocation13 + $0x18] sm:$0xff]  ;;  %v458_v32 = vpack.c.bf16 %v447_v24, %v446_v20  ;;  %v3931_v3 = vunpack.c.h.s8.bf16 %v3912_v4 }
  0xa1   : > { %2912 = vmatprep.subr.bf16.mxu0 %v455_v10  ;;  %v344_v21 = vcvt.s32.f32 %v328_v17  ;;  %v3923_v27 = vld [vmem:[%s3863_s25 + $0x8] sm:$0xff]  ;;  %v422_v30 = vpack.c.bf16 %v407_v26, %v406_v25  ;;  %v345_v31 = vcvt.s32.f32 %v329_v23  ;;  %v423_v34 = vpack.c.bf16 %v409_v29, %v408_v28  ;;  %v410_v35 = vld [vmem:[#allocation13 + $0x20] sm:$0xff]  ;;  %v448_v37 = vld [vmem:[#allocation16 + $0x50] sm:$0xff] }
  0xa2   : > { %358 = vxpose.xlu0.b32.start [1/16] %v342_v14, 128  ;;  %v330_v33 = vunpack.c.0.s8 %v3923_v27  ;;  %v411_v36 = vld [vmem:[#allocation13 + $0x28] sm:$0xff]  ;;  %v449_v38 = vld [vmem:[#allocation16 + $0x58] sm:$0xff]  ;;  %v331_v42 = vunpack.c.1.s8 %v3923_v27  ;;  %v412_v43 = vld [vmem:[#allocation13 + $0x30] sm:$0xff]  ;;  %v332_v50 = vunpack.c.2.s8 %v3923_v27  ;;  %v333_v58 = vunpack.c.3.s8 %v3923_v27 }
  0xa3   : > { %2942 = vmatprep.subr.bf16.mxu1 %v422_v30  ;;  %v424_v39 = vpack.c.bf16 %v411_v36, %v410_v35  ;;  %v459_v41 = vpack.c.bf16 %v449_v38, %v448_v37  ;;  %v413_v44 = vld [vmem:[#allocation13 + $0x38] sm:$0xff]  ;;  %v450_v45 = vld [vmem:[#allocation16 + $0x60] sm:$0xff]  ;;  %v451_v46 = vld [vmem:[#allocation16 + $0x68] sm:$0xff]  ;;  %v3934_v5 = vunpack.c.l.s8.bf16 %v3923_v27  ;;  %v3939_v14 = vunpack.c.h.s8.bf16 %v3923_v27 }
  0xa4   : > { %2913 = vmatpush3.bf16.msra.mxu0 %v455_v10  ;;  %2943 = vmatpush3.bf16.msra.mxu1 %v422_v30  ;;  %v346_v40 = vcvt.s32.f32 %v330_v33  ;;  %v425_v47 = vpack.c.bf16 %v413_v44, %v412_v43  ;;  %v347_v48 = vcvt.s32.f32 %v331_v42  ;;  %v460_v49 = vpack.c.bf16 %v451_v46, %v450_v45  ;;  %v414_v51 = vld [vmem:[#allocation13 + $0x40] sm:$0xff]  ;;  %v415_v52 = vld [vmem:[#allocation13 + $0x48] sm:$0xff]  ;;  %v452_v53 = vld [vmem:[#allocation16 + $0x70] sm:$0xff] }
  0xa5   : > { %2914 = vmatprep.subr.bf16.mxu0 %v456_v16  ;;  %2944 = vmatprep.subr.bf16.mxu1 %v423_v34  ;;  %v453_v54 = vld [vmem:[#allocation16 + $0x78] sm:$0xff]  ;;  %v426_v55 = vpack.c.bf16 %v415_v52, %v414_v51  ;;  %v348_v56 = vcvt.s32.f32 %v332_v50  ;;  %v416_v59 = vld [vmem:[#allocation13 + $0x50] sm:$0xff]  ;;  %v349_v63 = vcvt.s32.f32 %v333_v58  ;;  %v418_v1 = vld [vmem:[#allocation13 + $0x60] sm:$0xff] }
  0xa6   : > { %359 = vxpose.xlu0.b32.cont [2/16] %v343_v15, 128  ;;  %v461_v57 = vpack.c.bf16 %v453_v54, %v452_v53  ;;  %v417_v60 = vld [vmem:[#allocation13 + $0x58] sm:$0xff]  ;;  %v324_v61 = vld [vmem:[%s3863_s25 + $0x10] sm:$0xff]  ;;  %v419_v2 = vld [vmem:[#allocation13 + $0x68] sm:$0xff] }
  0xa7   : > { %v427_v62 = vpack.c.bf16 %v417_v60, %v416_v59  ;;  %v334_v0 = vunpack.c.0.s8 %v324_v61  ;;  %v428_v6 = vpack.c.bf16 %v419_v2, %v418_v1  ;;  %v335_v8 = vunpack.c.1.s8 %v324_v61  ;;  %v420_v9 = vld [vmem:[#allocation13 + $0x70] sm:$0xff]  ;;  %v421_v10 = vld [vmem:[#allocation13 + $0x78] sm:$0xff] }
  0xa8   : > { %2915 = vmatpush3.bf16.msra.mxu0 %v456_v16  ;;  %2945 = vmatpush3.bf16.msra.mxu1 %v423_v34  ;;  %v429_v4 = vpack.c.bf16 %v421_v10, %v420_v9  ;;  %v336_v12 = vunpack.c.2.s8 %v324_v61  ;;  %v3941_v15 = vunpack.c.l.s8.bf16 %v324_v61  ;;  %v337_v17 = vunpack.c.3.s8 %v324_v61  ;;  %v325_v18 = vld [vmem:[%s3863_s25 + $0x18] sm:$0xff] }
  0xa9   : > { %2916 = vmatprep.subr.bf16.mxu0 %v457_v22  ;;  %2946 = vmatprep.subr.bf16.mxu1 %v424_v39  ;;  %v350_v7 = vcvt.s32.f32 %v334_v0  ;;  %v351_v11 = vcvt.s32.f32 %v335_v8  ;;  %v338_v20 = vunpack.c.0.s8 %v325_v18  ;;  %v339_v24 = vunpack.c.1.s8 %v325_v18 }
  0xaa   : > { %360 = vxpose.xlu0.b32.cont [3/16] %v344_v21, 128  ;;  %v352_v16 = vcvt.s32.f32 %v336_v12  ;;  %v353_v19 = vcvt.s32.f32 %v337_v17  ;;  %v3946_v21 = vunpack.c.h.s8.bf16 %v324_v61  ;;  %v340_v26 = vunpack.c.2.s8 %v325_v18 }
  0xab   : > { %v354_v23 = vcvt.s32.f32 %v338_v20  ;;  %v355_v25 = vcvt.s32.f32 %v339_v24  ;;  %v3952_v27 = vunpack.c.h.s8.bf16 %v325_v18  ;;  %v341_v29 = vunpack.c.3.s8 %v325_v18 }
  0xac   : > { %2917 = vmatpush3.bf16.msra.mxu0 %v457_v22  ;;  %2947 = vmatpush3.bf16.msra.mxu1 %v424_v39  ;;  %v3948_v22 = vunpack.c.l.s8.bf16 %v325_v18  ;;  %v356_v28 = vcvt.s32.f32 %v340_v26 }
  0xad   : > { %2918 = vmatprep.subr.bf16.mxu0 %v458_v32  ;;  %2948 = vmatprep.subr.bf16.mxu1 %v425_v47  ;;  %v357_v30 = vcvt.s32.f32 %v341_v29 }
  0xae   : > { %361 = vxpose.xlu0.b32.cont [4/16] %v345_v31, 128 }
  0xb0   : > { %2919 = vmatpush3.bf16.msra.mxu0 %v458_v32  ;;  %2949 = vmatpush3.bf16.msra.mxu1 %v425_v47 }
  0xb1   : > { %2920 = vmatprep.subr.bf16.mxu0 %v459_v41  ;;  %2950 = vmatprep.subr.bf16.mxu1 %v426_v55 }
  0xb2   : > { %362 = vxpose.xlu0.b32.cont [5/16] %v346_v40, 128 }
  0xb4   : > { %2921 = vmatpush3.bf16.msra.mxu0 %v459_v41  ;;  %2951 = vmatpush3.bf16.msra.mxu1 %v426_v55 }
  0xb5   : > { %2922 = vmatprep.subr.bf16.mxu0 %v460_v49  ;;  %2952 = vmatprep.subr.bf16.mxu1 %v427_v62 }
  0xb6   : > { %363 = vxpose.xlu0.b32.cont [6/16] %v347_v48, 128 }
  0xb8   : > { %2923 = vmatpush3.bf16.msra.mxu0 %v460_v49  ;;  %2953 = vmatpush3.bf16.msra.mxu1 %v427_v62 }
  0xb9   : > { %2924 = vmatprep.subr.bf16.mxu0 %v461_v57  ;;  %2954 = vmatprep.subr.bf16.mxu1 %v428_v6 }
  0xba   : > { %364 = vxpose.xlu0.b32.cont [7/16] %v348_v56, 128 }
  0xbc   : > { %2925 = vmatpush3.bf16.msra.mxu0 %v461_v57  ;;  %2955 = vmatpush3.bf16.msra.mxu1 %v428_v6 }
  0xbd   : > { %2956 = vmatprep.subr.bf16.mxu1 %v429_v4 }
  0xbe   : > { %365 = vxpose.xlu0.b32.cont [8/16] %v349_v63, 128 }
  0xbf   : > { %2927 = vmatmul.mubr.bf16.vlgmr.msra.gmra.mrb[0].mxu0 %v3931_v3 }
  0xc0   : > { %2930 = vmatprep.mubr.bf16.mxu0 %v3934_v5  ;;  %2957 = vmatpush3.bf16.msra.mxu1 %v429_v4 }
  0xc2   : > { %366 = vxpose.xlu0.b32.cont [9/16] %v350_v7, 128 }
  0xc6   : > { %367 = vxpose.xlu0.b32.cont [10/16] %v351_v11, 128 }
  0xc7   : > { %2931 = vmatmul.mubr.bf16.gmra.mrb[4].mxu0 %v3939_v14 }
  0xc8   : > { %2934 = vmatprep.mubr.bf16.mxu0 %v3941_v15 }
  0xca   : > { %368 = vxpose.xlu0.b32.cont [11/16] %v352_v16, 128 }
  0xce   : > { %369 = vxpose.xlu0.b32.cont [12/16] %v353_v19, 128 }
  0xcf   : > { %2935 = vmatmul.mubr.bf16.gmra.mrb[8].mxu0 %v3946_v21 }
  0xd0   : > { %2938 = vmatprep.mubr.bf16.mxu0 %v3948_v22 }
  0xd2   : > { %370 = vxpose.xlu0.b32.cont [13/16] %v354_v23, 128 }
  0xd6   : > { %371 = vxpose.xlu0.b32.cont [14/16] %v355_v25, 128 }
  0xd7   : > { %2939 = vmatmul.mubr.bf16.gmra.mrb[12].mxu0 %v3952_v27 }
  0xd8   : > { %2990 = vmatprep.mubr.bf16.mxu0 %v3917_v13 }
  0xda   : > { %372 = vxpose.xlu0.b32.cont [15/16] %v356_v28, 128 }
  0xde   : > { %373 = vxpose.xlu0.b32.end [16/16] %v357_v30, 128 }
 0x122   : > { %v374_v31 = vpop.trf.xlu0 }
 0x126   : > { %v375_v32 = vpop.trf.xlu0 }
 0x127   : > { %v3956_v33 = vpack.c.bf16 %v375_v32, %v374_v31 }
 0x129   : > { %2958 = vmatprep.mubr.bf16.mxu1 %v3956_v33 }
 0x12a   : > { %v376_v34 = vpop.trf.xlu0 }
 0x12e   : > { %v377_v35 = vpop.trf.xlu0 }
 0x12f   : > { %v3959_v36 = vpack.c.bf16 %v377_v35, %v376_v34 }
 0x131   : > { %2959 = vmatmul.mubr.bf16.vlgmr.msra.gmra.mrb[0].mxu1 %v3959_v36 }
 0x132   : > { %v378_v37 = vpop.trf.xlu0 }
 0x136   : > { %v379_v38 = vpop.trf.xlu0 }
 0x137   : > { %v3962_v39 = vpack.c.bf16 %v379_v38, %v378_v37 }
 0x139   : > { %2962 = vmatprep.mubr.bf16.mxu1 %v3962_v39 }
 0x13a   : > { %v380_v40 = vpop.trf.xlu0 }
 0x13e   : > { %v381_v41 = vpop.trf.xlu0 }
 0x13f   : > { %v3965_v42 = vpack.c.bf16 %v381_v41, %v380_v40 }
 0x141   : > { %2963 = vmatmul.mubr.bf16.gmra.mrb[4].mxu1 %v3965_v42 }
 0x142   : > { %v382_v43 = vpop.trf.xlu0 }
 0x146   : > { %v383_v44 = vpop.trf.xlu0 }
 0x147   : > { %v3968_v45 = vpack.c.bf16 %v383_v44, %v382_v43 }
 0x149   : > { %2966 = vmatprep.mubr.bf16.mxu1 %v3968_v45 }
 0x14a   : > { %v384_v46 = vpop.trf.xlu0 }
 0x14e   : > { %v385_v47 = vpop.trf.xlu0 }
 0x14f   : > { %v3971_v48 = vpack.c.bf16 %v385_v47, %v384_v46 }
 0x151   : > { %2967 = vmatmul.mubr.bf16.gmra.mrb[8].mxu1 %v3971_v48 }
 0x152   : > { %v386_v49 = vpop.trf.xlu0 }
 0x156   : > { %v387_v50 = vpop.trf.xlu0 }
 0x157   : > { %v3974_v51 = vpack.c.bf16 %v387_v50, %v386_v49 }
 0x159   : > { %2970 = vmatprep.mubr.bf16.mxu1 %v3974_v51 }
 0x15a   : > { %v388_v52 = vpop.trf.xlu0 }
 0x15e   : > { %v389_v53 = vpop.trf.xlu0 }
 0x15f   : > { %v3977_v54 = vpack.c.bf16 %v389_v53, %v388_v52 }
 0x161   : > { %2971 = vmatmul.mubr.bf16.gmra.mrb[12].mxu1 %v3977_v54 }
 0x162   : > { %3022 = vmatprep.mubr.bf16.mxu1 %v3956_v33 }
 0x192   : > { %v3981_v55 = vpop.f32.mrb[0].mxu0 }
 0x193   : > { %v3983_v56 = vpop.f32.mrb[1].mxu0  ;;  %v714_v57 = vmul.f32 %v3981_v55, %v3981_v55 }
 0x194   : > { %v3987_v58 = vpop.f32.mrb[2].mxu0  ;;  %v712_v60 = vmul.f32 %v3983_v56, %v3983_v56 }
 0x195   : > { %732 = vadd.xlane.f32.xlu1 %v714_v57  ;;  %v3989_v59 = vpop.f32.mrb[3].mxu0  ;;  %v715_v62 = vmul.f32 %v3987_v58, %v3987_v58 }
 0x196   : > { %v713_v2 = vmul.f32 %v3989_v59, %v3989_v59 }
 0x199   : > { %728 = vadd.xlane.f32.xlu1 %v712_v60 }
 0x19a   : > { %v3993_v61 = vpop.f32.mrb[4].mxu0 }
 0x19b   : > { %v3997_v63 = vpop.f32.mrb[5].mxu0  ;;  %v718_v6 = vmul.f32 %v3993_v61, %v3993_v61 }
 0x19c   : > { %v3999_v0 = vpop.f32.mrb[6].mxu0  ;;  %v716_v4 = vmul.f32 %v3997_v63, %v3997_v63 }
 0x19d   : > { %734 = vadd.xlane.f32.xlu1 %v715_v62  ;;  %v4001_v1 = vpop.f32.mrb[7].mxu0  ;;  %v719_v12 = vmul.f32 %v3999_v0, %v3999_v0 }
 0x19e   : > { %v717_v19 = vmul.f32 %v4001_v1, %v4001_v1 }
 0x1a1   : > { %730 = vadd.xlane.f32.xlu1 %v713_v2 }
 0x1a2   : > { %v4007_v7 = vpop.f32.mrb[8].mxu0 }
 0x1a3   : > { %v4009_v8 = vpop.f32.mrb[9].mxu0  ;;  %v722_v20 = vmul.f32 %v4007_v7, %v4007_v7 }
 0x1a4   : > { %v4011_v9 = vpop.f32.mrb[10].mxu0  ;;  %v720_v23 = vmul.f32 %v4009_v8, %v4009_v8 }
 0x1a5   : > { %740 = vadd.xlane.f32.xlu1 %v718_v6  ;;  %v4013_v10 = vpop.f32.mrb[11].mxu0  ;;  %v723_v24 = vmul.f32 %v4011_v9, %v4011_v9 }
 0x1a6   : > { %v721_v25 = vmul.f32 %v4013_v10, %v4013_v10 }
 0x1a9   : > { %736 = vadd.xlane.f32.xlu1 %v716_v4 }
 0x1aa   : > { %v4017_v11 = vpop.f32.mrb[12].mxu0 }
 0x1ab   : > { %v4021_v16 = vpop.f32.mrb[13].mxu0  ;;  %v726_v26 = vmul.f32 %v4017_v11, %v4017_v11 }
 0x1ac   : > { %v4023_v17 = vpop.f32.mrb[14].mxu0  ;;  %v724_v28 = vmul.f32 %v4021_v16, %v4021_v16 }
 0x1ad   : > { %742 = vadd.xlane.f32.xlu1 %v719_v12  ;;  %v4025_v18 = vpop.f32.mrb[15].mxu0  ;;  %v727_v30 = vmul.f32 %v4023_v17, %v4023_v17 }
 0x1ae   : > { %v725_v29 = vmul.f32 %v4025_v18, %v4025_v18 }
 0x1b1   : > { %738 = vadd.xlane.f32.xlu1 %v717_v19 }
 0x1b5   : > { %748 = vadd.xlane.f32.xlu1 %v722_v20 }
 0x1b9   : > { %744 = vadd.xlane.f32.xlu1 %v720_v23 }
 0x1bd   : > { %750 = vadd.xlane.f32.xlu1 %v723_v24 }
 0x1c1   : > { %746 = vadd.xlane.f32.xlu1 %v721_v25 }
 0x1c5   : > { %756 = vadd.xlane.f32.xlu1 %v726_v26 }
 0x1c9   : > { %752 = vadd.xlane.f32.xlu1 %v724_v28 }
 0x1cd   : > { %754 = vadd.xlane.f32.xlu1 %v725_v29 }
 0x1d1   : > { %758 = vadd.xlane.f32.xlu1 %v727_v30 }
 0x204   : > { %v4045_v31 = vpop.f32.mrb[0].mxu1 }
 0x205   : > { %v4047_v32 = vpop.f32.mrb[1].mxu1  ;;  %v810_v34 = vmul.f32 %v4045_v31, %v4045_v31 }
 0x206   : > { %v4051_v35 = vpop.f32.mrb[2].mxu1  ;;  %v808_v37 = vmul.f32 %v4047_v32, %v4047_v32 }
 0x207   : > { %828 = vadd.xlane.f32.xlu1 %v810_v34  ;;  %v811_v38 = vmul.f32 %v4051_v35, %v4051_v35  ;;  %v4057_v40 = vpop.f32.mrb[3].mxu1 }
 0x208   : > { %824 = vadd.xlane.f32.xlu0 %v808_v37  ;;  %v809_v41 = vmul.f32 %v4057_v40, %v4057_v40 }
 0x20b   : > { %830 = vadd.xlane.f32.xlu1 %v811_v38 }
 0x20f   : > { %826 = vadd.xlane.f32.xlu1 %v809_v41 }
 0x214   : > { %v4061_v43 = vpop.f32.mrb[4].mxu1 }
 0x215   : > { %v814_v44 = vmul.f32 %v4061_v43, %v4061_v43  ;;  %v4065_v46 = vpop.f32.mrb[5].mxu1 }
 0x216   : > { %v4067_v47 = vpop.f32.mrb[6].mxu1  ;;  %v812_v49 = vmul.f32 %v4065_v46, %v4065_v46 }
 0x217   : > { %836 = vadd.xlane.f32.xlu1 %v814_v44  ;;  %v4071_v50 = vpop.f32.mrb[7].mxu1  ;;  %v815_v52 = vmul.f32 %v4067_v47, %v4067_v47 }
 0x218   : > { %v813_v53 = vmul.f32 %v4071_v50, %v4071_v50 }
 0x21b   : > { %832 = vadd.xlane.f32.xlu1 %v812_v49 }
 0x21f   : > { %838 = vadd.xlane.f32.xlu1 %v815_v52 }
 0x222   : > { %v733_v57 = vpop.xlane.xlu1 %732 }
 0x223   : > { %834 = vadd.xlane.f32.xlu1 %v813_v53  ;;  %v762_v26 = vmax.f32 %v733_v57, 1e-24 }
 0x224   : > { %v4077_v60 = vpop.f32.mrb[8].mxu1 }
 0x225   : > { %v818_v62 = vmul.f32 %v4077_v60, %v4077_v60  ;;  %v4081_v2 = vpop.f32.mrb[9].mxu1 }
 0x226   : > { %v4083_v6 = vpop.f32.mrb[10].mxu1  ;;  %v729_v4 = vpop.xlane.xlu1 %728  ;;  %v816_v12 = vmul.f32 %v4081_v2, %v4081_v2 }
 0x227   : > { %844 = vadd.xlane.f32.xlu1 %v818_v62  ;;  %v4087_v19 = vpop.f32.mrb[11].mxu1  ;;  %v760_v20 = vmax.f32 %v729_v4, 1e-24  ;;  %v819_v29 = vmul.f32 %v4083_v6, %v4083_v6 }
 0x228   : > { %v817_v24 = vmul.f32 %v4087_v19, %v4087_v19 }
 0x229   : > { %3189 = vrsqrt.f32 %v760_v20 }
 0x22a   : > { %v735_v23 = vpop.xlane.xlu1 %734 }
 0x22b   : > { %840 = vadd.xlane.f32.xlu1 %v816_v12  ;;  %v763_v25 = vmax.f32 %v735_v23, 1e-24 }
 0x22d   : > { %3191 = vrsqrt.f32 %v763_v25 }
 0x22e   : > { %v731_v28 = vpop.xlane.xlu1 %730  ;;  %3193 = vrsqrt.f32 %v762_v26 }
 0x22f   : > { %842 = vadd.xlane.f32.xlu1 %v817_v24  ;;  %v761_v30 = vmax.f32 %v731_v28, 1e-24 }
 0x231   : > { %3195 = vrsqrt.f32 %v761_v30 }
 0x232   : > { %v741_v34 = vpop.xlane.xlu1 %740 }
 0x233   : > { %846 = vadd.xlane.f32.xlu1 %v819_v29  ;;  %v3190_v62 = vpop.eup %3189  ;;  %v766_v28 = vmax.f32 %v741_v34, 1e-24 }
 0x234   : > { %v4093_v37 = vpop.f32.mrb[12].mxu1  ;;  %v4110_v29 = vmul.f32 %v3190_v62, %v3983_v56 }
 0x235   : > { %v4095_v38 = vpop.f32.mrb[13].mxu1  ;;  %v822_v57 = vmul.f32 %v4093_v37, %v4093_v37 }
 0x236   : > { %v4097_v41 = vpop.f32.mrb[14].mxu1  ;;  %v820_v44 = vmul.f32 %v4095_v38, %v4095_v38  ;;  %v737_v52 = vpop.xlane.xlu1 %736  ;;  %4745 = vst [vmem:[#allocation24_spill] sm:$0xff] %v4110_v29 }
 0x237   : > { %v4101_v49 = vpop.f32.mrb[15].mxu1  ;;  %v3192_v4 = vpop.eup %3191  ;;  %v823_v12 = vmul.f32 %v4097_v41, %v4097_v41  ;;  %v764_v23 = vmax.f32 %v737_v52, 1e-24 }
 0x238   : > { %v821_v53 = vmul.f32 %v4101_v49, %v4101_v49  ;;  %848 = vadd.xlane.f32.xlu1 %v820_v44  ;;  %v3194_v20 = vpop.eup %3193  ;;  %v4116_v44 = vmul.f32 %v3192_v4, %v3987_v58 }
 0x239   : > { %3197 = vrsqrt.f32 %v764_v23  ;;  %v4121_v13 = vmul.f32 %v3194_v20, %v3981_v55 }
 0x23a   : > { %850 = vadd.xlane.f32.xlu0 %v821_v53  ;;  %v743_v24 = vpop.xlane.xlu1 %742  ;;  %4747 = vst [vmem:[#allocation26_spill] sm:$0xff] %v4116_v44 }
 0x23b   : > { %v3196_v25 = vpop.eup %3195  ;;  %v767_v26 = vmax.f32 %v743_v24, 1e-24  ;;  %v905_v56 = vpack.c.bf16 %v4116_v44, %v4121_v13 }
 0x23c   : > { %852 = vadd.xlane.f32.xlu1 %v822_v57  ;;  %v4113_v30 = vmul.f32 %v3196_v25, %v3989_v59 }
 0x23d   : > { %3199 = vrsqrt.f32 %v767_v26 }
 0x23e   : > { %4746 = vst [vmem:[#allocation25_spill] sm:$0xff] %v4113_v30  ;;  %854 = vadd.xlane.f32.xlu0 %v823_v12  ;;  %v739_v53 = vpop.xlane.xlu1 %738  ;;  %v904_v52 = vpack.c.bf16 %v4113_v30, %v4110_v29  ;;  %3201 = vrsqrt.f32 %v766_v28 }
 0x23f   : > { %v765_v34 = vmax.f32 %v739_v53, 1e-24 }
 0x240   : > { %3006 = vmatprep.subr.bf16.mxu1 %v904_v52 }
 0x241   : > { %3203 = vrsqrt.f32 %v765_v34  ;;  %3007 = vmatpush3.bf16.msra.mxu1 %v904_v52 }
 0x242   : > { %3008 = vmatprep.subr.bf16.mxu1 %v905_v56  ;;  %v749_v58 = vpop.xlane.xlu1 %748 }
 0x243   : > { %v3198_v57 = vpop.eup %3197  ;;  %v770_v24 = vmax.f32 %v749_v58, 1e-24 }
 0x244   : > { %v4126_v25 = vmul.f32 %v3198_v57, %v3997_v63 }
 0x245   : > { %3009 = vmatpush3.bf16.msra.mxu1 %v905_v56 }
 0x246   : > { %v745_v59 = vpop.xlane.xlu1 %744  ;;  %4748 = vst [vmem:[#allocation27_spill] sm:$0xff] %v4126_v25 }
 0x247   : > { %v3200_v62 = vpop.eup %3199  ;;  %v768_v12 = vmax.f32 %v745_v59, 1e-24 }
 0x248   : > { %v3202_v4 = vpop.eup %3201  ;;  %v4132_v28 = vmul.f32 %v3200_v62, %v3999_v0 }
 0x249   : > { %3205 = vrsqrt.f32 %v768_v12  ;;  %v4137_v34 = vmul.f32 %v3202_v4, %v3993_v61 }
 0x24a   : > { %v751_v23 = vpop.xlane.xlu1 %750  ;;  %4750 = vst [vmem:[#allocation29_spill] sm:$0xff] %v4132_v28 }
 0x24b   : > { %v3204_v55 = vpop.eup %3203  ;;  %v771_v20 = vmax.f32 %v751_v23, 1e-24  ;;  %4751 = vst [vmem:[#allocation30_spill] sm:$0xff] %v4137_v34  ;;  %v907_v63 = vpack.c.bf16 %v4132_v28, %v4137_v34 }
 0x24c   : > { %v4129_v26 = vmul.f32 %v3204_v55, %v4001_v1 }
 0x24d   : > { %3207 = vrsqrt.f32 %v771_v20 }
 0x24e   : > { %4749 = vst [vmem:[#allocation28_spill] sm:$0xff] %v4129_v26  ;;  %v747_v53 = vpop.xlane.xlu1 %746  ;;  %v906_v52 = vpack.c.bf16 %v4129_v26, %v4126_v25  ;;  %3209 = vrsqrt.f32 %v770_v24 }
 0x24f   : > { %v769_v56 = vmax.f32 %v747_v53, 1e-24 }
 0x250   : > { %3010 = vmatprep.subr.bf16.mxu1 %v906_v52 }
 0x251   : > { %3211 = vrsqrt.f32 %v769_v56  ;;  %3011 = vmatpush3.bf16.msra.mxu1 %v906_v52 }
 0x252   : > { %3012 = vmatprep.subr.bf16.mxu1 %v907_v63  ;;  %v757_v0 = vpop.xlane.xlu1 %756 }
 0x253   : > { %v3206_v59 = vpop.eup %3205  ;;  %v774_v4 = vmax.f32 %v757_v0, 1e-24 }
 0x254   : > { %v4142_v55 = vmul.f32 %v3206_v59, %v4009_v8 }
 0x255   : > { %3013 = vmatpush3.bf16.msra.mxu1 %v907_v63 }
 0x256   : > { %v753_v1 = vpop.xlane.xlu1 %752  ;;  %4752 = vst [vmem:[#allocation31_spill] sm:$0xff] %v4142_v55 }
 0x257   : > { %v772_v58 = vmax.f32 %v753_v1, 1e-24  ;;  %v3208_v57 = vpop.eup %3207 }
 0x258   : > { %v3210_v62 = vpop.eup %3209  ;;  %v4148_v24 = vmul.f32 %v3208_v57, %v4011_v9 }
 0x259   : > { %3213 = vrsqrt.f32 %v772_v58  ;;  %v4153_v56 = vmul.f32 %v3210_v62, %v4007_v7 }
 0x25a   : > { %v755_v12 = vpop.xlane.xlu1 %754  ;;  %4754 = vst [vmem:[#allocation33_spill] sm:$0xff] %v4148_v24 }
 0x25b   : > { %v3212_v61 = vpop.eup %3211  ;;  %v773_v23 = vmax.f32 %v755_v12, 1e-24  ;;  %4755 = vst [vmem:[#allocation34_spill] sm:$0xff] %v4153_v56  ;;  %v909_v8 = vpack.c.bf16 %v4148_v24, %v4153_v56 }
 0x25c   : > { %v4145_v20 = vmul.f32 %v3212_v61, %v4013_v10 }
 0x25d   : > { %3215 = vrsqrt.f32 %v773_v23 }
 0x25e   : > { %4753 = vst [vmem:[#allocation32_spill] sm:$0xff] %v4145_v20  ;;  %v759_v53 = vpop.xlane.xlu1 %758  ;;  %v908_v52 = vpack.c.bf16 %v4145_v20, %v4142_v55  ;;  %3217 = vrsqrt.f32 %v774_v4 }
 0x25f   : > { %v775_v63 = vmax.f32 %v759_v53, 1e-24 }
 0x260   : > { %3014 = vmatprep.subr.bf16.mxu1 %v908_v52 }
 0x261   : > { %3219 = vrsqrt.f32 %v775_v63  ;;  %3015 = vmatpush3.bf16.msra.mxu1 %v908_v52 }
 0x262   : > { %3016 = vmatprep.subr.bf16.mxu1 %v909_v8 }
 0x263   : > { %v3214_v10 = vpop.eup %3213 }
 0x264   : > { %v4158_v0 = vmul.f32 %v3214_v10, %v4021_v16 }
 0x265   : > { %3017 = vmatpush3.bf16.msra.mxu1 %v909_v8 }
 0x266   : > { %4756 = vst [vmem:[#allocation35_spill] sm:$0xff] %v4158_v0 }
 0x267   : > { %v3216_v9 = vpop.eup %3215 }
 0x268   : > { %v4161_v1 = vmul.f32 %v3216_v9, %v4025_v18  ;;  %v3218_v7 = vpop.eup %3217 }
 0x269   : > { %v4166_v57 = vmul.f32 %v3218_v7, %v4017_v11 }
 0x26a   : > { %4757 = vst [vmem:[#allocation36_spill] sm:$0xff] %v4161_v1  ;;  %v910_v58 = vpack.c.bf16 %v4161_v1, %v4158_v0 }
 0x26b   : > { %v3220_v59 = vpop.eup %3219  ;;  %4758 = vst [vmem:[#allocation37_spill] sm:$0xff] %v4166_v57 }
 0x26c   : > { %3018 = vmatprep.subr.bf16.mxu1 %v910_v58  ;;  %v4169_v62 = vmul.f32 %v3220_v59, %v4023_v17 }
 0x26d   : > { %3019 = vmatpush3.bf16.msra.mxu1 %v910_v58 }
 0x26e   : > { %4759 = vst [vmem:[#allocation38_spill] sm:$0xff] %v4169_v62  ;;  %v911_v16 = vpack.c.bf16 %v4169_v62, %v4166_v57 }
 0x270   : > { %3020 = vmatprep.subr.bf16.mxu1 %v911_v16 }
 0x271   : > { %3021 = vmatpush3.bf16.msra.mxu1 %v911_v16 }
 0x274   : > { %3023 = vmatmul.mubr.bf16.vlgmr.msra.gmra.mrb[16].mxu1 %v3959_v36 }
 0x275   : > { %3026 = vmatprep.mubr.bf16.mxu1 %v3962_v39 }
 0x27c   : > { %3027 = vmatmul.mubr.bf16.gmra.mrb[20].mxu1 %v3965_v42 }
 0x27d   : > { %3030 = vmatprep.mubr.bf16.mxu1 %v3968_v45 }
 0x284   : > { %3031 = vmatmul.mubr.bf16.gmra.mrb[24].mxu1 %v3971_v48 }
 0x285   : > { %3034 = vmatprep.mubr.bf16.mxu1 %v3974_v51 }
 0x28c   : > { %3035 = vmatmul.mubr.bf16.gmra.mrb[28].mxu1 %v3977_v54 }
 0x28d   : > { %3086 = vmatprep.mubr.bf16.mxu1 %v3956_v33 }
 0x294   : > { %v829_v11 = vpop.xlane.xlu1 %828 }
 0x295   : > { %v858_v17 = vmax.f32 %v829_v11, 1e-24  ;;  %v825_v18 = vpop.xlane.xlu0 %824 }
 0x296   : > { %v856_v12 = vmax.f32 %v825_v18, 1e-24 }
 0x297   : > { %3221 = vrsqrt.f32 %v858_v17 }
 0x298   : > { %v831_v61 = vpop.xlane.xlu1 %830  ;;  %3223 = vrsqrt.f32 %v856_v12 }
 0x299   : > { %v859_v4 = vmax.f32 %v831_v61, 1e-24 }
 0x29b   : > { %3225 = vrsqrt.f32 %v859_v4 }
 0x29c   : > { %v827_v23 = vpop.xlane.xlu1 %826 }
 0x29d   : > { %v857_v53 = vmax.f32 %v827_v23, 1e-24 }
 0x29f   : > { %3227 = vrsqrt.f32 %v857_v53 }
 0x2a1   : > { %v3222_v52 = vpop.eup %3221 }
 0x2a2   : > { %v3224_v63 = vpop.eup %3223  ;;  %v890_v10 = vmul.f32 %v3222_v52, %v4045_v31 }
 0x2a3   : > { %v888_v59 = vmul.f32 %v3224_v63, %v4047_v32 }
 0x2a4   : > { %v837_v8 = vpop.xlane.xlu1 %836 }
 0x2a5   : > { %v3226_v9 = vpop.eup %3225  ;;  %v862_v7 = vmax.f32 %v837_v8, 1e-24 }
 0x2a6   : > { %v891_v33 = vmul.f32 %v3226_v9, %v4051_v35 }
 0x2a7   : > { %3229 = vrsqrt.f32 %v862_v7 }
 0x2a8   : > { %v833_v58 = vpop.xlane.xlu1 %832  ;;  %v921_v16 = vpack.c.bf16 %v891_v33, %v890_v10 }
 0x2a9   : > { %v3228_v11 = vpop.eup %3227  ;;  %v860_v17 = vmax.f32 %v833_v58, 1e-24 }
 0x2aa   : > { %v889_v18 = vmul.f32 %v3228_v11, %v4057_v40 }
 0x2ab   : > { %3231 = vrsqrt.f32 %v860_v17 }
 0x2ac   : > { %v839_v12 = vpop.xlane.xlu1 %838  ;;  %v920_v61 = vpack.c.bf16 %v889_v18, %v888_v59 }
 0x2ad   : > { %v863_v4 = vmax.f32 %v839_v12, 1e-24 }
 0x2ae   : > { %2974 = vmatprep.subr.bf16.mxu0 %v920_v61 }
 0x2af   : > { %3233 = vrsqrt.f32 %v863_v4  ;;  %2975 = vmatpush3.bf16.msra.mxu0 %v920_v61 }
 0x2b0   : > { %v835_v31 = vpop.xlane.xlu1 %834  ;;  %2976 = vmatprep.subr.bf16.mxu0 %v921_v16 }
 0x2b1   : > { %v861_v35 = vmax.f32 %v835_v31, 1e-24  ;;  %v3230_v32 = vpop.eup %3229 }
 0x2b2   : > { %v894_v63 = vmul.f32 %v3230_v32, %v4061_v43 }
 0x2b3   : > { %3235 = vrsqrt.f32 %v861_v35  ;;  %2977 = vmatpush3.bf16.msra.mxu0 %v921_v16 }
 0x2b4   : > { %v845_v23 = vpop.xlane.xlu1 %844 }
 0x2b5   : > { %v3232_v53 = vpop.eup %3231  ;;  %v866_v10 = vmax.f32 %v845_v23, 1e-24 }
 0x2b6   : > { %v892_v7 = vmul.f32 %v3232_v53, %v4065_v46 }
 0x2b8   : > { %v841_v52 = vpop.xlane.xlu1 %840 }
 0x2b9   : > { %v3234_v40 = vpop.eup %3233  ;;  %v864_v8 = vmax.f32 %v841_v52, 1e-24 }
 0x2ba   : > { %v895_v9 = vmul.f32 %v3234_v40, %v4067_v47 }
 0x2bb   : > { %3237 = vrsqrt.f32 %v864_v8 }
 0x2bc   : > { %v843_v33 = vpop.xlane.xlu1 %842  ;;  %v923_v58 = vpack.c.bf16 %v895_v9, %v894_v63  ;;  %3239 = vrsqrt.f32 %v866_v10 }
 0x2bd   : > { %v3236_v59 = vpop.eup %3235  ;;  %v865_v11 = vmax.f32 %v843_v33, 1e-24 }
 0x2be   : > { %v893_v16 = vmul.f32 %v3236_v59, %v4071_v50 }
 0x2bf   : > { %3241 = vrsqrt.f32 %v865_v11 }
 0x2c0   : > { %v847_v17 = vpop.xlane.xlu1 %846  ;;  %v922_v18 = vpack.c.bf16 %v893_v16, %v892_v7 }
 0x2c1   : > { %v867_v12 = vmax.f32 %v847_v17, 1e-24 }
 0x2c2   : > { %2978 = vmatprep.subr.bf16.mxu0 %v922_v18 }
 0x2c3   : > { %3243 = vrsqrt.f32 %v867_v12  ;;  %2979 = vmatpush3.bf16.msra.mxu0 %v922_v18 }
 0x2c4   : > { %2980 = vmatprep.subr.bf16.mxu0 %v923_v58 }
 0x2c5   : > { %v3238_v43 = vpop.eup %3237  ;;  %v849_v47 = vpop.xlane.xlu1 %848 }
 0x2c6   : > { %v868_v61 = vmax.f32 %v849_v47, 1e-24  ;;  %v3240_v46 = vpop.eup %3239  ;;  %v896_v35 = vmul.f32 %v3238_v43, %v4081_v2 }
 0x2c7   : > { %v851_v4 = vpop.xlane.xlu0 %850  ;;  %2981 = vmatpush3.bf16.msra.mxu0 %v923_v58  ;;  %v898_v8 = vmul.f32 %v3240_v46, %v4077_v60 }
 0x2c8   : > { %v869_v31 = vmax.f32 %v851_v4, 1e-24  ;;  %3245 = vrsqrt.f32 %v868_v61 }
 0x2c9   : > { %v3242_v23 = vpop.eup %3241  ;;  %v853_v50 = vpop.xlane.xlu1 %852 }
 0x2ca   : > { %3247 = vrsqrt.f32 %v869_v31  ;;  %v870_v32 = vmax.f32 %v853_v50, 1e-24  ;;  %v897_v53 = vmul.f32 %v3242_v23, %v4087_v19 }
 0x2cb   : > { %v855_v52 = vpop.xlane.xlu0 %854 }
 0x2cc   : > { %v871_v63 = vmax.f32 %v855_v52, 1e-24  ;;  %3249 = vrsqrt.f32 %v870_v32  ;;  %v924_v40 = vpack.c.bf16 %v897_v53, %v896_v35 }
 0x2cd   : > { %v3244_v10 = vpop.eup %3243 }
 0x2ce   : > { %3251 = vrsqrt.f32 %v871_v63  ;;  %2982 = vmatprep.subr.bf16.mxu0 %v924_v40  ;;  %v899_v9 = vmul.f32 %v3244_v10, %v4083_v6 }
 0x2cf   : > { %2983 = vmatpush3.bf16.msra.mxu0 %v924_v40 }
 0x2d0   : > { %v925_v33 = vpack.c.bf16 %v899_v9, %v898_v8 }
 0x2d2   : > { %v3246_v2 = vpop.eup %3245  ;;  %2984 = vmatprep.subr.bf16.mxu0 %v925_v33 }
 0x2d3   : > { %2985 = vmatpush3.bf16.msra.mxu0 %v925_v33  ;;  %v900_v7 = vmul.f32 %v3246_v2, %v4095_v38 }
 0x2d4   : > { %v3248_v58 = vpop.eup %3247 }
 0x2d5   : > { %v901_v19 = vmul.f32 %v3248_v58, %v4101_v49 }
 0x2d6   : > { %v3250_v59 = vpop.eup %3249 }
 0x2d7   : > { %v926_v11 = vpack.c.bf16 %v901_v19, %v900_v7  ;;  %v902_v16 = vmul.f32 %v3250_v59, %v4093_v37  ;;  %v4760_v37 = vld [vmem:[#allocation23_spill] sm:$0xff] }
 0x2d8   : > { %v3252_v60 = vpop.eup %3251 }
 0x2d9   : > { %2986 = vmatprep.subr.bf16.mxu0 %v926_v11  ;;  %v903_v17 = vmul.f32 %v3252_v60, %v4097_v41 }
 0x2da   : > { %2987 = vmatpush3.bf16.msra.mxu0 %v926_v11 }
 0x2db   : > { %v927_v6 = vpack.c.bf16 %v903_v17, %v902_v16 }
 0x2dd   : > { %2988 = vmatprep.subr.bf16.mxu0 %v927_v6 }
 0x2de   : > { %2989 = vmatpush3.bf16.msra.mxu0 %v927_v6 }
 0x2e1   : > { %2991 = vmatmul.mubr.bf16.vlgmr.msra.gmra.mrb[16].mxu0 %v3931_v3 }
 0x2e2   : > { %2994 = vmatprep.mubr.bf16.mxu0 %v3934_v5 }
 0x2e9   : > { %2995 = vmatmul.mubr.bf16.gmra.mrb[20].mxu0 %v3939_v14 }
 0x2ea   : > { %2998 = vmatprep.mubr.bf16.mxu0 %v3941_v15 }
 0x2f1   : > { %2999 = vmatmul.mubr.bf16.gmra.mrb[24].mxu0 %v3946_v21 }
 0x2f2   : > { %3002 = vmatprep.mubr.bf16.mxu0 %v3948_v22 }
 0x2f9   : > { %3003 = vmatmul.mubr.bf16.gmra.mrb[28].mxu0 %v3952_v27 }
 0x2fa   : > { %3054 = vmatprep.mubr.bf16.mxu0 %v4760_v37 }
 0x347   : > { %v4205_v38 = vpop.f32.mrb[16].mxu1 }
 0x348   : > { %v4207_v41 = vpop.f32.mrb[17].mxu1  ;;  %v1308_v47 = vmul.f32 %v4205_v38, %v4205_v38 }
 0x349   : > { %v4209_v49 = vpop.f32.mrb[18].mxu1  ;;  %v1306_v18 = vmul.f32 %v4207_v41, %v4207_v41 }
 0x34a   : > { %v4213_v12 = vpop.f32.mrb[19].mxu1  ;;  %v1309_v4 = vmul.f32 %v4209_v49, %v4209_v49 }
 0x34b   : > { %1322 = vadd.xlane.f32.xlu1 %v1306_v18  ;;  %v1307_v43 = vmul.f32 %v4213_v12, %v4213_v12 }
 0x34d   : > { %1324 = vadd.xlane.f32.xlu0 %v1307_v43 }
 0x34f   : > { %1326 = vadd.xlane.f32.xlu1 %v1308_v47  ;;  %v4219_v61 = vpop.f32.mrb[20].mxu1 }
 0x350   : > { %v4223_v46 = vpop.f32.mrb[21].mxu1  ;;  %v1312_v32 = vmul.f32 %v4219_v61, %v4219_v61 }
 0x351   : > { %1328 = vadd.xlane.f32.xlu0 %v1309_v4  ;;  %v4225_v31 = vpop.f32.mrb[22].mxu1  ;;  %v1310_v35 = vmul.f32 %v4223_v46, %v4223_v46 }
 0x352   : > { %v4229_v23 = vpop.f32.mrb[23].mxu1  ;;  %v1313_v52 = vmul.f32 %v4225_v31, %v4225_v31 }
 0x353   : > { %1330 = vadd.xlane.f32.xlu1 %v1310_v35  ;;  %v1311_v50 = vmul.f32 %v4229_v23, %v4229_v23 }
 0x355   : > { %1332 = vadd.xlane.f32.xlu0 %v1311_v50 }
 0x357   : > { %1334 = vadd.xlane.f32.xlu1 %v1312_v32  ;;  %v4235_v53 = vpop.f32.mrb[24].mxu1 }
 0x358   : > { %v4239_v63 = vpop.f32.mrb[25].mxu1  ;;  %v1316_v33 = vmul.f32 %v4235_v53, %v4235_v53 }
 0x359   : > { %1336 = vadd.xlane.f32.xlu0 %v1313_v52  ;;  %v4241_v40 = vpop.f32.mrb[26].mxu1  ;;  %v1314_v8 = vmul.f32 %v4239_v63, %v4239_v63 }
 0x35a   : > { %v4245_v10 = vpop.f32.mrb[27].mxu1  ;;  %v1317_v7 = vmul.f32 %v4241_v40, %v4241_v40 }
 0x35b   : > { %1338 = vadd.xlane.f32.xlu1 %v1314_v8  ;;  %v1315_v9 = vmul.f32 %v4245_v10, %v4245_v10 }
 0x35d   : > { %1340 = vadd.xlane.f32.xlu0 %v1315_v9 }
 0x35f   : > { %1342 = vadd.xlane.f32.xlu1 %v1316_v33  ;;  %v4251_v2 = vpop.f32.mrb[28].mxu1 }
 0x360   : > { %v4255_v58 = vpop.f32.mrb[29].mxu1  ;;  %v1320_v60 = vmul.f32 %v4251_v2, %v4251_v2 }
 0x361   : > { %1344 = vadd.xlane.f32.xlu0 %v1317_v7  ;;  %v4257_v19 = vpop.f32.mrb[30].mxu1  ;;  %v1318_v59 = vmul.f32 %v4255_v58, %v4255_v58 }
 0x362   : > { %v4261_v11 = vpop.f32.mrb[31].mxu1  ;;  %v1321_v17 = vmul.f32 %v4257_v19, %v4257_v19 }
 0x363   : > { %1346 = vadd.xlane.f32.xlu1 %v1318_v59  ;;  %v1319_v16 = vmul.f32 %v4261_v11, %v4261_v11 }
 0x365   : > { %1348 = vadd.xlane.f32.xlu0 %v1319_v16 }
 0x367   : > { %1350 = vadd.xlane.f32.xlu1 %v1320_v60 }
 0x369   : > { %1352 = vadd.xlane.f32.xlu0 %v1321_v17 }
 0x3b4   : > { %v4269_v6 = vpop.f32.mrb[16].mxu0 }
 0x3b5   : > { %v4271_v37 = vpop.f32.mrb[17].mxu0  ;;  %v1212_v35 = vmul.f32 %v4269_v6, %v4269_v6 }
 0x3b6   : > { %v4273_v18 = vpop.f32.mrb[18].mxu0  ;;  %v1210_v43 = vmul.f32 %v4271_v37, %v4271_v37 }
 0x3b7   : > { %v4277_v47 = vpop.f32.mrb[19].mxu0  ;;  %v1213_v50 = vmul.f32 %v4273_v18, %v4273_v18 }
 0x3b8   : > { %1226 = vadd.xlane.f32.xlu1 %v1210_v43  ;;  %v1211_v4 = vmul.f32 %v4277_v47, %v4277_v47 }
 0x3ba   : > { %1228 = vadd.xlane.f32.xlu0 %v1211_v4 }
 0x3bc   : > { %1230 = vadd.xlane.f32.xlu1 %v1212_v35  ;;  %v4285_v32 = vpop.f32.mrb[20].mxu0 }
 0x3bd   : > { %v4287_v52 = vpop.f32.mrb[21].mxu0  ;;  %v1216_v59 = vmul.f32 %v4285_v32, %v4285_v32 }
 0x3be   : > { %1232 = vadd.xlane.f32.xlu0 %v1213_v50  ;;  %v4289_v8 = vpop.f32.mrb[22].mxu0  ;;  %v1214_v9 = vmul.f32 %v4287_v52, %v4287_v52 }
 0x3bf   : > { %v4293_v33 = vpop.f32.mrb[23].mxu0  ;;  %v1217_v16 = vmul.f32 %v4289_v8, %v4289_v8 }
 0x3c0   : > { %1234 = vadd.xlane.f32.xlu1 %v1214_v9  ;;  %v1215_v7 = vmul.f32 %v4293_v33, %v4293_v33 }
 0x3c2   : > { %1236 = vadd.xlane.f32.xlu0 %v1215_v7 }
 0x3c4   : > { %1238 = vadd.xlane.f32.xlu1 %v1216_v59  ;;  %v4301_v60 = vpop.f32.mrb[24].mxu0 }
 0x3c5   : > { %v4303_v17 = vpop.f32.mrb[25].mxu0  ;;  %v1220_v9 = vmul.f32 %v4301_v60, %v4301_v60 }
 0x3c6   : > { %1240 = vadd.xlane.f32.xlu0 %v1217_v16  ;;  %v4305_v43 = vpop.f32.mrb[26].mxu0  ;;  %v1218_v4 = vmul.f32 %v4303_v17, %v4303_v17 }
 0x3c7   : > { %v4309_v35 = vpop.f32.mrb[27].mxu0  ;;  %v1221_v7 = vmul.f32 %v4305_v43, %v4305_v43 }
 0x3c8   : > { %1242 = vadd.xlane.f32.xlu1 %v1218_v4  ;;  %v1219_v50 = vmul.f32 %v4309_v35, %v4309_v35 }
 0x3ca   : > { %1244 = vadd.xlane.f32.xlu0 %v1219_v50 }
 0x3cc   : > { %1246 = vadd.xlane.f32.xlu1 %v1220_v9  ;;  %v4317_v59 = vpop.f32.mrb[28].mxu0 }
 0x3cd   : > { %v4319_v16 = vpop.f32.mrb[29].mxu0  ;;  %v1224_v1 = vmul.f32 %v4317_v59, %v4317_v59 }
 0x3ce   : > { %1248 = vadd.xlane.f32.xlu0 %v1221_v7  ;;  %v4321_v62 = vpop.f32.mrb[30].mxu0  ;;  %v1222_v4 = vmul.f32 %v4319_v16, %v4319_v16 }
 0x3cf   : > { %v4325_v57 = vpop.f32.mrb[31].mxu0  ;;  %v1225_v9 = vmul.f32 %v4321_v62, %v4321_v62 }
 0x3d0   : > { %1250 = vadd.xlane.f32.xlu1 %v1222_v4  ;;  %v1223_v50 = vmul.f32 %v4325_v57, %v4325_v57 }
 0x3d2   : > { %1252 = vadd.xlane.f32.xlu0 %v1223_v50 }
 0x3d4   : > { %1254 = vadd.xlane.f32.xlu1 %v1224_v1 }
 0x3d6   : > { %1256 = vadd.xlane.f32.xlu0 %v1225_v9 }
 0x3d8   : > { %v1323_v7 = vpop.xlane.xlu1 %1322 }
 0x3d9   : > { %v1354_v0 = vmax.f32 %v1323_v7, 1e-24 }
 0x3da   : > { %v1325_v20 = vpop.xlane.xlu0 %1324 }
 0x3db   : > { %3253 = vrsqrt.f32 %v1354_v0  ;;  %v1355_v55 = vmax.f32 %v1325_v20, 1e-24 }
 0x3dc   : > { %v1327_v24 = vpop.xlane.xlu1 %1326 }
 0x3dd   : > { %3255 = vrsqrt.f32 %v1355_v55  ;;  %v1356_v4 = vmax.f32 %v1327_v24, 1e-24 }
 0x3de   : > { %v1329_v56 = vpop.xlane.xlu0 %1328 }
 0x3df   : > { %3257 = vrsqrt.f32 %v1356_v4  ;;  %v1357_v26 = vmax.f32 %v1329_v56, 1e-24 }
 0x3e0   : > { %v1331_v25 = vpop.xlane.xlu1 %1330 }
 0x3e1   : > { %3259 = vrsqrt.f32 %v1357_v26  ;;  %v1358_v28 = vmax.f32 %v1331_v25, 1e-24 }
 0x3e2   : > { %v1333_v50 = vpop.xlane.xlu0 %1332 }
 0x3e3   : > { %3261 = vrsqrt.f32 %v1358_v28  ;;  %v1359_v34 = vmax.f32 %v1333_v50, 1e-24 }
 0x3e4   : > { %v1335_v30 = vpop.xlane.xlu1 %1334 }
 0x3e5   : > { %v3254_v1 = vpop.eup %3253  ;;  %3263 = vrsqrt.f32 %v1359_v34  ;;  %v1360_v9 = vmax.f32 %v1335_v30, 1e-24 }
 0x3e6   : > { %v1337_v7 = vpop.xlane.xlu0 %1336  ;;  %v1386_v55 = vmul.f32 %v3254_v1, %v4207_v41 }
 0x3e7   : > { %v3256_v29 = vpop.eup %3255  ;;  %3265 = vrsqrt.f32 %v1360_v9  ;;  %v1361_v20 = vmax.f32 %v1337_v7, 1e-24 }
 0x3e8   : > { %v1339_v0 = vpop.xlane.xlu1 %1338  ;;  %v1387_v24 = vmul.f32 %v3256_v29, %v4213_v12 }
 0x3e9   : > { %v3258_v56 = vpop.eup %3257  ;;  %3267 = vrsqrt.f32 %v1361_v20  ;;  %v1362_v26 = vmax.f32 %v1339_v0, 1e-24 }
 0x3ea   : > { %v1341_v25 = vpop.xlane.xlu0 %1340  ;;  %v1418_v4 = vpack.c.bf16 %v1387_v24, %v1386_v55  ;;  %v1388_v30 = vmul.f32 %v3258_v56, %v4205_v38 }
 0x3eb   : > { %v3260_v28 = vpop.eup %3259  ;;  %3269 = vrsqrt.f32 %v1362_v26  ;;  %v1363_v50 = vmax.f32 %v1341_v25, 1e-24 }
 0x3ec   : > { %3038 = vmatprep.subr.bf16.mxu0 %v1418_v4  ;;  %v1343_v34 = vpop.xlane.xlu1 %1342  ;;  %v1389_v9 = vmul.f32 %v3260_v28, %v4209_v49 }
 0x3ed   : > { %v3262_v7 = vpop.eup %3261  ;;  %3271 = vrsqrt.f32 %v1363_v50  ;;  %v1364_v44 = vmax.f32 %v1343_v34, 1e-24  ;;  %3039 = vmatpush3.bf16.msra.mxu0 %v1418_v4 }
 0x3ee   : > { %v1345_v41 = vpop.xlane.xlu0 %1344  ;;  %v1419_v29 = vpack.c.bf16 %v1389_v9, %v1388_v30  ;;  %v1390_v0 = vmul.f32 %v3262_v7, %v4223_v46 }
 0x3ef   : > { %v3264_v12 = vpop.eup %3263  ;;  %3273 = vrsqrt.f32 %v1364_v44  ;;  %v1365_v1 = vmax.f32 %v1345_v41, 1e-24 }
 0x3f0   : > { %3040 = vmatprep.subr.bf16.mxu0 %v1419_v29  ;;  %v1347_v20 = vpop.xlane.xlu1 %1346  ;;  %v1391_v55 = vmul.f32 %v3264_v12, %v4229_v23 }
 0x3f1   : > { %v3266_v24 = vpop.eup %3265  ;;  %3275 = vrsqrt.f32 %v1365_v1  ;;  %v1366_v38 = vmax.f32 %v1347_v20, 1e-24  ;;  %3041 = vmatpush3.bf16.msra.mxu0 %v1419_v29 }
 0x3f2   : > { %v1349_v49 = vpop.xlane.xlu0 %1348  ;;  %v1420_v56 = vpack.c.bf16 %v1391_v55, %v1390_v0  ;;  %v1392_v44 = vmul.f32 %v3266_v24, %v4219_v61 }
 0x3f3   : > { %v3268_v26 = vpop.eup %3267  ;;  %3277 = vrsqrt.f32 %v1366_v38  ;;  %v1367_v25 = vmax.f32 %v1349_v49, 1e-24 }
 0x3f4   : > { %3042 = vmatprep.subr.bf16.mxu0 %v1420_v56  ;;  %v1351_v4 = vpop.xlane.xlu1 %1350  ;;  %v1393_v28 = vmul.f32 %v3268_v26, %v4225_v31 }
 0x3f5   : > { %v3270_v50 = vpop.eup %3269  ;;  %3279 = vrsqrt.f32 %v1367_v25  ;;  %v1368_v46 = vmax.f32 %v1351_v4, 1e-24  ;;  %3043 = vmatpush3.bf16.msra.mxu0 %v1420_v56 }
 0x3f6   : > { %v1353_v23 = vpop.xlane.xlu0 %1352  ;;  %v1421_v34 = vpack.c.bf16 %v1393_v28, %v1392_v44  ;;  %v1394_v7 = vmul.f32 %v3270_v50, %v4239_v63 }
 0x3f7   : > { %v3272_v30 = vpop.eup %3271  ;;  %3281 = vrsqrt.f32 %v1368_v46  ;;  %v1369_v9 = vmax.f32 %v1353_v23, 1e-24 }
 0x3f8   : > { %3044 = vmatprep.subr.bf16.mxu0 %v1421_v34  ;;  %v1395_v41 = vmul.f32 %v3272_v30, %v4245_v10 }
 0x3f9   : > { %v3274_v29 = vpop.eup %3273  ;;  %3283 = vrsqrt.f32 %v1369_v9  ;;  %3045 = vmatpush3.bf16.msra.mxu0 %v1421_v34 }
 0x3fa   : > { %v1422_v61 = vpack.c.bf16 %v1395_v41, %v1394_v7  ;;  %v1396_v31 = vmul.f32 %v3274_v29, %v4235_v53 }
 0x3fb   : > { %v3276_v12 = vpop.eup %3275 }
 0x3fc   : > { %3046 = vmatprep.subr.bf16.mxu0 %v1422_v61  ;;  %v1397_v1 = vmul.f32 %v3276_v12, %v4241_v40 }
 0x3fd   : > { %v3278_v20 = vpop.eup %3277  ;;  %3047 = vmatpush3.bf16.msra.mxu0 %v1422_v61 }
 0x3fe   : > { %v1423_v0 = vpack.c.bf16 %v1397_v1, %v1396_v31  ;;  %v1398_v24 = vmul.f32 %v3278_v20, %v4255_v58 }
 0x3ff   : > { %v3280_v55 = vpop.eup %3279 }
 0x400   : > { %3048 = vmatprep.subr.bf16.mxu0 %v1423_v0  ;;  %v1399_v63 = vmul.f32 %v3280_v55, %v4261_v11 }
 0x401   : > { %v3282_v10 = vpop.eup %3281  ;;  %3049 = vmatpush3.bf16.msra.mxu0 %v1423_v0 }
 0x402   : > { %v1424_v38 = vpack.c.bf16 %v1399_v63, %v1398_v24  ;;  %v1400_v56 = vmul.f32 %v3282_v10, %v4251_v2 }
 0x403   : > { %v3284_v49 = vpop.eup %3283 }
 0x404   : > { %3050 = vmatprep.subr.bf16.mxu0 %v1424_v38  ;;  %v1401_v53 = vmul.f32 %v3284_v49, %v4257_v19 }
 0x405   : > { %3051 = vmatpush3.bf16.msra.mxu0 %v1424_v38 }
 0x406   : > { %v1425_v40 = vpack.c.bf16 %v1401_v53, %v1400_v56 }
 0x408   : > { %3052 = vmatprep.subr.bf16.mxu0 %v1425_v40 }
 0x409   : > { %3053 = vmatpush3.bf16.msra.mxu0 %v1425_v40 }
 0x40c   : > { %3055 = vmatmul.mubr.bf16.vlgmr.msra.gmra.mrb[32].mxu0 %v3931_v3 }
 0x40d   : > { %3058 = vmatprep.mubr.bf16.mxu0 %v3934_v5 }
 0x414   : > { %3059 = vmatmul.mubr.bf16.gmra.mrb[36].mxu0 %v3939_v14 }
 0x415   : > { %3062 = vmatprep.mubr.bf16.mxu0 %v3941_v15 }
 0x41c   : > { %3063 = vmatmul.mubr.bf16.gmra.mrb[40].mxu0 %v3946_v21 }
 0x41d   : > { %3066 = vmatprep.mubr.bf16.mxu0 %v3948_v22 }
 0x424   : > { %3067 = vmatmul.mubr.bf16.gmra.mrb[44].mxu0 %v3952_v27 }
 0x445   : > { %v1227_v2 = vpop.xlane.xlu1 %1226 }
 0x446   : > { %v1258_v58 = vmax.f32 %v1227_v2, 1e-24 }
 0x447   : > { %v1229_v19 = vpop.xlane.xlu0 %1228 }
 0x448   : > { %3285 = vrsqrt.f32 %v1258_v58  ;;  %v1259_v11 = vmax.f32 %v1229_v19, 1e-24 }
 0x449   : > { %v1231_v26 = vpop.xlane.xlu1 %1230 }
 0x44a   : > { %3287 = vrsqrt.f32 %v1259_v11  ;;  %v1260_v3 = vmax.f32 %v1231_v26, 1e-24 }
 0x44b   : > { %v1233_v25 = vpop.xlane.xlu0 %1232 }
 0x44c   : > { %3289 = vrsqrt.f32 %v1260_v3  ;;  %v1261_v5 = vmax.f32 %v1233_v25, 1e-24 }
 0x44d   : > { %v1235_v14 = vpop.xlane.xlu1 %1234 }
 0x44e   : > { %3291 = vrsqrt.f32 %v1261_v5  ;;  %v1262_v15 = vmax.f32 %v1235_v14, 1e-24 }
 0x44f   : > { %v1237_v4 = vpop.xlane.xlu0 %1236 }
 0x450   : > { %3293 = vrsqrt.f32 %v1262_v15  ;;  %v1263_v21 = vmax.f32 %v1237_v4, 1e-24 }
 0x451   : > { %v1239_v22 = vpop.xlane.xlu1 %1238 }
 0x452   : > { %v3286_v44 = vpop.eup %3285  ;;  %3295 = vrsqrt.f32 %v1263_v21  ;;  %v1264_v27 = vmax.f32 %v1239_v22, 1e-24 }
 0x453   : > { %v1241_v28 = vpop.xlane.xlu0 %1240  ;;  %v4357_v34 = vmul.f32 %v3286_v44, %v4271_v37 }
 0x454   : > { %v3288_v50 = vpop.eup %3287  ;;  %3297 = vrsqrt.f32 %v1264_v27  ;;  %v1265_v46 = vmax.f32 %v1241_v28, 1e-24 }
 0x455   : > { %v1243_v23 = vpop.xlane.xlu1 %1242  ;;  %v4360_v30 = vmul.f32 %v3288_v50, %v4277_v47 }
 0x456   : > { %v3290_v9 = vpop.eup %3289  ;;  %3299 = vrsqrt.f32 %v1265_v46  ;;  %v1266_v7 = vmax.f32 %v1243_v23, 1e-24 }
 0x457   : > { %v1245_v41 = vpop.xlane.xlu0 %1244  ;;  %v1402_v29 = vpack.c.bf16 %v4360_v30, %v4357_v34  ;;  %v4365_v1 = vmul.f32 %v3290_v9, %v4269_v6 }
 0x458   : > { %v3292_v61 = vpop.eup %3291  ;;  %3301 = vrsqrt.f32 %v1266_v7  ;;  %v1267_v12 = vmax.f32 %v1245_v41, 1e-24 }
 0x459   : > { %3070 = vmatprep.subr.bf16.mxu1 %v1402_v29  ;;  %v1247_v31 = vpop.xlane.xlu1 %1246  ;;  %v4368_v37 = vmul.f32 %v3292_v61, %v4273_v18 }
 0x45a   : > { %v3294_v47 = vpop.eup %3293  ;;  %3303 = vrsqrt.f32 %v1267_v12  ;;  %v1268_v20 = vmax.f32 %v1247_v31, 1e-24  ;;  %3071 = vmatpush3.bf16.msra.mxu1 %v1402_v29 }
 0x45b   : > { %v1249_v0 = vpop.xlane.xlu0 %1248  ;;  %v1403_v55 = vpack.c.bf16 %v4368_v37, %v4365_v1  ;;  %v4373_v38 = vmul.f32 %v3294_v47, %v4287_v52 }
 0x45c   : > { %v3296_v24 = vpop.eup %3295  ;;  %3305 = vrsqrt.f32 %v1268_v20  ;;  %v1269_v63 = vmax.f32 %v1249_v0, 1e-24 }
 0x45d   : > { %3072 = vmatprep.subr.bf16.mxu1 %v1403_v55  ;;  %v1251_v10 = vpop.xlane.xlu1 %1250  ;;  %v4376_v6 = vmul.f32 %v3296_v24, %v4293_v33 }
 0x45e   : > { %v3298_v18 = vpop.eup %3297  ;;  %3307 = vrsqrt.f32 %v1269_v63  ;;  %v1270_v49 = vmax.f32 %v1251_v10, 1e-24  ;;  %3073 = vmatpush3.bf16.msra.mxu1 %v1403_v55 }
 0x45f   : > { %v1253_v56 = vpop.xlane.xlu0 %1252  ;;  %v1404_v53 = vpack.c.bf16 %v4376_v6, %v4373_v38  ;;  %v4381_v19 = vmul.f32 %v3298_v18, %v4285_v32 }
 0x460   : > { %v3300_v40 = vpop.eup %3299  ;;  %3309 = vrsqrt.f32 %v1270_v49  ;;  %v1271_v2 = vmax.f32 %v1253_v56, 1e-24 }
 0x461   : > { %3074 = vmatprep.subr.bf16.mxu1 %v1404_v53  ;;  %v1255_v58 = vpop.xlane.xlu1 %1254  ;;  %v4384_v52 = vmul.f32 %v3300_v40, %v4289_v8 }
 0x462   : > { %v3302_v33 = vpop.eup %3301  ;;  %3311 = vrsqrt.f32 %v1271_v2  ;;  %v1272_v11 = vmax.f32 %v1255_v58, 1e-24  ;;  %3075 = vmatpush3.bf16.msra.mxu1 %v1404_v53 }
 0x463   : > { %v1257_v26 = vpop.xlane.xlu0 %1256  ;;  %v1405_v3 = vpack.c.bf16 %v4384_v52, %v4381_v19  ;;  %v4389_v14 = vmul.f32 %v3302_v33, %v4303_v17 }
 0x464   : > { %v3304_v25 = vpop.eup %3303  ;;  %3313 = vrsqrt.f32 %v1272_v11  ;;  %v1273_v5 = vmax.f32 %v1257_v26, 1e-24 }
 0x465   : > { %3076 = vmatprep.subr.bf16.mxu1 %v1405_v3  ;;  %v4392_v32 = vmul.f32 %v3304_v25, %v4309_v35 }
 0x466   : > { %v3306_v8 = vpop.eup %3305  ;;  %3315 = vrsqrt.f32 %v1273_v5  ;;  %3077 = vmatpush3.bf16.msra.mxu1 %v1405_v3 }
 0x467   : > { %v1406_v15 = vpack.c.bf16 %v4392_v32, %v4389_v14  ;;  %v4397_v21 = vmul.f32 %v3306_v8, %v4301_v60 }
 0x468   : > { %v3308_v4 = vpop.eup %3307 }
 0x469   : > { %3078 = vmatprep.subr.bf16.mxu1 %v1406_v15  ;;  %v4400_v22 = vmul.f32 %v3308_v4, %v4305_v43 }
 0x46a   : > { %v3310_v44 = vpop.eup %3309  ;;  %3079 = vmatpush3.bf16.msra.mxu1 %v1406_v15 }
 0x46b   : > { %v1407_v17 = vpack.c.bf16 %v4400_v22, %v4397_v21  ;;  %v4405_v27 = vmul.f32 %v3310_v44, %v4319_v16 }
 0x46c   : > { %v3312_v35 = vpop.eup %3311 }
 0x46d   : > { %3080 = vmatprep.subr.bf16.mxu1 %v1407_v17  ;;  %v4408_v28 = vmul.f32 %v3312_v35, %v4325_v57 }
 0x46e   : > { %v3314_v50 = vpop.eup %3313  ;;  %3081 = vmatpush3.bf16.msra.mxu1 %v1407_v17 }
 0x46f   : > { %v1408_v60 = vpack.c.bf16 %v4408_v28, %v4405_v27  ;;  %v4413_v46 = vmul.f32 %v3314_v50, %v4317_v59 }
 0x470   : > { %v3316_v43 = vpop.eup %3315 }
 0x471   : > { %3082 = vmatprep.subr.bf16.mxu1 %v1408_v60  ;;  %v4416_v23 = vmul.f32 %v3316_v43, %v4321_v62 }
 0x472   : > { %3083 = vmatpush3.bf16.msra.mxu1 %v1408_v60 }
 0x473   : > { %v1409_v16 = vpack.c.bf16 %v4416_v23, %v4413_v46 }
 0x475   : > { %3084 = vmatprep.subr.bf16.mxu1 %v1409_v16 }
 0x476   : > { %3085 = vmatpush3.bf16.msra.mxu1 %v1409_v16 }
 0x479   : > { %3087 = vmatmul.mubr.bf16.vlgmr.msra.gmra.mrb[32].mxu1 %v3959_v36 }
 0x47a   : > { %3090 = vmatprep.mubr.bf16.mxu1 %v3962_v39 }
 0x481   : > { %3091 = vmatmul.mubr.bf16.gmra.mrb[36].mxu1 %v3965_v42 }
 0x482   : > { %3094 = vmatprep.mubr.bf16.mxu1 %v3968_v45 }
 0x489   : > { %3095 = vmatmul.mubr.bf16.gmra.mrb[40].mxu1 %v3971_v48 }
 0x48a   : > { %3098 = vmatprep.mubr.bf16.mxu1 %v3974_v51 }
 0x491   : > { %3099 = vmatmul.mubr.bf16.gmra.mrb[44].mxu1 %v3977_v54 }
 0x4df   : > { %v4427_v57 = vpop.f32.mrb[32].mxu0 }
 0x4e0   : > { %v4429_v62 = vpop.f32.mrb[33].mxu0  ;;  %v1710_v59 = vmul.f32 %v4427_v57, %v4427_v57 }
 0x4e1   : > { %v4433_v36 = vpop.f32.mrb[34].mxu0  ;;  %v1708_v45 = vmul.f32 %v4429_v62, %v4429_v62 }
 0x4e2   : > { %1728 = vadd.xlane.f32.xlu1 %v1710_v59  ;;  %v4435_v39 = vpop.f32.mrb[35].mxu0  ;;  %v1711_v42 = vmul.f32 %v4433_v36, %v4433_v36 }
 0x4e3   : > { %v1709_v48 = vmul.f32 %v4435_v39, %v4435_v39 }
 0x4e4   : > { %1730 = vadd.xlane.f32.xlu0 %v1711_v42 }
 0x4e6   : > { %1724 = vadd.xlane.f32.xlu1 %v1708_v45 }
 0x4e7   : > { %v4443_v51 = vpop.f32.mrb[36].mxu0 }
 0x4e8   : > { %1726 = vadd.xlane.f32.xlu0 %v1709_v48  ;;  %v4445_v54 = vpop.f32.mrb[37].mxu0  ;;  %v1714_v9 = vmul.f32 %v4443_v51, %v4443_v51 }
 0x4e9   : > { %v4449_v7 = vpop.f32.mrb[38].mxu0  ;;  %v1712_v61 = vmul.f32 %v4445_v54, %v4445_v54 }
 0x4ea   : > { %1736 = vadd.xlane.f32.xlu1 %v1714_v9  ;;  %v1715_v41 = vmul.f32 %v4449_v7, %v4449_v7  ;;  %v4453_v29 = vpop.f32.mrb[39].mxu0 }
 0x4eb   : > { %v1713_v12 = vmul.f32 %v4453_v29, %v4453_v29 }
 0x4ec   : > { %1738 = vadd.xlane.f32.xlu0 %v1715_v41 }
 0x4ee   : > { %1732 = vadd.xlane.f32.xlu1 %v1712_v61 }
 0x4ef   : > { %v4459_v31 = vpop.f32.mrb[40].mxu0 }
 0x4f0   : > { %v1718_v47 = vmul.f32 %v4459_v31, %v4459_v31  ;;  %1734 = vadd.xlane.f32.xlu0 %v1713_v12  ;;  %v4463_v20 = vpop.f32.mrb[41].mxu0 }
 0x4f1   : > { %v4465_v0 = vpop.f32.mrb[42].mxu0  ;;  %v1716_v55 = vmul.f32 %v4463_v20, %v4463_v20 }
 0x4f2   : > { %1744 = vadd.xlane.f32.xlu1 %v1718_v47  ;;  %v1719_v24 = vmul.f32 %v4465_v0, %v4465_v0  ;;  %v4471_v63 = vpop.f32.mrb[43].mxu0 }
 0x4f3   : > { %v1717_v10 = vmul.f32 %v4471_v63, %v4471_v63 }
 0x4f4   : > { %1746 = vadd.xlane.f32.xlu0 %v1719_v24 }
 0x4f6   : > { %1740 = vadd.xlane.f32.xlu1 %v1716_v55 }
 0x4f7   : > { %v4475_v18 = vpop.f32.mrb[44].mxu0 }
 0x4f8   : > { %1742 = vadd.xlane.f32.xlu0 %v1717_v10  ;;  %v4477_v49 = vpop.f32.mrb[45].mxu0  ;;  %v1722_v2 = vmul.f32 %v4475_v18, %v4475_v18 }
 0x4f9   : > { %v1720_v56 = vmul.f32 %v4477_v49, %v4477_v49  ;;  %v4481_v53 = vpop.f32.mrb[46].mxu0 }
 0x4fa   : > { %v4483_v40 = vpop.f32.mrb[47].mxu0  ;;  %v1723_v33 = vmul.f32 %v4481_v53, %v4481_v53 }
 0x4fb   : > { %v1721_v58 = vmul.f32 %v4483_v40, %v4483_v40  ;;  %1748 = vadd.xlane.f32.xlu1 %v1720_v56 }
 0x4fd   : > { %1750 = vadd.xlane.f32.xlu0 %v1721_v58 }
 0x4ff   : > { %1752 = vadd.xlane.f32.xlu1 %v1722_v2 }
 0x501   : > { %1754 = vadd.xlane.f32.xlu0 %v1723_v33 }
 0x54c   : > { %v3088_v11 = vpop.f32.mrb[32].mxu1 }
 0x54d   : > { %v1645_v26 = vpop.f32.mrb[33].mxu1 }
 0x54e   : > { %v3089_v3 = vpop.f32.mrb[34].mxu1  ;;  %v1452_v26 = vadd.f32 %v4365_v1, %v4121_v13 }
 0x54f   : > { %v1648_v25 = vpop.f32.mrb[35].mxu1 }
 0x554   : > { %v3092_v5 = vpop.f32.mrb[36].mxu1 }
 0x555   : > { %v1661_v8 = vpop.f32.mrb[37].mxu1 }
 0x556   : > { %v3093_v15 = vpop.f32.mrb[38].mxu1  ;;  %v1998_v8 = vld [vmem:[#allocation15 + $0x10] sm:$0xff] }
 0x557   : > { %v1664_v4 = vpop.f32.mrb[39].mxu1 }
 0x55c   : > { %v3096_v44 = vpop.f32.mrb[40].mxu1 }
 0x55d   : > { %v1677_v17 = vpop.f32.mrb[41].mxu1  ;;  %v4761_v44 = vld [vmem:[#allocation26_spill] sm:$0xff] }
 0x55e   : > { %v3097_v35 = vpop.f32.mrb[42].mxu1  ;;  %v1453_v17 = vadd.f32 %v4368_v37, %v4761_v44  ;;  %v1996_v37 = vld [vmem:[#allocation15] sm:$0xff] }
 0x55f   : > { %v1680_v50 = vpop.f32.mrb[43].mxu1 }
 0x564   : > { %v3100_v60 = vpop.f32.mrb[44].mxu1 }
 0x565   : > { %v1693_v43 = vpop.f32.mrb[45].mxu1 }
 0x566   : > { %v3101_v16 = vpop.f32.mrb[46].mxu1  ;;  %v1999_v43 = vld [vmem:[#allocation15 + $0x18] sm:$0xff] }
 0x567   : > { %v1696_v59 = vpop.f32.mrb[47].mxu1 }
 0x56f   : > { %v1729_v42 = vpop.xlane.xlu1 %1728 }
 0x570   : > { %v1758_v45 = vmax.f32 %v1729_v42, 1e-24 }
 0x571   : > { %v1731_v48 = vpop.xlane.xlu0 %1730 }
 0x572   : > { %3317 = vrsqrt.f32 %v1758_v45  ;;  %v1759_v9 = vmax.f32 %v1731_v48, 1e-24 }
 0x573   : > { %v1725_v41 = vpop.xlane.xlu1 %1724 }
 0x574   : > { %3319 = vrsqrt.f32 %v1759_v9  ;;  %v1756_v61 = vmax.f32 %v1725_v41, 1e-24 }
 0x575   : > { %v1727_v12 = vpop.xlane.xlu0 %1726 }
 0x576   : > { %3321 = vrsqrt.f32 %v1756_v61  ;;  %v1757_v47 = vmax.f32 %v1727_v12, 1e-24  ;;  %v4763_v61 = vld [vmem:[#allocation25_spill] sm:$0xff] }
 0x577   : > { %v1737_v55 = vpop.xlane.xlu1 %1736  ;;  %v1451_v12 = vadd.f32 %v4360_v30, %v4763_v61 }
 0x578   : > { %3323 = vrsqrt.f32 %v1757_v47  ;;  %v1762_v24 = vmax.f32 %v1737_v55, 1e-24 }
 0x579   : > { %v1739_v10 = vpop.xlane.xlu0 %1738 }
 0x57a   : > { %3325 = vrsqrt.f32 %v1762_v24  ;;  %v1763_v56 = vmax.f32 %v1739_v10, 1e-24  ;;  %v1997_v24 = vld [vmem:[#allocation15 + $0x8] sm:$0xff] }
 0x57b   : > { %v1733_v2 = vpop.xlane.xlu1 %1732 }
 0x57c   : > { %v3318_v58 = vpop.eup %3317  ;;  %3327 = vrsqrt.f32 %v1763_v56  ;;  %v1760_v33 = vmax.f32 %v1733_v2, 1e-24  ;;  %v4764_v2 = vld [vmem:[#allocation30_spill] sm:$0xff] }
 0x57d   : > { %v1735_v11 = vpop.xlane.xlu0 %1734  ;;  %v1790_v3 = vmul.f32 %v3318_v58, %v4427_v57  ;;  %v4762_v57 = vld [vmem:[#allocation24_spill] sm:$0xff]  ;;  %v1456_v58 = vadd.f32 %v4381_v19, %v4764_v2  ;;  %v2003_v19 = vld [vmem:[#allocation15 + $0x38] sm:$0xff] }
 0x57e   : > { %v3320_v25 = vpop.eup %3319  ;;  %3329 = vrsqrt.f32 %v1760_v33  ;;  %v1761_v5 = vmax.f32 %v1735_v11, 1e-24  ;;  %v1450_v59 = vadd.f32 %v4357_v34, %v4762_v57 }
 0x57f   : > { %v1745_v15 = vpop.xlane.xlu1 %1744  ;;  %v4494_v4 = vadd.f32 %v1790_v3, %v1452_v26  ;;  %v1791_v35 = vmul.f32 %v3320_v25, %v4433_v36  ;;  %v2002_v26 = vld [vmem:[#allocation15 + $0x30] sm:$0xff] }
 0x580   : > { %v3322_v50 = vpop.eup %3321  ;;  %3331 = vrsqrt.f32 %v1761_v5  ;;  %v1766_v60 = vmax.f32 %v1745_v15, 1e-24  ;;  %v4765_v25 = vld [vmem:[#allocation29_spill] sm:$0xff] }
 0x581   : > { %v1747_v16 = vpop.xlane.xlu0 %1746  ;;  %v2014_v13 = vmul.f32 %v1998_v8, %v4494_v4  ;;  %v4500_v1 = vadd.f32 %v1791_v35, %v1453_v17  ;;  %v1788_v42 = vmul.f32 %v3322_v50, %v4429_v62  ;;  %v1457_v5 = vadd.f32 %v4384_v52, %v4765_v25  ;;  %v4766_v17 = vld [vmem:[#allocation27_spill] sm:$0xff] }
 0x582   : > { %v3324_v45 = vpop.eup %3323  ;;  %3333 = vrsqrt.f32 %v1766_v60  ;;  %v1767_v48 = vmax.f32 %v1747_v16, 1e-24  ;;  %v2000_v52 = vld [vmem:[#allocation15 + $0x20] sm:$0xff] }
 0x583   : > { %2032 = vadd.xlane.f32.xlu1 %v2014_v13  ;;  %v1741_v36 = vpop.xlane.xlu1 %1740  ;;  %v2015_v9 = vmul.f32 %v1999_v43, %v4500_v1  ;;  %v4506_v41 = vadd.f32 %v1788_v42, %v1450_v59  ;;  %v1789_v47 = vmul.f32 %v3324_v45, %v4435_v39  ;;  %v4767_v45 = vld [vmem:[#allocation28_spill] sm:$0xff] }
 0x584   : > { %v3326_v55 = vpop.eup %3325  ;;  %3335 = vrsqrt.f32 %v1767_v48  ;;  %v1764_v34 = vmax.f32 %v1741_v36, 1e-24  ;;  %v1455_v48 = vadd.f32 %v4376_v6, %v4767_v45  ;;  %v4768_v36 = vld [vmem:[#allocation34_spill] sm:$0xff]  ;;  %v4774_v45 = vld [vmem:[#allocation37_spill] sm:$0xff] }
 0x585   : > { %v1743_v62 = vpop.xlane.xlu0 %1742  ;;  %2034 = vadd.xlane.f32.xlu0 %v2015_v9  ;;  %v2012_v10 = vmul.f32 %v1996_v37, %v4506_v41  ;;  %v4512_v56 = vadd.f32 %v1789_v47, %v1451_v12  ;;  %v1794_v33 = vmul.f32 %v3326_v55, %v4443_v51  ;;  %v1454_v51 = vadd.f32 %v4373_v38, %v4766_v17  ;;  %v2001_v12 = vld [vmem:[#allocation15 + $0x28] sm:$0xff] }
 0x586   : > { %v3328_v11 = vpop.eup %3327  ;;  %3337 = vrsqrt.f32 %v1764_v34  ;;  %v1765_v30 = vmax.f32 %v1743_v62, 1e-24  ;;  %v2006_v62 = vld [vmem:[#allocation15 + $0x50] sm:$0xff] }
 0x587   : > { %2028 = vadd.xlane.f32.xlu1 %v2012_v10  ;;  %v2013_v39 = vmul.f32 %v1997_v24, %v4512_v56  ;;  %v4518_v3 = vadd.f32 %v1794_v33, %v1456_v58  ;;  %v1795_v8 = vmul.f32 %v3328_v11, %v4449_v7  ;;  %v4769_v10 = vld [vmem:[#allocation33_spill] sm:$0xff]  ;;  %v2007_v11 = vld [vmem:[#allocation15 + $0x58] sm:$0xff] }
 0x588   : > { %v3330_v15 = vpop.eup %3329  ;;  %3339 = vrsqrt.f32 %v1765_v30  ;;  %v1749_v44 = vpop.xlane.xlu1 %1748  ;;  %v1461_v6 = vadd.f32 %v4400_v22, %v4769_v10 }
 0x589   : > { %v1768_v35 = vmax.f32 %v1749_v44, 1e-24  ;;  %2030 = vadd.xlane.f32.xlu0 %v2013_v39  ;;  %v2018_v50 = vmul.f32 %v2002_v26, %v4518_v3  ;;  %v4526_v60 = vadd.f32 %v1795_v8, %v1457_v5  ;;  %v1792_v43 = vmul.f32 %v3330_v15, %v4445_v54  ;;  %v2004_v5 = vld [vmem:[#allocation15 + $0x40] sm:$0xff]  ;;  %v4771_v15 = vld [vmem:[#allocation32_spill] sm:$0xff] }
 0x58a   : > { %v3332_v16 = vpop.eup %3331  ;;  %v1751_v13 = vpop.xlane.xlu0 %1750  ;;  %v1460_v54 = vadd.f32 %v4397_v21, %v4768_v36  ;;  %v1459_v44 = vadd.f32 %v4392_v32, %v4771_v15  ;;  %v2066_v15 = vld [vmem:[#allocation7 + $0x30] sm:$0xff] }
 0x58b   : > { %3341 = vrsqrt.f32 %v1768_v35  ;;  %v1769_v7 = vmax.f32 %v1751_v13, 1e-24  ;;  %2040 = vadd.xlane.f32.xlu1 %v2018_v50  ;;  %v2019_v57 = vmul.f32 %v2003_v19, %v4526_v60  ;;  %v4530_v59 = vadd.f32 %v1792_v43, %v1454_v51  ;;  %v2005_v19 = vld [vmem:[#allocation15 + $0x48] sm:$0xff] }
 0x58c   : > { %v3334_v42 = vpop.eup %3333  ;;  %v1753_v38 = vpop.xlane.xlu1 %1752  ;;  %v1793_v37 = vmul.f32 %v3332_v16, %v4453_v29 }
 0x58d   : > { %3343 = vrsqrt.f32 %v1769_v7  ;;  %v1770_v9 = vmax.f32 %v1753_v38, 1e-24  ;;  %2042 = vadd.xlane.f32.xlu0 %v2019_v57  ;;  %v2016_v61 = vmul.f32 %v2000_v52, %v4530_v59  ;;  %v1798_v47 = vmul.f32 %v3334_v42, %v4459_v31  ;;  %v4770_v31 = vld [vmem:[#allocation31_spill] sm:$0xff]  ;;  %v4773_v52 = vld [vmem:[#allocation36_spill] sm:$0xff] }
 0x58e   : > { %v3336_v55 = vpop.eup %3335  ;;  %v1755_v34 = vpop.xlane.xlu0 %1754  ;;  %v4539_v24 = vadd.f32 %v1793_v37, %v1455_v48  ;;  %v1458_v30 = vadd.f32 %v4389_v14, %v4770_v31  ;;  %v1463_v32 = vadd.f32 %v4408_v28, %v4773_v52  ;;  %v2009_v42 = vld [vmem:[#allocation15 + $0x68] sm:$0xff]  ;;  %v2010_v37 = vld [vmem:[#allocation15 + $0x70] sm:$0xff]  ;;  %v4775_v28 = vld [vmem:[#allocation38_spill] sm:$0xff] }
 0x58f   : > { %3345 = vrsqrt.f32 %v1770_v9  ;;  %v1771_v29 = vmax.f32 %v1755_v34, 1e-24  ;;  %2036 = vadd.xlane.f32.xlu1 %v2016_v61  ;;  %v4543_v21 = vadd.f32 %v1798_v47, %v1460_v54  ;;  %v1799_v2 = vmul.f32 %v3336_v55, %v4465_v0  ;;  %v2011_v61 = vld [vmem:[#allocation15 + $0x78] sm:$0xff]  ;;  %v2061_v31 = vld [vmem:[#allocation7 + $0x8] sm:$0xff] }
 0x590   : > { %v3338_v58 = vpop.eup %3337  ;;  %v2017_v33 = vmul.f32 %v2001_v12, %v4539_v24  ;;  %v3643_v34 = vmov 0  }
 0x591   : > { %3347 = vrsqrt.f32 %v1771_v29  ;;  %v2022_v26 = vmul.f32 %v2006_v62, %v4543_v21  ;;  %v4550_v39 = vadd.f32 %v1799_v2, %v1461_v6  ;;  %v1796_v22 = vmul.f32 %v3338_v58, %v4463_v20  ;;  %v4772_v20 = vld [vmem:[#allocation35_spill] sm:$0xff]  ;;  %3187 = vset.pattern.permute.xlu1 %v3643_v34  ;;  %3188 = vset.pattern.permute.xlu0 %v3643_v34  ;;  %v2063_v62 = vld [vmem:[#allocation7 + $0x18] sm:$0xff] }
 0x592   : > { %v3340_v25 = vpop.eup %3339  ;;  %2038 = vadd.xlane.f32.xlu0 %v2017_v33  ;;  %v1462_v50 = vadd.f32 %v4405_v27, %v4772_v20  ;;  %v1464_v27 = vadd.f32 %v4413_v46, %v4774_v45  ;;  %v2008_v46 = vld [vmem:[#allocation15 + $0x60] sm:$0xff] }
 0x593   : > { %2048 = vadd.xlane.f32.xlu1 %v2022_v26  ;;  %v2023_v0 = vmul.f32 %v2007_v11, %v4550_v39  ;;  %v4554_v8 = vadd.f32 %v1796_v22, %v1458_v30  ;;  %v1797_v14 = vmul.f32 %v3340_v25, %v4471_v63  ;;  %v2060_v33 = vld [vmem:[#allocation7] sm:$0xff] }
 0x595   : > { %v3342_v17 = vpop.eup %3341  ;;  %v2020_v51 = vmul.f32 %v2004_v5, %v4554_v8  ;;  %v4560_v35 = vadd.f32 %v1797_v14, %v1459_v44 }
 0x596   : > { %2050 = vadd.xlane.f32.xlu0 %v2023_v0  ;;  %v1800_v43 = vmul.f32 %v3342_v17, %v4477_v49 }
 0x597   : > { %v3344_v16 = vpop.eup %3343  ;;  %2044 = vadd.xlane.f32.xlu1 %v2020_v51  ;;  %v2021_v13 = vmul.f32 %v2005_v19, %v4560_v35 }
 0x598   : > { %v1801_v63 = vmul.f32 %v3344_v16, %v4483_v40  ;;  %v4569_v7 = vadd.f32 %v1800_v43, %v1462_v50  ;;  %v1465_v40 = vadd.f32 %v4416_v23, %v4775_v28  ;;  %v2062_v23 = vld [vmem:[#allocation7 + $0x10] sm:$0xff] }
 0x599   : > { %v3346_v57 = vpop.eup %3345 }
 0x59a   : > { %2046 = vadd.xlane.f32.xlu0 %v2021_v13  ;;  %v4571_v38 = vadd.f32 %v1801_v63, %v1463_v32  ;;  %v1802_v49 = vmul.f32 %v3346_v57, %v4475_v18  ;;  %v2024_v55 = vmul.f32 %v2008_v46, %v4569_v7  ;;  %v2067_v13 = vld [vmem:[#allocation7 + $0x38] sm:$0xff]  ;;  %v2064_v57 = vld [vmem:[#allocation7 + $0x20] sm:$0xff]  ;;  %v2070_v46 = vld [vmem:[#allocation7 + $0x50] sm:$0xff] }
 0x59b   : > { %v3348_v48 = vpop.eup %3347 }
 0x59c   : > { %v2025_v36 = vmul.f32 %v2009_v42, %v4571_v38  ;;  %v4577_v54 = vadd.f32 %v1802_v49, %v1464_v27  ;;  %v1803_v9 = vmul.f32 %v3348_v48, %v4481_v53 }
 0x59e   : > { %2054 = vadd.xlane.f32.xlu0 %v2025_v36  ;;  %v2026_v12 = vmul.f32 %v2010_v37, %v4577_v54  ;;  %v4583_v47 = vadd.f32 %v1803_v9, %v1465_v40  ;;  %v2065_v9 = vld [vmem:[#allocation7 + $0x28] sm:$0xff] }
 0x5a0   : > { %2056 = vadd.xlane.f32.xlu1 %v2026_v12  ;;  %v2027_v18 = vmul.f32 %v2011_v61, %v4583_v47 }
 0x5a2   : > { %2058 = vadd.xlane.f32.xlu0 %v2027_v18  ;;  %v2190_v18 = vld [vmem:[#allocation8 + $0x10] sm:$0xff] }
 0x5a4   : > { %2052 = vadd.xlane.f32.xlu1 %v2024_v55 }
 0x610   : > { %v2033_v53 = vpop.xlane.xlu1 %2032 }
 0x611   : > { %v2078_v10 = vmax.f32 %v2062_v23, %v2033_v53 }
 0x612   : > { %v2035_v6 = vpop.xlane.xlu0 %2034 }
 0x613   : > { %v2094_v29 = vsub.f32 %v2062_v23, %v2078_v10  ;;  %v2142_v2 = vsub.f32 %v2033_v53, %v2078_v10  ;;  %2495 = vst.msk [vmem:[#allocation7 + $0x10] sm:$0xff] %vm2236_vm1, %v2078_v10  ;;  %v2079_v58 = vmax.f32 %v2063_v62, %v2035_v6 }
 0x614   : > { %v2029_v11 = vpop.xlane.xlu1 %2028 }
 0x615   : > { %v2112_v30 = vmul.f32 1.442695, %v2094_v29  ;;  %v2160_v26 = vmul.f32 1.442695, %v2142_v2  ;;  %v2095_v22 = vsub.f32 %v2063_v62, %v2079_v58  ;;  %v2143_v25 = vsub.f32 %v2035_v6, %v2079_v58  ;;  %2496 = vst.msk [vmem:[#allocation7 + $0x18] sm:$0xff] %vm2236_vm1, %v2079_v58  ;;  %v2191_v2 = vld [vmem:[#allocation8 + $0x18] sm:$0xff] }
 0x616   : > { %v2076_v5 = vmax.f32 %v2060_v33, %v2029_v11  ;;  %v2031_v0 = vpop.xlane.xlu0 %2030 }
 0x617   : > { %3349 = vpow2.f32 %v2112_v30  ;;  %v2114_v44 = vmul.f32 1.442695, %v2095_v22  ;;  %v2162_v14 = vmul.f32 1.442695, %v2143_v25  ;;  %v2077_v19 = vmax.f32 %v2061_v31, %v2031_v0 }
 0x618   : > { %3351 = vpow2.f32 %v2160_v26  ;;  %v2092_v17 = vsub.f32 %v2060_v33, %v2076_v5  ;;  %v2140_v51 = vsub.f32 %v2029_v11, %v2076_v5  ;;  %2493 = vst.msk [vmem:[#allocation7] sm:$0xff] %vm2236_vm1, %v2076_v5  ;;  %v2041_v20 = vpop.xlane.xlu1 %2040 }
 0x619   : > { %3353 = vpow2.f32 %v2114_v44  ;;  %v2093_v50 = vsub.f32 %v2061_v31, %v2077_v19  ;;  %v2141_v43 = vsub.f32 %v2031_v0, %v2077_v19  ;;  %2494 = vst.msk [vmem:[#allocation7 + $0x8] sm:$0xff] %vm2236_vm1, %v2077_v19  ;;  %v2082_v16 = vmax.f32 %v2066_v15, %v2041_v20 }
 0x61a   : > { %3355 = vpow2.f32 %v2162_v14  ;;  %v2108_v52 = vmul.f32 1.442695, %v2092_v17  ;;  %v2156_v32 = vmul.f32 1.442695, %v2140_v51  ;;  %v2043_v63 = vpop.xlane.xlu0 %2042  ;;  %v2068_v14 = vld [vmem:[#allocation7 + $0x40] sm:$0xff] }
 0x61b   : > { %v2110_v42 = vmul.f32 1.442695, %v2093_v50  ;;  %v2158_v45 = vmul.f32 1.442695, %v2141_v43  ;;  %v2098_v27 = vsub.f32 %v2066_v15, %v2082_v16  ;;  %v2146_v49 = vsub.f32 %v2041_v20, %v2082_v16  ;;  %2499 = vst.msk [vmem:[#allocation7 + $0x30] sm:$0xff] %vm2236_vm1, %v2082_v16  ;;  %v2071_v15 = vld [vmem:[#allocation7 + $0x58] sm:$0xff] }
 0x61c   : > { %3357 = vpow2.f32 %v2108_v52  ;;  %v2083_v48 = vmax.f32 %v2067_v13, %v2043_v63  ;;  %v2037_v37 = vpop.xlane.xlu1 %2036  ;;  %v2188_v20 = vld [vmem:[#allocation8] sm:$0xff] }
 0x61d   : > { %3359 = vpow2.f32 %v2156_v32  ;;  %v2120_v36 = vmul.f32 1.442695, %v2098_v27  ;;  %v2168_v28 = vmul.f32 1.442695, %v2146_v49  ;;  %v2080_v40 = vmax.f32 %v2064_v57, %v2037_v37 }
 0x61e   : > { %3361 = vpow2.f32 %v2110_v42  ;;  %v2099_v61 = vsub.f32 %v2067_v13, %v2083_v48  ;;  %v2147_v12 = vsub.f32 %v2043_v63, %v2083_v48  ;;  %2500 = vst.msk [vmem:[#allocation7 + $0x38] sm:$0xff] %vm2236_vm1, %v2083_v48  ;;  %v2069_v48 = vld [vmem:[#allocation7 + $0x48] sm:$0xff] }
 0x61f   : > { %3363 = vpow2.f32 %v2158_v45  ;;  %v2096_v55 = vsub.f32 %v2064_v57, %v2080_v40  ;;  %v2144_v34 = vsub.f32 %v2037_v37, %v2080_v40  ;;  %2497 = vst.msk [vmem:[#allocation7 + $0x20] sm:$0xff] %vm2236_vm1, %v2080_v40  ;;  %v2039_v23 = vpop.xlane.xlu0 %2038  ;;  %v2189_v57 = vld [vmem:[#allocation8 + $0x8] sm:$0xff] }
 0x620   : > { %3365 = vpow2.f32 %v2120_v36  ;;  %v2122_v53 = vmul.f32 1.442695, %v2099_v61  ;;  %v2170_v62 = vmul.f32 1.442695, %v2147_v12  ;;  %v2081_v10 = vmax.f32 %v2065_v9, %v2039_v23  ;;  %v2049_v6 = vpop.xlane.xlu1 %2048 }
 0x621   : > { %v3350_v29 = vpop.eup %3349  ;;  %3367 = vpow2.f32 %v2168_v28  ;;  %v2116_v58 = vmul.f32 1.442695, %v2096_v55  ;;  %v2164_v33 = vmul.f32 1.442695, %v2144_v34  ;;  %v2086_v11 = vmax.f32 %v2070_v46, %v2049_v6  ;;  %v2194_v28 = vld [vmem:[#allocation8 + $0x30] sm:$0xff]  ;;  %v2195_v55 = vld [vmem:[#allocation8 + $0x38] sm:$0xff] }
 0x622   : > { %v3352_v31 = vpop.eup %3351  ;;  %v2206_v30 = vmul.f32 %v3350_v29, %v2190_v18  ;;  %3369 = vpow2.f32 %v2122_v53  ;;  %v2097_v26 = vsub.f32 %v2065_v9, %v2081_v10  ;;  %v2145_v22 = vsub.f32 %v2039_v23, %v2081_v10  ;;  %2498 = vst.msk [vmem:[#allocation7 + $0x28] sm:$0xff] %vm2236_vm1, %v2081_v10  ;;  %2281 = vperm.xlu1 %3187, %v3350_v29   ;;  %v2073_v23 = vld [vmem:[#allocation7 + $0x68] sm:$0xff] }
 0x623   : > { %v4595_v25 = vpop.eup %3353  ;;  %3371 = vpow2.f32 %v2170_v62  ;;  %v2102_v5 = vsub.f32 %v2070_v46, %v2086_v11  ;;  %v2150_v0 = vsub.f32 %v2049_v6, %v2086_v11  ;;  %2503 = vst.msk [vmem:[#allocation7 + $0x50] sm:$0xff] %vm2236_vm1, %v2086_v11  ;;  %v2051_v44 = vpop.xlane.xlu0 %2050 }
 0x624   : > { %v3356_v19 = vpop.eup %3355  ;;  %v2222_v17 = vadd.f32 %v3352_v31, %v2206_v30  ;;  %v2207_v51 = vmul.f32 %v4595_v25, %v2191_v2  ;;  %3373 = vpow2.f32 %v2116_v58  ;;  %v2118_v50 = vmul.f32 1.442695, %v2097_v26  ;;  %v2045_v43 = vpop.xlane.xlu1 %2044  ;;  %v2192_v26 = vld [vmem:[#allocation8 + $0x20] sm:$0xff] }
 0x625   : > { %3375 = vpow2.f32 %v2164_v33  ;;  %v2166_v16 = vmul.f32 1.442695, %v2145_v22  ;;  %v2128_v13 = vmul.f32 1.442695, %v2102_v5  ;;  %v2176_v52 = vmul.f32 1.442695, %v2150_v0  ;;  %2382 = vperm.xlu0 %3188, %v3356_v19  }
 0x626   : > { %v3358_v32 = vpop.eup %3357  ;;  %2239 = vst.msk [vmem:[#allocation8 + $0x10] sm:$0xff] %vm2236_vm1, %v2222_v17  ;;  %v2223_v63 = vadd.f32 %v3356_v19, %v2207_v51  ;;  %3377 = vpow2.f32 %v2118_v50  ;;  %v2087_v42 = vmax.f32 %v2071_v15, %v2051_v44  ;;  %v2084_v45 = vmax.f32 %v2068_v14, %v2045_v43  ;;  %2377 = vperm.xlu1 %3187, %v3352_v31   ;;  %v2074_v19 = vld [vmem:[#allocation7 + $0x70] sm:$0xff]  ;;  %v2075_v51 = vld [vmem:[#allocation7 + $0x78] sm:$0xff]  ;;  %v2193_v50 = vld [vmem:[#allocation8 + $0x28] sm:$0xff] }
 0x627   : > { %v3360_v27 = vpop.eup %3359  ;;  %v2204_v49 = vmul.f32 %v3358_v32, %v2188_v20  ;;  %3379 = vpow2.f32 %v2166_v16  ;;  %v2047_v37 = vpop.xlane.xlu0 %2046 }
 0x628   : > { %v3362_v36 = vpop.eup %3361  ;;  %2240 = vst.msk [vmem:[#allocation8 + $0x18] sm:$0xff] %vm2236_vm1, %v2223_v63  ;;  %3381 = vpow2.f32 %v2128_v13  ;;  %v2103_v40 = vsub.f32 %v2071_v15, %v2087_v42  ;;  %v2151_v9 = vsub.f32 %v2051_v44, %v2087_v42  ;;  %2504 = vst.msk [vmem:[#allocation7 + $0x58] sm:$0xff] %vm2236_vm1, %v2087_v42  ;;  %v2100_v61 = vsub.f32 %v2068_v14, %v2084_v45 }
 0x629   : > { %2501 = vst.msk [vmem:[#allocation7 + $0x40] sm:$0xff] %vm2236_vm1, %v2084_v45  ;;  %v3364_v12 = vpop.eup %3363  ;;  %v2220_v46 = vadd.f32 %v3360_v27, %v2204_v49  ;;  %v2205_v18 = vmul.f32 %v3362_v36, %v2189_v57  ;;  %3383 = vpow2.f32 %v2176_v52  ;;  %v2148_v34 = vsub.f32 %v2045_v43, %v2084_v45  ;;  %2276 = vperm.xlu0 %3188, %v3362_v36   ;;  %v2198_v49 = vld [vmem:[#allocation8 + $0x50] sm:$0xff] }
 0x62a   : > { %v4603_v53 = vpop.eup %3365  ;;  %v2130_v62 = vmul.f32 1.442695, %v2103_v40  ;;  %v2178_v10 = vmul.f32 1.442695, %v2151_v9  ;;  %v2124_v6 = vmul.f32 1.442695, %v2100_v61  ;;  %v2085_v29 = vmax.f32 %v2069_v48, %v2047_v37  ;;  %2271 = vperm.xlu1 %3187, %v3358_v32  }
 0x62b   : > { %v4605_v2 = vpop.eup %3367  ;;  %2237 = vst.msk [vmem:[#allocation8] sm:$0xff] %vm2236_vm1, %v2220_v46  ;;  %v2221_v58 = vadd.f32 %v3364_v12, %v2205_v18  ;;  %v2210_v33 = vmul.f32 %v4603_v53, %v2194_v28  ;;  %v2172_v11 = vmul.f32 1.442695, %v2148_v34  ;;  %v2055_v31 = vpop.xlane.xlu0 %2054  ;;  %v2072_v61 = vld [vmem:[#allocation7 + $0x60] sm:$0xff] }
 0x62c   : > { %v4609_v30 = vpop.eup %3369  ;;  %3385 = vpow2.f32 %v2130_v62  ;;  %v2101_v22 = vsub.f32 %v2069_v48, %v2085_v29  ;;  %v2149_v5 = vsub.f32 %v2047_v37, %v2085_v29  ;;  %2502 = vst.msk [vmem:[#allocation7 + $0x48] sm:$0xff] %vm2236_vm1, %v2085_v29  ;;  %v2089_v0 = vmax.f32 %v2073_v23, %v2055_v31 }
 0x62d   : > { %v3372_v15 = vpop.eup %3371  ;;  %2238 = vst.msk [vmem:[#allocation8 + $0x8] sm:$0xff] %vm2236_vm1, %v2221_v58  ;;  %v2226_v44 = vadd.f32 %v4605_v2, %v2210_v33  ;;  %v2211_v14 = vmul.f32 %v4609_v30, %v2195_v55  ;;  %3387 = vpow2.f32 %v2178_v10  ;;  %2372 = vperm.xlu0 %3188, %v3364_v12   ;;  %v2057_v17 = vpop.xlane.xlu1 %2056 }
 0x62e   : > { %v4615_v20 = vpop.eup %3373  ;;  %3389 = vpow2.f32 %v2124_v6  ;;  %v2126_v43 = vmul.f32 1.442695, %v2101_v22  ;;  %v2174_v16 = vmul.f32 1.442695, %v2149_v5  ;;  %v2105_v13 = vsub.f32 %v2073_v23, %v2089_v0  ;;  %2506 = vst.msk [vmem:[#allocation7 + $0x68] sm:$0xff] %vm2236_vm1, %v2089_v0  ;;  %2367 = vperm.xlu1 %3187, %v3360_v27   ;;  %v2199_v6 = vld [vmem:[#allocation8 + $0x58] sm:$0xff] }
 0x62f   : > { %v4618_v52 = vpop.eup %3375  ;;  %2243 = vst.msk [vmem:[#allocation8 + $0x30] sm:$0xff] %vm2236_vm1, %v2226_v44  ;;  %v2227_v32 = vadd.f32 %v3372_v15, %v2211_v14  ;;  %v2208_v63 = vmul.f32 %v4615_v20, %v2192_v26  ;;  %3391 = vpow2.f32 %v2172_v11  ;;  %v2153_v57 = vsub.f32 %v2055_v31, %v2089_v0  ;;  %v2059_v42 = vpop.xlane.xlu0 %2058  ;;  %v2196_v5 = vld [vmem:[#allocation8 + $0x40] sm:$0xff] }
 0x630   : > { %v4622_v45 = vpop.eup %3377  ;;  %3393 = vpow2.f32 %v2126_v43  ;;  %v2134_v48 = vmul.f32 1.442695, %v2105_v13  ;;  %v2090_v37 = vmax.f32 %v2074_v19, %v2057_v17  ;;  %v2091_v36 = vmax.f32 %v2075_v51, %v2059_v42 }
 0x631   : > { %v3380_v28 = vpop.eup %3379  ;;  %2244 = vst.msk [vmem:[#allocation8 + $0x38] sm:$0xff] %vm2236_vm1, %v2227_v32  ;;  %v2224_v27 = vadd.f32 %v4618_v52, %v2208_v63  ;;  %v2209_v40 = vmul.f32 %v4622_v45, %v2193_v50  ;;  %3395 = vpow2.f32 %v2174_v16  ;;  %v2182_v9 = vmul.f32 1.442695, %v2153_v57  ;;  %2402 = vperm.xlu0 %3188, %v3372_v15   ;;  %v2053_v12 = vpop.xlane.xlu1 %2052  ;;  %v2201_v63 = vld [vmem:[#allocation8 + $0x68] sm:$0xff] }
 0x632   : > { %v4627_v46 = vpop.eup %3381  ;;  %3397 = vpow2.f32 %v2134_v48  ;;  %v2106_v18 = vsub.f32 %v2074_v19, %v2090_v37  ;;  %v2154_v55 = vsub.f32 %v2057_v17, %v2090_v37  ;;  %2507 = vst.msk [vmem:[#allocation7 + $0x70] sm:$0xff] %vm2236_vm1, %v2090_v37  ;;  %v2107_v34 = vsub.f32 %v2075_v51, %v2091_v36  ;;  %2508 = vst.msk [vmem:[#allocation7 + $0x78] sm:$0xff] %vm2236_vm1, %v2091_v36  ;;  %v2197_v17 = vld [vmem:[#allocation8 + $0x48] sm:$0xff] }
 0x633   : > { %2286 = vperm.xlu1 %3187, %v4595_v25   ;;  %v4632_v23 = vpop.eup %3383  ;;  %2241 = vst.msk [vmem:[#allocation8 + $0x20] sm:$0xff] %vm2236_vm1, %v2224_v27  ;;  %v2225_v62 = vadd.f32 %v3380_v28, %v2209_v40  ;;  %v2214_v10 = vmul.f32 %v4627_v46, %v2198_v49  ;;  %3399 = vpow2.f32 %v2182_v9  ;;  %v2155_v29 = vsub.f32 %v2059_v42, %v2091_v36  ;;  %v2203_v40 = vld [vmem:[#allocation8 + $0x78] sm:$0xff] }
 0x634   : > { %v2136_v58 = vmul.f32 1.442695, %v2106_v18  ;;  %v2184_v33 = vmul.f32 1.442695, %v2154_v55  ;;  %v2138_v11 = vmul.f32 1.442695, %v2107_v34  ;;  %v2088_v31 = vmax.f32 %v2072_v61, %v2053_v12 }
 0x635   : > { %2242 = vst.msk [vmem:[#allocation8 + $0x28] sm:$0xff] %vm2236_vm1, %v2225_v62  ;;  %v2230_v26 = vadd.f32 %v4632_v23, %v2214_v10  ;;  %v2186_v22 = vmul.f32 1.442695, %v2155_v29  ;;  %2392 = vperm.xlu0 %3188, %v3380_v28   ;;  %v2202_v28 = vld [vmem:[#allocation8 + $0x70] sm:$0xff]  ;;  %v2200_v18 = vld [vmem:[#allocation8 + $0x60] sm:$0xff] }
 0x636   : > { %v3386_v25 = vpop.eup %3385  ;;  %3401 = vpow2.f32 %v2136_v58  ;;  %v2104_v0 = vsub.f32 %v2072_v61, %v2088_v31  ;;  %v2152_v15 = vsub.f32 %v2053_v12, %v2088_v31  ;;  %2505 = vst.msk [vmem:[#allocation7 + $0x60] sm:$0xff] %vm2236_vm1, %v2088_v31 }
 0x637   : > { %2301 = vperm.xlu1 %3187, %v4603_v53   ;;  %v3388_v44 = vpop.eup %3387  ;;  %2247 = vst.msk [vmem:[#allocation8 + $0x50] sm:$0xff] %vm2236_vm1, %v2230_v26  ;;  %v2215_v14 = vmul.f32 %v3386_v25, %v2199_v6  ;;  %3403 = vpow2.f32 %v2184_v33 }
 0x638   : > { %v3390_v19 = vpop.eup %3389  ;;  %3405 = vpow2.f32 %v2138_v11  ;;  %v2132_v51 = vmul.f32 1.442695, %v2104_v0  ;;  %v2180_v50 = vmul.f32 1.442695, %v2152_v15 }
 0x639   : > { %v3392_v43 = vpop.eup %3391  ;;  %v2231_v16 = vadd.f32 %v3388_v44, %v2215_v14  ;;  %v2212_v13 = vmul.f32 %v3390_v19, %v2196_v5  ;;  %3407 = vpow2.f32 %v2186_v22  ;;  %2326 = vperm.xlu0 %3188, %v3386_v25   ;;  %v2254_v25 = vld [vmem:[#allocation9 + $0x8] sm:$0xff] }
 0x63a   : > { %v3394_v32 = vpop.eup %3393  ;;  %3409 = vpow2.f32 %v2132_v51  ;;  %v2256_v51 = vld [vmem:[#allocation9 + $0x18] sm:$0xff] }
 0x63b   : > { %2397 = vperm.xlu1 %3187, %v4605_v2   ;;  %v3396_v53 = vpop.eup %3395  ;;  %2248 = vst.msk [vmem:[#allocation8 + $0x58] sm:$0xff] %vm2236_vm1, %v2231_v16  ;;  %v2228_v57 = vadd.f32 %v3392_v43, %v2212_v13  ;;  %v2213_v42 = vmul.f32 %v3394_v32, %v2197_v17  ;;  %3411 = vpow2.f32 %v2180_v50 }
 0x63c   : > { %v3398_v49 = vpop.eup %3397 }
 0x63d   : > { %v3400_v48 = vpop.eup %3399  ;;  %2245 = vst.msk [vmem:[#allocation8 + $0x40] sm:$0xff] %vm2236_vm1, %v2228_v57  ;;  %v2229_v37 = vadd.f32 %v3396_v53, %v2213_v42  ;;  %v2217_v36 = vmul.f32 %v3398_v49, %v2201_v63  ;;  %2422 = vperm.xlu0 %3188, %v3388_v44   ;;  %v2259_v57 = vld [vmem:[#allocation9 + $0x30] sm:$0xff] }
 0x63f   : > { %2291 = vperm.xlu1 %3187, %v4615_v20   ;;  %2246 = vst.msk [vmem:[#allocation8 + $0x48] sm:$0xff] %vm2236_vm1, %v2229_v37  ;;  %v2233_v27 = vadd.f32 %v3400_v48, %v2217_v36 }
 0x640   : > { %v3402_v2 = vpop.eup %3401 }
 0x641   : > { %v3404_v9 = vpop.eup %3403  ;;  %2250 = vst.msk [vmem:[#allocation8 + $0x68] sm:$0xff] %vm2236_vm1, %v2233_v27  ;;  %v2218_v61 = vmul.f32 %v3402_v2, %v2202_v28  ;;  %2316 = vperm.xlu0 %3188, %v3394_v32  }
 0x642   : > { %v3406_v12 = vpop.eup %3405 }
 0x643   : > { %2387 = vperm.xlu1 %3187, %v4618_v52   ;;  %v3408_v55 = vpop.eup %3407  ;;  %v2234_v34 = vadd.f32 %v3404_v9, %v2218_v61  ;;  %v2219_v62 = vmul.f32 %v3406_v12, %v2203_v40  ;;  %v2255_v52 = vld [vmem:[#allocation9 + $0x10] sm:$0xff]  ;;  %v2257_v40 = vld [vmem:[#allocation9 + $0x20] sm:$0xff] }
 0x644   : > { %v3410_v10 = vpop.eup %3409 }
 0x645   : > { %2251 = vst.msk [vmem:[#allocation8 + $0x70] sm:$0xff] %vm2236_vm1, %v2234_v34  ;;  %v2235_v20 = vadd.f32 %v3408_v55, %v2219_v62  ;;  %v2216_v6 = vmul.f32 %v3410_v10, %v2200_v18  ;;  %2412 = vperm.xlu0 %3188, %v3396_v53   ;;  %v3412_v29 = vpop.eup %3411  ;;  %v2262_v18 = vld [vmem:[#allocation9 + $0x48] sm:$0xff]  ;;  %v2260_v34 = vld [vmem:[#allocation9 + $0x38] sm:$0xff] }
 0x647   : > { %2306 = vperm.xlu1 %3187, %v4609_v30   ;;  %2252 = vst.msk [vmem:[#allocation8 + $0x78] sm:$0xff] %vm2236_vm1, %v2235_v20  ;;  %v2232_v58 = vadd.f32 %v3412_v29, %v2216_v6 }
 0x649   : > { %2249 = vst.msk [vmem:[#allocation8 + $0x60] sm:$0xff] %vm2236_vm1, %v2232_v58  ;;  %2346 = vperm.xlu0 %3188, %v3406_v12  }
 0x64b   : > { %2296 = vperm.xlu1 %3187, %v4622_v45  }
 0x64d   : > { %2336 = vperm.xlu0 %3188, %v3398_v49  }
 0x64f   : > { %2321 = vperm.xlu1 %3187, %v4627_v46  }
 0x651   : > { %2432 = vperm.xlu0 %3188, %v3400_v48   ;;  %v2264_v48 = vld [vmem:[#allocation9 + $0x58] sm:$0xff] }
 0x653   : > { %2417 = vperm.xlu1 %3187, %v4632_v23   ;;  %v2253_v23 = vld [vmem:[#allocation9] sm:$0xff] }
 0x655   : > { %2442 = vperm.xlu0 %3188, %v3408_v55  }
 0x657   : > { %2311 = vperm.xlu1 %3187, %v3390_v19  }
 0x65b   : > { %2407 = vperm.xlu1 %3187, %v3392_v43  }
 0x65f   : > { %2341 = vperm.xlu1 %3187, %v3402_v2  }
 0x663   : > { %2331 = vperm.xlu1 %3187, %v3410_v10  }
 0x667   : > { %2427 = vperm.xlu1 %3187, %v3412_v29  }
 0x66b   : > { %2437 = vperm.xlu1 %3187, %v3404_v9  }
 0x6a1   : > { %v2282_v30 = vpop.permute.xlu1 %2281 }
 0x6a2   : > { %v2351_v31 = vmul.f32 %v2282_v30, %v2255_v52  ;;  %v2258_v30 = vld [vmem:[#allocation9 + $0x28] sm:$0xff] }
 0x6a4   : > { %v2383_v33 = vpop.permute.xlu0 %2382 }
 0x6a5   : > { %v2378_v11 = vpop.permute.xlu1 %2377  ;;  %v2448_v16 = vmul.f32 %v2383_v33, %v4500_v1 }
 0x6a6   : > { %v2447_v45 = vmul.f32 %v2378_v11, %v4494_v4 }
 0x6a8   : > { %v2463_v26 = vadd.f32 %v2447_v45, %v2351_v31  ;;  %v2277_v22 = vpop.permute.xlu0 %2276 }
 0x6a9   : > { %v2272_v46 = vpop.permute.xlu1 %2271  ;;  %v2350_v0 = vmul.f32 %v2277_v22, %v2254_v25 }
 0x6aa   : > { %2479 = vst [vmem:[#allocation9 + $0x10] sm:$0xff] %v2463_v26  ;;  %v2349_v14 = vmul.f32 %v2272_v46, %v2253_v23  ;;  %v2263_v46 = vld [vmem:[#allocation9 + $0x50] sm:$0xff] }
 0x6ac   : > { %v2373_v5 = vpop.permute.xlu0 %2372 }
 0x6ad   : > { %v2446_v15 = vmul.f32 %v2373_v5, %v4512_v56  ;;  %v2368_v44 = vpop.permute.xlu1 %2367 }
 0x6ae   : > { %v2445_v19 = vmul.f32 %v2368_v44, %v4506_v41 }
 0x6af   : > { %v2462_v17 = vadd.f32 %v2446_v15, %v2350_v0  ;;  %v2268_v0 = vld [vmem:[#allocation9 + $0x78] sm:$0xff] }
 0x6b0   : > { %v2461_v50 = vadd.f32 %v2445_v19, %v2349_v14  ;;  %v2403_v43 = vpop.permute.xlu0 %2402 }
 0x6b1   : > { %2478 = vst [vmem:[#allocation9 + $0x8] sm:$0xff] %v2462_v17 }
 0x6b2   : > { %v2287_v4 = vpop.permute.xlu1 %2286  ;;  %2477 = vst [vmem:[#allocation9] sm:$0xff] %v2461_v50 }
 0x6b3   : > { %v2352_v13 = vmul.f32 %v2287_v4, %v2256_v51  ;;  %v2261_v4 = vld [vmem:[#allocation9 + $0x40] sm:$0xff] }
 0x6b4   : > { %v2393_v63 = vpop.permute.xlu0 %2392 }
 0x6b5   : > { %v2464_v32 = vadd.f32 %v2448_v16, %v2352_v13  ;;  %v2450_v31 = vmul.f32 %v2393_v63, %v4539_v24 }
 0x6b6   : > { %v2302_v53 = vpop.permute.xlu1 %2301 }
 0x6b7   : > { %2480 = vst [vmem:[#allocation9 + $0x18] sm:$0xff] %v2464_v32  ;;  %v2355_v49 = vmul.f32 %v2302_v53, %v2259_v57  ;;  %v2265_v53 = vld [vmem:[#allocation9 + $0x60] sm:$0xff] }
 0x6b8   : > { %v2327_v56 = vpop.permute.xlu0 %2326 }
 0x6b9   : > { %v2360_v28 = vmul.f32 %v2327_v56, %v2264_v48 }
 0x6ba   : > { %v2398_v42 = vpop.permute.xlu1 %2397 }
 0x6bb   : > { %v2451_v41 = vmul.f32 %v2398_v42, %v4518_v3 }
 0x6bc   : > { %v2423_v36 = vpop.permute.xlu0 %2422 }
 0x6bd   : > { %v2467_v37 = vadd.f32 %v2451_v41, %v2355_v49  ;;  %v2456_v27 = vmul.f32 %v2423_v36, %v4550_v39  ;;  %v2452_v39 = vmul.f32 %v2403_v43, %v4526_v60  ;;  %v2267_v49 = vld [vmem:[#allocation9 + $0x70] sm:$0xff] }
 0x6be   : > { %v2292_v2 = vpop.permute.xlu1 %2291 }
 0x6bf   : > { %2483 = vst [vmem:[#allocation9 + $0x30] sm:$0xff] %v2467_v37  ;;  %v2472_v1 = vadd.f32 %v2456_v27, %v2360_v28  ;;  %v2353_v12 = vmul.f32 %v2292_v2, %v2257_v40  ;;  %v2513_v28 = vld [vmem:[#allocation8] sm:$0xff] (!%p2808_p10)  ;;  %v2516_v27 = vld [vmem:[#allocation8 + $0x18] sm:$0xff] (!%p2808_p10)  ;;  %v3644_v2 = vmov (!%p2808_p10), 0  }
 0x6c0   : > { %v2317_v9 = vpop.permute.xlu0 %2316  ;;  %3414 = vset.pattern.permute.xlu1 (!%p2808_p10), %v3644_v2  ;;  %3413 = vset.pattern.permute.xlu0 (!%p2808_p10), %v3644_v2  ;;  %v2517_v40 = vld [vmem:[#allocation8 + $0x20] sm:$0xff] (!%p2808_p10) }
 0x6c1   : > { %2488 = vst [vmem:[#allocation9 + $0x58] sm:$0xff] %v2472_v1  ;;  %v2358_v3 = vmul.f32 %v2317_v9, %v2262_v18  ;;  %v2518_v1 = vld [vmem:[#allocation8 + $0x28] sm:$0xff] (!%p2808_p10)  ;;  %v2519_v9 = vld [vmem:[#allocation8 + $0x30] sm:$0xff] (!%p2808_p10) }
 0x6c2   : > { %v2388_v61 = vpop.permute.xlu1 %2387  ;;  %v2522_v18 = vld [vmem:[#allocation8 + $0x48] sm:$0xff] (!%p2808_p10) }
 0x6c3   : > { %v2449_v55 = vmul.f32 %v2388_v61, %v4530_v59 }
 0x6c4   : > { %v2413_v10 = vpop.permute.xlu0 %2412 }
 0x6c5   : > { %v2465_v62 = vadd.f32 %v2449_v55, %v2353_v12  ;;  %v2454_v20 = vmul.f32 %v2413_v10, %v4560_v35  ;;  %v2266_v35 = vld [vmem:[#allocation9 + $0x68] sm:$0xff]  ;;  %v2524_v10 = vld [vmem:[#allocation8 + $0x58] sm:$0xff] (!%p2808_p10) }
 0x6c6   : > { %v2307_v6 = vpop.permute.xlu1 %2306 }
 0x6c7   : > { %2481 = vst [vmem:[#allocation9 + $0x20] sm:$0xff] %v2465_v62  ;;  %v2356_v29 = vmul.f32 %v2307_v6, %v2260_v34  ;;  %v2470_v58 = vadd.f32 %v2454_v20, %v2358_v3  ;;  %v2521_v34 = vld [vmem:[#allocation8 + $0x40] sm:$0xff] (!%p2808_p10)  ;;  %v2523_v20 = vld [vmem:[#allocation8 + $0x50] sm:$0xff] (!%p2808_p10) }
 0x6c8   : > { %v2347_v33 = vpop.permute.xlu0 %2346 }
 0x6c9   : > { %v2468_v52 = vadd.f32 %v2452_v39, %v2356_v29  ;;  %2486 = vst [vmem:[#allocation9 + $0x48] sm:$0xff] %v2470_v58  ;;  %v2364_v17 = vmul.f32 %v2347_v33, %v2268_v0  ;;  %v2526_v39 = vld [vmem:[#allocation8 + $0x68] sm:$0xff] (!%p2808_p10)  ;;  %v2525_v58 = vld [vmem:[#allocation8 + $0x60] sm:$0xff] (!%p2808_p10) }
 0x6ca   : > { %v2297_v11 = vpop.permute.xlu1 %2296 }
 0x6cb   : > { %2484 = vst [vmem:[#allocation9 + $0x38] sm:$0xff] %v2468_v52  ;;  %v2354_v59 = vmul.f32 %v2297_v11, %v2258_v30  ;;  %v2528_v52 = vld [vmem:[#allocation8 + $0x78] sm:$0xff] (!%p2808_p10)  ;;  %v2527_v11 = vld [vmem:[#allocation8 + $0x70] sm:$0xff] (!%p2808_p10) }
 0x6cc   : > { %v2337_v26 = vpop.permute.xlu0 %2336 }
 0x6cd   : > { %v2466_v45 = vadd.f32 %v2450_v31, %v2354_v59  ;;  %v2362_v60 = vmul.f32 %v2337_v26, %v2266_v35 }
 0x6ce   : > { %v2322_v22 = vpop.permute.xlu1 %2321 }
 0x6cf   : > { %2482 = vst [vmem:[#allocation9 + $0x28] sm:$0xff] %v2466_v45  ;;  %v2359_v15 = vmul.f32 %v2322_v22, %v2263_v46 }
 0x6d0   : > { %v2433_v25 = vpop.permute.xlu0 %2432 }
 0x6d1   : > { %v2458_v23 = vmul.f32 %v2433_v25, %v4571_v38  ;;  %v2547_v25 = vld [vmem:[#allocation9 + $0x10] sm:$0xff] (!%p2808_p10) }
 0x6d2   : > { %v2418_v5 = vpop.permute.xlu1 %2417 }
 0x6d3   : > { %v2455_v44 = vmul.f32 %v2418_v5, %v4543_v21  ;;  %v2474_v14 = vadd.f32 %v2458_v23, %v2362_v60  ;;  %v2545_v60 = vld [vmem:[#allocation9] sm:$0xff] (!%p2808_p10)  ;;  %v2659_v23 = vld [vmem:[#allocation13 + $0x10] sm:$0xff] (!%p2808_p10) }
 0x6d4   : > { %v2443_v24 = vpop.permute.xlu0 %2442 }
 0x6d5   : > { %v2471_v19 = vadd.f32 %v2455_v44, %v2359_v15  ;;  %2490 = vst [vmem:[#allocation9 + $0x68] sm:$0xff] %v2474_v14  ;;  %v2460_v51 = vmul.f32 %v2443_v24, %v4583_v47  ;;  %v2657_v15 = vld [vmem:[#allocation13] sm:$0xff] (!%p2808_p10) }
 0x6d6   : > { %v2312_v50 = vpop.permute.xlu1 %2311 }
 0x6d7   : > { %2487 = vst [vmem:[#allocation9 + $0x50] sm:$0xff] %v2471_v19  ;;  %v2476_v43 = vadd.f32 %v2460_v51, %v2364_v17  ;;  %v2357_v13 = vmul.f32 %v2312_v50, %v2261_v4  ;;  %v2548_v19 = vld [vmem:[#allocation9 + $0x18] sm:$0xff] (!%p2808_p10)  ;;  %v2546_v17 = vld [vmem:[#allocation9 + $0x8] sm:$0xff] (!%p2808_p10) }
 0x6d8   : > { %v2660_v50 = vld [vmem:[#allocation13 + $0x18] sm:$0xff] (!%p2808_p10) }
 0x6d9   : > { %2492 = vst [vmem:[#allocation9 + $0x78] sm:$0xff] %v2476_v43 }
 0x6da   : > { %v2408_v16 = vpop.permute.xlu1 %2407 }
 0x6db   : > { %v2453_v38 = vmul.f32 %v2408_v16, %v4554_v8  ;;  %v2515_v8 = vld [vmem:[#allocation8 + $0x10] sm:$0xff] (!%p2808_p10)  ;;  %v2658_v16 = vld [vmem:[#allocation13 + $0x8] sm:$0xff] (!%p2808_p10) }
 0x6dc   : > { %3415 = vrcp.f32 (!%p2808_p10), %v2515_v8 }
 0x6dd   : > { %v2469_v32 = vadd.f32 %v2453_v38, %v2357_v13  ;;  %3417 = vrcp.f32 (!%p2808_p10), %v2513_v28  ;;  %v2664_v28 = vld [vmem:[#allocation13 + $0x38] sm:$0xff] (!%p2808_p10) }
 0x6de   : > { %v2342_v63 = vpop.permute.xlu1 %2341  ;;  %3419 = vrcp.f32 (!%p2808_p10), %v2516_v27 }
 0x6df   : > { %2485 = vst [vmem:[#allocation9 + $0x40] sm:$0xff] %v2469_v32  ;;  %v2363_v41 = vmul.f32 %v2342_v63, %v2267_v49  ;;  %v2550_v32 = vld [vmem:[#allocation9 + $0x28] sm:$0xff] (!%p2808_p10)  ;;  %v2661_v49 = vld [vmem:[#allocation13 + $0x20] sm:$0xff] (!%p2808_p10) }
 0x6e2   : > { %v2332_v21 = vpop.permute.xlu1 %2331 }
 0x6e3   : > { %v2361_v56 = vmul.f32 %v2332_v21, %v2265_v53  ;;  %v2549_v21 = vld [vmem:[#allocation9 + $0x20] sm:$0xff] (!%p2808_p10) }
 0x6e6   : > { %v2428_v57 = vpop.permute.xlu1 %2427  ;;  %v3416_v61 = vpop.eup (!%p2808_p10), %3415 }
 0x6e7   : > { %v2457_v42 = vmul.f32 %v2428_v57, %v4569_v7  ;;  %v2514_v7 = vld [vmem:[#allocation8 + $0x8] sm:$0xff] (!%p2808_p10)  ;;  %v3418_v12 = vpop.eup (!%p2808_p10), %3417  ;;  %2573 = vperm.xlu1 (!%p2808_p10), %3414, %v3416_v61   ;;  %v2553_v61 = vld [vmem:[#allocation9 + $0x40] sm:$0xff] (!%p2808_p10) }
 0x6e8   : > { %3421 = vrcp.f32 (!%p2808_p10), %v2514_v7  ;;  %v3420_v55 = vpop.eup (!%p2808_p10), %3419  ;;  %2563 = vperm.xlu0 (!%p2808_p10), %3413, %v3418_v12   ;;  %v2662_v57 = vld [vmem:[#allocation13 + $0x28] sm:$0xff] (!%p2808_p10)  ;;  %v2663_v7 = vld [vmem:[#allocation13 + $0x30] sm:$0xff] (!%p2808_p10) }
 0x6e9   : > { %v2473_v47 = vadd.f32 %v2457_v42, %v2361_v56  ;;  %2512 = sbr.rel (%p2808_p10) target bundleno = 1936 (0x790), region = 60  ;;  %3423 = vrcp.f32 (!%p2808_p10), %v2518_v1 }
 0x6ea   : > { %v2438_v48 = vpop.permute.xlu1 %2437  ;;  %3425 = vrcp.f32 (!%p2808_p10), %v2517_v40 }
 0x6eb   : > { %2489 = vst [vmem:[#allocation9 + $0x60] sm:$0xff] %v2473_v47  ;;  %v2459_v37 = vmul.f32 %v2438_v48, %v4577_v54  ;;  %v2520_v54 = vld [vmem:[#allocation8 + $0x38] sm:$0xff] (!%p2808_p10)  ;;  %2578 = vperm.xlu1 (!%p2808_p10), %3414, %v3420_v55  }
 0x6ec   : > { %3427 = vrcp.f32 (!%p2808_p10), %v2520_v54  ;;  %v2554_v54 = vld [vmem:[#allocation9 + $0x48] sm:$0xff] (!%p2808_p10) }
 0x6ed   : > { %v2475_v36 = vadd.f32 %v2459_v37, %v2363_v41  ;;  %3429 = vrcp.f32 (!%p2808_p10), %v2519_v9  ;;  %v2552_v41 = vld [vmem:[#allocation9 + $0x38] sm:$0xff] (!%p2808_p10) }
 0x6ee   : > { %3431 = vrcp.f32 (!%p2808_p10), %v2522_v18  ;;  %v2666_v18 = vld [vmem:[#allocation13 + $0x48] sm:$0xff] (!%p2808_p10) }
 0x6ef   : > { %2491 = vst [vmem:[#allocation9 + $0x70] sm:$0xff] %v2475_v36  ;;  %3433 = vrcp.f32 (!%p2808_p10), %v2521_v34  ;;  %v2551_v36 = vld [vmem:[#allocation9 + $0x30] sm:$0xff] (!%p2808_p10) }
 0x6f0   : > { %3435 = vrcp.f32 %v2524_v10 }
 0x6f1   : > { %3437 = vrcp.f32 %v2523_v20  ;;  %v2556_v20 = vld [vmem:[#allocation9 + $0x58] sm:$0xff] }
 0x6f2   : > { %v3422_v62 = vpop.eup %3421  ;;  %3439 = vrcp.f32 %v2526_v39  ;;  %v2555_v39 = vld [vmem:[#allocation9 + $0x50] sm:$0xff] }
 0x6f3   : > { %v3424_v3 = vpop.eup %3423  ;;  %2568 = vperm.xlu0 %3413, %v3422_v62   ;;  %3441 = vrcp.f32 %v2525_v58  ;;  %v2665_v62 = vld [vmem:[#allocation13 + $0x40] sm:$0xff]  ;;  %v2668_v58 = vld [vmem:[#allocation13 + $0x58] sm:$0xff] }
 0x6f4   : > { %v3426_v6 = vpop.eup %3425  ;;  %2588 = vperm.xlu1 %3414, %v3424_v3   ;;  %3443 = vrcp.f32 %v2528_v52 }
 0x6f5   : > { %3445 = vrcp.f32 %v2527_v11 }
 0x6f6   : > { %v3428_v29 = vpop.eup %3427 }
 0x6f7   : > { %2583 = vperm.xlu0 %3413, %v3426_v6   ;;  %v3430_v30 = vpop.eup %3429 }
 0x6f8   : > { %2598 = vperm.xlu1 %3414, %v3428_v29   ;;  %v3432_v33 = vpop.eup %3431 }
 0x6f9   : > { %v3434_v31 = vpop.eup %3433 }
 0x6fa   : > { %v3436_v59 = vpop.eup %3435 }
 0x6fb   : > { %2593 = vperm.xlu0 %3413, %v3430_v30   ;;  %v3438_v45 = vpop.eup %3437 }
 0x6fc   : > { %2608 = vperm.xlu1 %3414, %v3432_v33   ;;  %v3440_v26 = vpop.eup %3439  ;;  %v2667_v33 = vld [vmem:[#allocation13 + $0x50] sm:$0xff] }
 0x6fd   : > { %v3442_v22 = vpop.eup %3441 }
 0x6fe   : > { %v3444_v35 = vpop.eup %3443 }
 0x6ff   : > { %2603 = vperm.xlu0 %3413, %v3434_v31   ;;  %v3446_v46 = vpop.eup %3445 }
 0x700   : > { %2618 = vperm.xlu1 %3414, %v3436_v59   ;;  %v2558_v59 = vld [vmem:[#allocation9 + $0x68] sm:$0xff] }
 0x703   : > { %2613 = vperm.xlu0 %3413, %v3438_v45  }
 0x704   : > { %2628 = vperm.xlu1 %3414, %v3440_v26   ;;  %v2557_v26 = vld [vmem:[#allocation9 + $0x60] sm:$0xff] }
 0x707   : > { %2623 = vperm.xlu0 %3413, %v3442_v22  }
 0x708   : > { %2638 = vperm.xlu1 %3414, %v3444_v35   ;;  %v2670_v35 = vld [vmem:[#allocation13 + $0x68] sm:$0xff] }
 0x70b   : > { %2633 = vperm.xlu0 %3413, %v3446_v46  }
 0x766   : > { %v2574_v5 = vpop.permute.xlu1 %2573 }
 0x767   : > { %v2643_v0 = vmul.f32 %v2574_v5, %v2547_v25  ;;  %v2564_v44 = vpop.permute.xlu0 %2563 }
 0x768   : > { %v2641_v14 = vmul.f32 %v2564_v44, %v2545_v60  ;;  %v2669_v60 = vld [vmem:[#allocation13 + $0x60] sm:$0xff]  ;;  %v2559_v44 = vld [vmem:[#allocation9 + $0x70] sm:$0xff] }
 0x769   : > { %v2675_v24 = vadd.f32 %v2659_v23, %v2643_v0  ;;  %v2560_v0 = vld [vmem:[#allocation9 + $0x78] sm:$0xff] }
 0x76a   : > { %v2673_v51 = vadd.f32 %v2657_v15, %v2641_v14  ;;  %v2579_v43 = vpop.permute.xlu1 %2578 }
 0x76b   : > { %2691 = vst [vmem:[#allocation18 + $0x10] sm:$0xff] %v2675_v24  ;;  %v2644_v4 = vmul.f32 %v2579_v43, %v2548_v19  ;;  %v2672_v19 = vld [vmem:[#allocation13 + $0x78] sm:$0xff] }
 0x76c   : > { %2689 = vst [vmem:[#allocation18] sm:$0xff] %v2673_v51  ;;  %v2671_v51 = vld [vmem:[#allocation13 + $0x70] sm:$0xff] }
 0x76d   : > { %v2676_v63 = vadd.f32 %v2660_v50, %v2644_v4 }
 0x76f   : > { %2692 = vst [vmem:[#allocation18 + $0x18] sm:$0xff] %v2676_v63 }
 0x772   : > { %v2569_v13 = vpop.permute.xlu0 %2568 }
 0x773   : > { %v2642_v38 = vmul.f32 %v2569_v13, %v2546_v17  ;;  %v2589_v56 = vpop.permute.xlu1 %2588 }
 0x774   : > { %v2646_v42 = vmul.f32 %v2589_v56, %v2550_v32 }
 0x775   : > { %v2674_v53 = vadd.f32 %v2658_v16, %v2642_v38 }
 0x776   : > { %v2584_v47 = vpop.permute.xlu0 %2583  ;;  %v2678_v37 = vadd.f32 %v2662_v57, %v2646_v42 }
 0x777   : > { %2690 = vst [vmem:[#allocation18 + $0x8] sm:$0xff] %v2674_v53  ;;  %v2645_v48 = vmul.f32 %v2584_v47, %v2549_v21  ;;  %v2599_v27 = vpop.permute.xlu1 %2598 }
 0x778   : > { %2694 = vst [vmem:[#allocation18 + $0x28] sm:$0xff] %v2678_v37  ;;  %v2648_v2 = vmul.f32 %v2599_v27, %v2552_v41 }
 0x779   : > { %v2677_v8 = vadd.f32 %v2661_v49, %v2645_v48 }
 0x77a   : > { %v2594_v1 = vpop.permute.xlu0 %2593  ;;  %v2680_v9 = vadd.f32 %v2664_v28, %v2648_v2 }
 0x77b   : > { %2693 = vst [vmem:[#allocation18 + $0x20] sm:$0xff] %v2677_v8  ;;  %v2647_v40 = vmul.f32 %v2594_v1, %v2551_v36  ;;  %v2609_v55 = vpop.permute.xlu1 %2608 }
 0x77c   : > { %2696 = vst [vmem:[#allocation18 + $0x38] sm:$0xff] %v2680_v9  ;;  %v2650_v34 = vmul.f32 %v2609_v55, %v2554_v54 }
 0x77d   : > { %v2679_v12 = vadd.f32 %v2663_v7, %v2647_v40 }
 0x77e   : > { %v2604_v10 = vpop.permute.xlu0 %2603  ;;  %v2682_v6 = vadd.f32 %v2666_v18, %v2650_v34 }
 0x77f   : > { %2695 = vst [vmem:[#allocation18 + $0x30] sm:$0xff] %v2679_v12  ;;  %v2649_v3 = vmul.f32 %v2604_v10, %v2553_v61  ;;  %v2619_v30 = vpop.permute.xlu1 %2618 }
 0x780   : > { %2698 = vst [vmem:[#allocation18 + $0x48] sm:$0xff] %v2682_v6  ;;  %v2652_v52 = vmul.f32 %v2619_v30, %v2556_v20 }
 0x781   : > { %v2681_v29 = vadd.f32 %v2665_v62, %v2649_v3 }
 0x782   : > { %v2614_v11 = vpop.permute.xlu0 %2613  ;;  %v2684_v45 = vadd.f32 %v2668_v58, %v2652_v52 }
 0x783   : > { %2697 = vst [vmem:[#allocation18 + $0x40] sm:$0xff] %v2681_v29  ;;  %v2651_v31 = vmul.f32 %v2614_v11, %v2555_v39  ;;  %v2629_v46 = vpop.permute.xlu1 %2628 }
 0x784   : > { %2700 = vst [vmem:[#allocation18 + $0x58] sm:$0xff] %v2684_v45  ;;  %v2654_v25 = vmul.f32 %v2629_v46, %v2558_v59 }
 0x785   : > { %v2683_v22 = vadd.f32 %v2667_v33, %v2651_v31 }
 0x786   : > { %v2624_v23 = vpop.permute.xlu0 %2623  ;;  %v2686_v15 = vadd.f32 %v2670_v35, %v2654_v25 }
 0x787   : > { %2699 = vst [vmem:[#allocation18 + $0x50] sm:$0xff] %v2683_v22  ;;  %v2653_v5 = vmul.f32 %v2624_v23, %v2557_v26  ;;  %v2639_v24 = vpop.permute.xlu1 %2638 }
 0x788   : > { %2702 = vst [vmem:[#allocation18 + $0x68] sm:$0xff] %v2686_v15  ;;  %v2656_v17 = vmul.f32 %v2639_v24, %v2560_v0 }
 0x789   : > { %v2685_v14 = vadd.f32 %v2669_v60, %v2653_v5 }
 0x78a   : > { %v2634_v50 = vpop.permute.xlu0 %2633  ;;  %v2688_v4 = vadd.f32 %v2672_v19, %v2656_v17 }
 0x78b   : > { %2701 = vst [vmem:[#allocation18 + $0x60] sm:$0xff] %v2685_v14  ;;  %v2655_v43 = vmul.f32 %v2634_v50, %v2559_v44 }
 0x78c   : > { %2704 = vst [vmem:[#allocation18 + $0x78] sm:$0xff] %v2688_v4 }
 0x78d   : > { %v2687_v16 = vadd.f32 %v2671_v51, %v2655_v43 }
 0x78f   : > { %2703 = vst [vmem:[#allocation18 + $0x70] sm:$0xff] %v2687_v16 }
 0x790 PF: > { %p3141_p12 = scmp.eq.s32.totalorder %s3692_s19, 2  ;;  %s3645_s20 = smov [#allocation18]  }
 0x791   : > { %s2711_s21 = sshll.u32 %s3645_s20, 4  ;;  %s2712_s21 = int_to_ptr.vmem [resolvable:$true] %s2711_s21 }
 0x792   : > { %s3561_s12 = scalar_lea.vmem %s2712_s21, 2048  ;;  %p3568_p9 = scmp.lt.s32.totalorder %s2712_s21, %s2712_s21 }
 0x793   : > { %p3562_p13 = scmp.ne.s32.totalorder %s2712_s21, %s3561_s12  ;;  %p3569_p11 = scmp.lt.s32.totalorder %s3561_s12, %s3561_s12 }
 0x795   : > { %p3563_p0 = pnand %p3562_p13, %p3141_p12  ;;  %p3570_p2 = por %p3569_p11, %p3568_p9 }
 0x797   : > { %p3564_p3 = pneg %p3563_p0 }
 0x799   : > { %p3571_p7 = pnand %p3570_p2, %p3564_p3 }
 0x79b   : > { %3574 = shalt.err (!%p3571_p7)
}
 0x79c   : > { %s3575_s15 = scalar_lea.hbm %s4712_s4, 2048 }
 0x79d   : > { %p3576_p1 = scmp.ne.s32.totalorder %s4712_s4, %s3575_s15  ;;  %p3581_p5 = scmp.lt.u32.totalorder %s3575_s15, %s4712_s4 }
 0x79f   : > { %p3577_p8 = pnand %p3576_p1, %p3141_p12 }
 0x7a1   : > { %p3578_p4 = pneg %p3577_p8 }
 0x7a3   : > { %p3583_p6 = pnand %p3581_p5, %p3578_p4 }
 0x7a5   : > { %3586 = shalt.err (!%p3583_p6)
}
 0x7a6   : > { %s3646_s26 = smov 128   ;;  %s3647_s30 = smov 8  }
 0x7a7   : > { %3117 = dma.vmem_to_hbm [thread:$0]  (%p3141_p12), %s2712_s21, 2048, %s4712_s4, [#allocation12], %s3646_s26, %s3646_s26, %s3647_s30  }
 0x7a8   : > { %3616 = dma.done.wait (%p3141_p12), [#allocation12], 2048  }
 0x7a9   : > { %3618 = vsyncadd (%p3141_p12), [#allocation12], 4294965248 }
 0x7aa PF: > { %p17_p10 = scmp.ge.s32.totalorder %s3804_s8, 5   ;;  %s4776_s15 = smov %s3625_s16 }
 0x7ab   : > { %s4777_s16 = smov %s3629_s17  ;;  %s4778_s17 = smov %s3814_s6 }
 0x7ac   : > { %s4779_s18 = smov %s3804_s8  ;;  %19 = sbr.rel (!%p17_p10) target bundleno = 6 (0x6), region = 93 }
 0x7b3   :  { %2727 = vsyncpa [#allocation11], 1 }
 0x7b4   :  { %2729 = vsyncpa [#allocation11 + $0x1], 1 }
 0x7b5   :  { %2730 = vsyncpa [#allocation14], 1 }
 0x7b6   :  { %2731 = vsyncpa [#allocation17], 1 }
 0x7b7   :  { %2732 = vsyncpa [#allocation12], 1 }
 0x7b8   :  { %2734 = vsyncpa [#allocation12 + $0x1], 1 }

</bundles_post_ra>
